<compile_context>
chip_gen: v6e
topology: v6e:2x2x1
jax: 0.10.0
libtpu: 0.0.40
codegen_flags: <defaults>
</compile_context>

<pallas_src>
import functools
import math

import jax
import jax.numpy as jnp
from jax import lax
from jax.experimental import pallas as pl
from jax.experimental.pallas import tpu as pltpu


_VMEM = functools.partial(pl.BlockSpec, memory_space=pltpu.MemorySpace.VMEM)


def _pick_vocab_tile(V):
    """Largest vocab tile (multiple of 128) dividing V; prefer >= 2 grid steps."""
    for t in (8192, 4096, 2048, 1024, 512, 256, 128):
        if V % t == 0 and V // t >= 2:
            return t
    for t in (8192, 4096, 2048, 1024, 512, 256, 128):
        if V % t == 0:
            return t
    # TODO(synk): non-multiple-of-128 vocab sizes need a padded + masked tail tile.
    return V


def _softplus(x):
    return jnp.maximum(x, 0.0) + jnp.log(1.0 + jnp.exp(-jnp.abs(x)))


# ---------------------------------------------------------------------------
# Sinkhorn helper (traced inside kernels).  Elementwise scale + XLU reductions
# (no 1-wide MXU matvecs); exact division for numerical robustness over many
# serial iterations.  The PyTorch early stopping (stopThr) is replaced by a
# fixed iteration count.
# ---------------------------------------------------------------------------
def _sinkhorn(cost, alpha, n_iter, unroll):
    m, n = cost.shape
    Kmat = jnp.exp(cost * (-alpha))
    a = 1.0 / m
    b = 1.0 / n
    eps = 1e-16

    def body(_, carry):
        u, v = carry
        ktu = jnp.sum(Kmat * u, axis=0, keepdims=True)     # (1, n) sublane reduce
        v = b / (ktu + eps)
        kv = jnp.sum(Kmat * v, axis=1, keepdims=True)      # (m, 1) lane reduce
        u = a / (kv + eps)
        return u, v

    u0 = jnp.full((m, 1), 1.0 / m, dtype=jnp.float32)
    v0 = jnp.zeros((1, n), dtype=jnp.float32)
    u, v = lax.fori_loop(0, n_iter, body, (u0, v0), unroll=unroll)
    return u * Kmat * v


# ---------------------------------------------------------------------------
# Kernel 1: fused TPD pair = sqdist + Sinkhorn + sum(transp*cost)  (tiny shapes)
#   yT passed pre-transposed from the wrapper -> plain x @ yT matmul.
# ---------------------------------------------------------------------------
def _tpd_pair_kernel(x_ref, yT_ref, y2row_ref, transp_ref, loss_ref, *, alpha, n_iter):
    x = x_ref[...]
    x2 = jnp.sum(x * x, axis=1, keepdims=True)                               # (m, 1)
    xy = jnp.dot(x, yT_ref[...], preferred_element_type=jnp.float32)         # (m, n)
    cost = jnp.maximum(x2 + y2row_ref[...] - 2.0 * xy, 0.0)
    unroll = True if n_iter <= 256 else 8      # tiny single-vreg problem: full unroll
    transp = _sinkhorn(cost, alpha, n_iter, unroll)
    transp_ref[...] = transp
    loss_ref[...] = jnp.sum(jnp.sum(transp * cost, axis=1, keepdims=True),
                            axis=0, keepdims=True)


def tpd_transport(x, y, alpha, n_iter):
    m, n = x.shape[0], y.shape[0]
    yT = y.T
    y2row = jnp.sum(y * y, axis=1)[None, :]
    return pl.pallas_call(
        functools.partial(_tpd_pair_kernel, alpha=float(alpha), n_iter=int(n_iter)),
        out_shape=(jax.ShapeDtypeStruct((m, n), jnp.float32),
                   jax.ShapeDtypeStruct((1, 1), jnp.float32)),
        in_specs=[_VMEM(), _VMEM(), _VMEM()],
        out_specs=(_VMEM(), _VMEM()),
    )(x.astype(jnp.float32), yT.astype(jnp.float32), y2row.astype(jnp.float32))


# ---------------------------------------------------------------------------
# Kernel 2: fused ECR = bottom-layer sqdist (tiled over vocab into a resident
# VMEM scratch) + Sinkhorn + OT loss on the last grid step.  No (K, V) HBM
# roundtrip for the cost matrix.
# ---------------------------------------------------------------------------
def _ecr_kernel(te_ref, t2_ref, we_ref, w2_ref, loss_ref, cost_vmem,
                *, alpha, n_iter, tv):
    k = pl.program_id(0)
    xy = jnp.dot(te_ref[...], we_ref[...],
                 preferred_element_type=jnp.float32)                         # (K, tv)
    cost = jnp.maximum(t2_ref[...] + w2_ref[...] - 2.0 * xy, 0.0)
    start = pl.multiple_of(k * tv, tv)
    cost_vmem[:, pl.ds(start, tv)] = cost

    @pl.when(k == pl.num_programs(0) - 1)
    def _():
        c = cost_vmem[...]
        transp = _sinkhorn(c, alpha, n_iter, unroll=2)
        loss_ref[...] = jnp.sum(jnp.sum(transp * c, axis=1, keepdims=True),
                                axis=0, keepdims=True)


def ecr_ot_loss(te_bf16, t2, weT_bf16, w2row, alpha, n_iter, tv):
    K, E = te_bf16.shape
    V = weT_bf16.shape[1]
    nv = V // tv
    # cost scratch + Kmat + transp intermediates are resident f32 (K, V) arrays.
    vmem_need = 6 * K * V * 4 + (4 << 20)
    vmem_limit = int(min(max(32 << 20, vmem_need), 100 << 20))
    return pl.pallas_call(
        functools.partial(_ecr_kernel, alpha=float(alpha), n_iter=int(n_iter), tv=int(tv)),
        out_shape=jax.ShapeDtypeStruct((1, 1), jnp.float32),
        grid=(nv,),
        in_specs=[pl.BlockSpec((K, E), lambda k: (0, 0)),
                  pl.BlockSpec((K, 1), lambda k: (0, 0)),
                  pl.BlockSpec((E, tv), lambda k: (0, k)),
                  pl.BlockSpec((1, tv), lambda k: (0, k))],
        out_specs=pl.BlockSpec((1, 1), lambda k: (0, 0)),
        scratch_shapes=[pltpu.VMEM((K, V), jnp.float32)],
        compiler_params=pltpu.CompilerParams(
            dimension_semantics=("arbitrary",),
            vmem_limit_bytes=vmem_limit),
    )(te_bf16, t2, weT_bf16, w2row)


# ---------------------------------------------------------------------------
# Kernel 3: per-layer decoder NLL with the beta computation FUSED in, tiled
# over vocab with an online logsumexp.
#   beta = softmax_topics(-dist/temp); ||w||^2 cancels in the topic softmax.
#   recon = softmax_vocab(BN_train(theta @ beta) + bias)
#   nll   = (sum_v bow) * logsumexp_v(zn) - sum_v bow*zn
#   BN is per-vocab-column over the batch, so per-tile stats are exact.
# ---------------------------------------------------------------------------
def _decoder_kernel(bow_ref, theta_ref, te_ref, t2_ref, we_ref, bnb_ref, nll_ref,
                    m_sc, l_sc, swz_sc, sw_sc, *, beta_temp, bn_eps):
    k = pl.program_id(0)

    @pl.when(k == 0)
    def _():
        m_sc[...] = jnp.full_like(m_sc, -jnp.inf)
        l_sc[...] = jnp.zeros_like(l_sc)
        swz_sc[...] = jnp.zeros_like(swz_sc)
        sw_sc[...] = jnp.zeros_like(sw_sc)

    # ---- per-tile beta (softmax over topics) -------------------------------
    xy = jnp.dot(te_ref[...], we_ref[...],
                 preferred_element_type=jnp.float32)                         # (K, tv)
    zt = (t2_ref[...] - 2.0 * xy) * (-1.0 / beta_temp)
    zt = zt - jnp.max(zt, axis=0, keepdims=True)
    e = jnp.exp(zt)
    beta = e * pl.reciprocal(jnp.sum(e, axis=0, keepdims=True), approx=True)

    # ---- theta @ beta, BN (train), online logsumexp over vocab -------------
    z = jnp.dot(theta_ref[...], beta.astype(jnp.bfloat16),
                preferred_element_type=jnp.float32)                          # (B, tv)
    mean = jnp.mean(z, axis=0, keepdims=True)
    var = jnp.mean((z - mean) * (z - mean), axis=0, keepdims=True)  # biased (train)
    zn = (z - mean) * lax.rsqrt(var + bn_eps) + bnb_ref[...]        # BN weight == 1

    bow = bow_ref[...]
    m_new = jnp.maximum(m_sc[...], jnp.max(zn, axis=-1, keepdims=True))
    scale = jnp.exp(m_sc[...] - m_new)
    l_sc[...] = scale * l_sc[...] + jnp.sum(jnp.exp(zn - m_new), axis=-1, keepdims=True)
    m_sc[...] = m_new
    swz_sc[...] += jnp.sum(bow * zn, axis=-1, keepdims=True)
    sw_sc[...] += jnp.sum(bow, axis=-1, keepdims=True)

    @pl.when(k == pl.num_programs(0) - 1)
    def _():
        lse = m_sc[...] + jnp.log(l_sc[...])
        nll_ref[...] = sw_sc[...] * lse - swz_sc[...]


def decoder_layer_nll(bow, theta_bf16, te_bf16, t2, weT_bf16, bn_bias,
                      beta_temp, tv, bn_eps=1e-5):
    # TODO(synk): on v7x a leading 'parallel' vocab-half axis could use both TCs.
    B, V = bow.shape
    K, E = te_bf16.shape
    nv = V // tv
    return pl.pallas_call(
        functools.partial(_decoder_kernel, beta_temp=float(beta_temp), bn_eps=float(bn_eps)),
        out_shape=jax.ShapeDtypeStruct((B, 1), jnp.float32),
        grid=(nv,),
        in_specs=[pl.BlockSpec((B, tv), lambda k: (0, k)),       # bow (f32)
                  pl.BlockSpec((B, K), lambda k: (0, 0)),        # theta (bf16)
                  pl.BlockSpec((K, E), lambda k: (0, 0)),        # topic emb (bf16)
                  pl.BlockSpec((K, 1), lambda k: (0, 0)),        # ||t||^2 (f32)
                  pl.BlockSpec((E, tv), lambda k: (0, k)),       # word emb^T (bf16)
                  pl.BlockSpec((1, tv), lambda k: (0, k))],      # decoder BN bias
        out_specs=pl.BlockSpec((B, 1), lambda k: (0, 0)),
        scratch_shapes=[pltpu.VMEM((B, 1), jnp.float32)] * 4,
        compiler_params=pltpu.CompilerParams(dimension_semantics=("arbitrary",)),
    )(bow, theta_bf16, te_bf16, t2, weT_bf16, bn_bias)


# ---------------------------------------------------------------------------
# Kernel 4: MLP encoder, tiled over vocab (the only big contraction).
#   bow cast to bf16 once in the wrapper; bf16 MXU operands, f32 accumulator;
#   fused softplus stack; concatenated mu/logvar head -> one (B, 2K) output.
# ---------------------------------------------------------------------------
def _encoder_kernel(bow_ref, w1_ref, b1_ref, w2_ref, b2_ref, wh_ref, bh_ref,
                    out_ref, acc_ref):
    k = pl.program_id(0)

    @pl.when(k == 0)
    def _():
        acc_ref[...] = jnp.zeros_like(acc_ref)

    acc_ref[...] += jnp.dot(bow_ref[...], w1_ref[...],
                            preferred_element_type=jnp.float32)

    @pl.when(k == pl.num_programs(0) - 1)
    def _():
        e1 = _softplus(acc_ref[...] + b1_ref[...])
        e1 = _softplus(jnp.dot(e1.astype(jnp.bfloat16), w2_ref[...],
                               preferred_element_type=jnp.float32) + b2_ref[...])
        out_ref[...] = jnp.dot(e1.astype(jnp.bfloat16), wh_ref[...],
                               preferred_element_type=jnp.float32) + bh_ref[...]


def encoder_forward(bow_bf16, p, tv):
    B, V = bow_bf16.shape
    H = p["w2"].shape[0]
    two_k = p["wh"].shape[1]
    nv = V // tv
    return pl.pallas_call(
        _encoder_kernel,
        out_shape=jax.ShapeDtypeStruct((B, two_k), jnp.float32),
        grid=(nv,),
        in_specs=[pl.BlockSpec((B, tv), lambda k: (0, k)),      # bow (bf16)
                  pl.BlockSpec((tv, H), lambda k: (k, 0)),      # W1 (bf16)
                  pl.BlockSpec((1, H), lambda k: (0, 0)),       # b1
                  pl.BlockSpec((H, H), lambda k: (0, 0)),       # W2 (bf16)
                  pl.BlockSpec((1, H), lambda k: (0, 0)),       # b2
                  pl.BlockSpec((H, two_k), lambda k: (0, 0)),   # [Wmu|Wlv] (bf16)
                  pl.BlockSpec((1, two_k), lambda k: (0, 0))],  # [bmu|blv]
        out_specs=pl.BlockSpec((B, two_k), lambda k: (0, 0)),
        scratch_shapes=[pltpu.VMEM((B, H), jnp.float32)],
        compiler_params=pltpu.CompilerParams(dimension_semantics=("arbitrary",)),
    )(bow_bf16, p["w1"], p["b1"], p["w2"], p["b2"], p["wh"], p["bh"])


# ---------------------------------------------------------------------------
# Kernel 5: standalone per-layer beta (public get_beta() API only; forward()
# uses the fused decoder path).  Tiled over vocab, megacore-friendly.
# ---------------------------------------------------------------------------
def _beta_kernel(te_ref, t2_ref, we_ref, w2_ref, beta_ref, *, beta_temp):
    xy = jnp.dot(te_ref[...], we_ref[...], preferred_element_type=jnp.float32)
    dist = t2_ref[...] + w2_ref[...] - 2.0 * xy
    z = dist * (-1.0 / beta_temp)
    z = z - jnp.max(z, axis=0, keepdims=True)
    e = jnp.exp(z)
    beta_ref[...] = e / jnp.sum(e, axis=0, keepdims=True)


def beta_layer(te_bf16, t2, weT_bf16, w2row, beta_temp, tv):
    K, E = te_bf16.shape
    V = weT_bf16.shape[1]
    nv = V // tv
    return pl.pallas_call(
        functools.partial(_beta_kernel, beta_temp=float(beta_temp)),
        out_shape=jax.ShapeDtypeStruct((K, V), jnp.float32),
        grid=(nv,),
        in_specs=[pl.BlockSpec((K, E), lambda k: (0, 0)),
                  pl.BlockSpec((K, 1), lambda k: (0, 0)),
                  pl.BlockSpec((E, tv), lambda k: (0, k)),
                  pl.BlockSpec((1, tv), lambda k: (0, k))],
        out_specs=pl.BlockSpec((K, tv), lambda k: (0, k)),
        compiler_params=pltpu.CompilerParams(dimension_semantics=("parallel",)),
    )(te_bf16, t2, weT_bf16, w2row)


# ---------------------------------------------------------------------------
# TraCoECR model (forward semantics of the PyTorch module, training mode)
# ---------------------------------------------------------------------------
class TraCoECRPallas:
    def __init__(self, vocab_size, num_topics_list=(8, 16), en_units=64, embed_size=64,
                 bias_topk=20, bias_p=5.0, weight_loss_ECR=250.0, alpha_ECR=20.0,
                 beta_temp=0.1, weight_loss_TPD=20.0, sinkhorn_alpha=20.0,
                 sinkhorn_max_iter=100, key=None):
        self.num_topics_list = list(num_topics_list)
        self.num_layers = len(num_topics_list)
        self.beta_temp = beta_temp
        self.weight_loss_TPD = weight_loss_TPD
        self.weight_loss_ECR = weight_loss_ECR
        self.alpha_ECR = alpha_ECR
        self.sinkhorn_alpha = sinkhorn_alpha
        self.sinkhorn_max_iter = sinkhorn_max_iter
        self.bias_topk = bias_topk
        self.bias_p = bias_p
        self.vocab_tile = _pick_vocab_tile(vocab_size)

        if key is None:
            key = jax.random.PRNGKey(0)
        ks = jax.random.split(key, 8)
        V, E, H = vocab_size, embed_size, en_units
        Kb = self.num_topics_list[-1]

        def trunc_normal(k, shape, std=1.0):
            return std * jax.random.truncated_normal(k, -2.0, 2.0, shape, jnp.float32)

        def l2norm(x):
            return x / (jnp.linalg.norm(x, axis=1, keepdims=True) + 1e-12)

        # word embeddings behave like a pre-normalized pretrained_WE
        self.word_embeddings = l2norm(trunc_normal(ks[0], (V, E)))
        self.topic_embeddings_list = [
            l2norm(trunc_normal(jax.random.fold_in(ks[1], i), (K, E), std=0.1))
            for i, K in enumerate(self.num_topics_list)
        ]

        # Pre-transposed / pre-cast word-embedding operands (constant per forward):
        #   (E, V) bf16 for plain te @ weT MXU matmuls, ||w||^2 row in f32.
        self.weT_bf16 = self.word_embeddings.T.astype(jnp.bfloat16)
        self.w2row = jnp.sum(self.word_embeddings * self.word_embeddings, axis=1)[None, :]

        def linear(k, fan_in, fan_out):
            lim = 1.0 / math.sqrt(fan_in)
            kw, kb = jax.random.split(k)
            w = jax.random.uniform(kw, (fan_in, fan_out), jnp.float32, -lim, lim)
            b = jax.random.uniform(kb, (1, fan_out), jnp.float32, -lim, lim)
            return w, b

        w1, b1 = linear(ks[2], V, H)
        w2, b2 = linear(ks[3], H, H)
        wmu, bmu = linear(ks[4], H, Kb)
        wlv, blv = linear(ks[5], H, Kb)
        # matmul weights stored in bf16 (MXU-native), biases in f32
        self.encoder_params = dict(
            w1=w1.astype(jnp.bfloat16), b1=b1,
            w2=w2.astype(jnp.bfloat16), b2=b2,
            wh=jnp.concatenate([wmu, wlv], axis=1).astype(jnp.bfloat16),
            bh=jnp.concatenate([bmu, blv], axis=1))

        # BatchNorm1d biases (weights frozen at 1.0, biases initialised to 0.0)
        self.mean_bn_bias = jnp.zeros((1, Kb), jnp.float32)
        self.logvar_bn_bias = jnp.zeros((1, Kb), jnp.float32)
        self.decoder_bn_bias = [jnp.zeros((1, V), jnp.float32) for _ in self.num_topics_list]

        # mirrors __init__: _, self.transp_list = self.TPD(self.topic_embeddings_list)
        _, self.transp_list = self._tpd(1.0)

    # -- small helpers ---------------------------------------------------------
    def _te_bf16_t2(self, lid):
        te = self.topic_embeddings_list[lid]
        return te.astype(jnp.bfloat16), jnp.sum(te * te, axis=1, keepdims=True)

    # -- TPD (topic-embedding transport between adjacent layers) --------------
    def _tpd(self, weight):
        loss = jnp.zeros((), jnp.float32)
        transp_list = []
        for lid in range(self.num_layers - 1):
            transp, part = tpd_transport(self.topic_embeddings_list[lid],
                                         self.topic_embeddings_list[lid + 1],
                                         self.sinkhorn_alpha, self.sinkhorn_max_iter)
            transp_list.append(transp)
            loss = loss + part[0, 0]
        return weight * loss, transp_list

    # -- public beta API (not used by forward; forward fuses beta in decoder) --
    def get_beta(self):
        betas = []
        for lid in range(self.num_layers):
            te_b, t2 = self._te_bf16_t2(lid)
            betas.append(beta_layer(te_b, t2, self.weT_bf16, self.w2row,
                                    self.beta_temp, self.vocab_tile))
        return betas

    def get_phi_list(self):
        return [t * t.shape[1] for t in self.transp_list]

    @staticmethod
    def _batchnorm_train(x, bias, eps=1e-5):
        mean = jnp.mean(x, axis=0, keepdims=True)
        var = jnp.mean((x - mean) ** 2, axis=0, keepdims=True)
        return (x - mean) / jnp.sqrt(var + eps) + bias

    def get_theta(self, input_bow, eps_key):
        K = self.num_topics_list[-1]
        enc_out = encoder_forward(input_bow.astype(jnp.bfloat16),
                                  self.encoder_params, self.vocab_tile)
        mu_raw, lv_raw = enc_out[:, :K], enc_out[:, K:]
        mu = self._batchnorm_train(mu_raw, self.mean_bn_bias)
        logvar = self._batchnorm_train(lv_raw, self.logvar_bn_bias)
        # training mode: reparameterize with deterministic eps
        eps = jax.random.normal(eps_key, mu.shape, jnp.float32)
        z = mu + eps * jnp.exp(0.5 * logvar)
        bottom_theta = jax.nn.softmax(z, axis=1)

        phi_list = self.get_phi_list()
        theta_list = []
        for lid in range(self.num_layers)[::-1]:
            if lid == self.num_layers - 1:
                theta_list.append(bottom_theta)
            else:
                theta_list.append(jnp.matmul(theta_list[-1], phi_list[lid].T))
        return theta_list[::-1], mu, logvar

    def get_loss_ECR(self):
        te_b, t2 = self._te_bf16_t2(self.num_layers - 1)
        ot = ecr_ot_loss(te_b, t2, self.weT_bf16, self.w2row,
                         self.alpha_ECR, self.sinkhorn_max_iter, self.vocab_tile)
        return self.weight_loss_ECR * ot[0, 0]

    def compute_loss_KL(self, mu, logvar):
        K = mu.shape[1]
        var_prior = 1.0 - 1.0 / K          # derived from a = ones(1, K)
        var = jnp.exp(logvar)
        var_division = var / var_prior
        diff_term = mu * mu / var_prior    # mu_prior = 0
        logvar_division = jnp.log(var_prior) - logvar
        return 0.5 * (jnp.sum(var_division + diff_term + logvar_division, axis=1) - K)

    # -- forward ---------------------------------------------------------------
    def forward(self, inputs, eps_key):
        input_bow = inputs["data"]

        loss_TPD, self.transp_list = self._tpd(self.weight_loss_TPD)
        theta_list, mu, logvar = self.get_theta(input_bow, eps_key)
        loss_KL = jnp.mean(self.compute_loss_KL(mu, logvar))
        loss_ECR = self.get_loss_ECR()

        # TODO(synk): CDDecoder's cross-layer top-k context bias (bias_p / bias_topk)
        # is not reproduced; the standard per-layer BN + softmax decoder NLL is used.
        recon_loss = jnp.zeros((), jnp.float32)
        for lid in range(self.num_layers):
            te_b, t2 = self._te_bf16_t2(lid)
            nll = decoder_layer_nll(input_bow,
                                    theta_list[lid].astype(jnp.bfloat16),
                                    te_b, t2, self.weT_bf16,
                                    self.decoder_bn_bias[lid],
                                    self.beta_temp, self.vocab_tile)
            recon_loss = recon_loss + jnp.mean(nll)

        loss = loss_TPD + loss_KL + loss_ECR + recon_loss
        return {"loss": loss, "loss_TPD": loss_TPD, "loss_KL": loss_KL,
                "recon_loss": recon_loss, "loss_ECR": loss_ECR}


if __name__ == "__main__":
    V, B = 1024, 8
    model = TraCoECRPallas(vocab_size=V, num_topics_list=(8, 16), en_units=64,
                           embed_size=64, sinkhorn_max_iter=50,
                           key=jax.random.PRNGKey(0))

    key = jax.random.PRNGKey(0)
    k_bow, k_eps = jax.random.split(key)
    input_bow = jax.random.randint(k_bow, (B, V), 0, 4).astype(jnp.float32)

    rst = model.forward({"data": input_bow}, k_eps)
    for v in rst.values():
        jax.block_until_ready(v)
    assert bool(jnp.isfinite(rst["loss"])), "non-finite loss"
    print("KERNEL_OK")
</pallas_src>

<mosaic_0001>
module attributes {stable_mosaic.version = 11 : i64} {
  func.func @_tpd_pair_kernel(%arg0: memref<8x64xf32, #tpu.memory_space<vmem>>, %arg1: memref<64x16xf32, #tpu.memory_space<vmem>>, %arg2: memref<1x16xf32, #tpu.memory_space<vmem>>, %arg3: memref<8x16xf32, #tpu.memory_space<vmem>>, %arg4: memref<1x1xf32, #tpu.memory_space<vmem>>) attributes {dimension_semantics = [], scalar_prefetch = 0 : i64, scratch_operands = 0 : i64, tpu.core_type = #tpu.core_type<tc>} {
    %c0 = arith.constant 0 : index
    %c0_0 = arith.constant 0 : index
    %0 = vector.load %arg0[%c0, %c0_0] : memref<8x64xf32, #tpu.memory_space<vmem>>, vector<8x64xf32>
    %1 = arith.mulf %0, %0 : vector<8x64xf32>
    %cst = arith.constant dense<0.000000e+00> : vector<8xf32>
    %2 = vector.multi_reduction <add>, %1, %cst [1] : vector<8x64xf32> to vector<8xf32>
    %3 = vector.shape_cast %2 : vector<8xf32> to vector<8x1xf32>
    %c0_1 = arith.constant 0 : index
    %c0_2 = arith.constant 0 : index
    %4 = vector.load %arg1[%c0_1, %c0_2] : memref<64x16xf32, #tpu.memory_space<vmem>>, vector<64x16xf32>
    %cst_3 = arith.constant dense<0.000000e+00> : vector<8x16xf32>
    %5 = tpu.matmul %0, %4, %cst_3 {dimension_numbers = #tpu.dot_dimension_numbers<[1], [0], [0], [1], [0, 0, 1, 1], [], []>} : vector<8x64xf32>, vector<64x16xf32>, vector<8x16xf32> -> vector<8x16xf32>
    %c0_4 = arith.constant 0 : index
    %c0_5 = arith.constant 0 : index
    %6 = vector.load %arg2[%c0_4, %c0_5] : memref<1x16xf32, #tpu.memory_space<vmem>>, vector<1x16xf32>
    %7 = vector.broadcast %3 : vector<8x1xf32> to vector<8x16xf32>
    %8 = vector.broadcast %6 : vector<1x16xf32> to vector<8x16xf32>
    %9 = arith.addf %7, %8 : vector<8x16xf32>
    %cst_6 = arith.constant 2.000000e+00 : f32
    %10 = vector.broadcast %cst_6 : f32 to vector<8x16xf32>
    %11 = arith.mulf %10, %5 : vector<8x16xf32>
    %12 = arith.subf %9, %11 : vector<8x16xf32>
    %cst_7 = arith.constant 0.000000e+00 : f32
    %13 = vector.broadcast %cst_7 : f32 to vector<8x16xf32>
    %14 = arith.maximumf %12, %13 : vector<8x16xf32>
    %cst_8 = arith.constant -2.000000e+01 : f32
    %15 = vector.broadcast %cst_8 : f32 to vector<8x16xf32>
    %16 = arith.mulf %14, %15 : vector<8x16xf32>
    %17 = math.exp %16 : vector<8x16xf32>
    %cst_9 = arith.constant 1.250000e-01 : f32
    %18 = vector.broadcast %cst_9 : f32 to vector<8x1xf32>
    %cst_10 = arith.constant 0.000000e+00 : f32
    %19 = vector.broadcast %cst_10 : f32 to vector<1x16xf32>
    %c0_i32 = arith.constant 0 : i32
    %20 = vector.broadcast %18 : vector<8x1xf32> to vector<8x16xf32>
    %21 = arith.mulf %17, %20 : vector<8x16xf32>
    %cst_11 = arith.constant dense<0.000000e+00> : vector<16xf32>
    %22 = vector.multi_reduction <add>, %21, %cst_11 [0] : vector<8x16xf32> to vector<16xf32>
    %23 = vector.shape_cast %22 : vector<16xf32> to vector<1x16xf32>
    %cst_12 = arith.constant 1.000000e-16 : f32
    %24 = vector.broadcast %cst_12 : f32 to vector<1x16xf32>
    %25 = arith.addf %23, %24 : vector<1x16xf32>
    %cst_13 = arith.constant 6.250000e-02 : f32
    %26 = vector.broadcast %cst_13 : f32 to vector<1x16xf32>
    %27 = arith.divf %26, %25 : vector<1x16xf32>
    %28 = vector.broadcast %27 : vector<1x16xf32> to vector<8x16xf32>
    %29 = arith.mulf %17, %28 : vector<8x16xf32>
    %cst_14 = arith.constant dense<0.000000e+00> : vector<8xf32>
    %30 = vector.multi_reduction <add>, %29, %cst_14 [1] : vector<8x16xf32> to vector<8xf32>
    %31 = vector.shape_cast %30 : vector<8xf32> to vector<8x1xf32>
    %cst_15 = arith.constant 1.000000e-16 : f32
    %32 = vector.broadcast %cst_15 : f32 to vector<8x1xf32>
    %33 = arith.addf %31, %32 : vector<8x1xf32>
    %cst_16 = arith.constant 1.250000e-01 : f32
    %34 = vector.broadcast %cst_16 : f32 to vector<8x1xf32>
    %35 = arith.divf %34, %33 : vector<8x1xf32>
    %c1_i32 = arith.constant 1 : i32
    %36 = vector.broadcast %35 : vector<8x1xf32> to vector<8x16xf32>
    %37 = arith.mulf %17, %36 : vector<8x16xf32>
    %cst_17 = arith.constant dense<0.000000e+00> : vector<16xf32>
    %38 = vector.multi_reduction <add>, %37, %cst_17 [0] : vector<8x16xf32> to vector<16xf32>
    %39 = vector.shape_cast %38 : vector<16xf32> to vector<1x16xf32>
    %cst_18 = arith.constant 1.000000e-16 : f32
    %40 = vector.broadcast %cst_18 : f32 to vector<1x16xf32>
    %41 = arith.addf %39, %40 : vector<1x16xf32>
    %cst_19 = arith.constant 6.250000e-02 : f32
    %42 = vector.broadcast %cst_19 : f32 to vector<1x16xf32>
    %43 = arith.divf %42, %41 : vector<1x16xf32>
    %44 = vector.broadcast %43 : vector<1x16xf32> to vector<8x16xf32>
    %45 = arith.mulf %17, %44 : vector<8x16xf32>
    %cst_20 = arith.constant dense<0.000000e+00> : vector<8xf32>
    %46 = vector.multi_reduction <add>, %45, %cst_20 [1] : vector<8x16xf32> to vector<8xf32>
    %47 = vector.shape_cast %46 : vector<8xf32> to vector<8x1xf32>
    %cst_21 = arith.constant 1.000000e-16 : f32
    %48 = vector.broadcast %cst_21 : f32 to vector<8x1xf32>
    %49 = arith.addf %47, %48 : vector<8x1xf32>
    %cst_22 = arith.constant 1.250000e-01 : f32
    %50 = vector.broadcast %cst_22 : f32 to vector<8x1xf32>
    %51 = arith.divf %50, %49 : vector<8x1xf32>
    %c2_i32 = arith.constant 2 : i32
    %52 = vector.broadcast %51 : vector<8x1xf32> to vector<8x16xf32>
    %53 = arith.mulf %17, %52 : vector<8x16xf32>
    %cst_23 = arith.constant dense<0.000000e+00> : vector<16xf32>
    %54 = vector.multi_reduction <add>, %53, %cst_23 [0] : vector<8x16xf32> to vector<16xf32>
    %55 = vector.shape_cast %54 : vector<16xf32> to vector<1x16xf32>
    %cst_24 = arith.constant 1.000000e-16 : f32
    %56 = vector.broadcast %cst_24 : f32 to vector<1x16xf32>
    %57 = arith.addf %55, %56 : vector<1x16xf32>
    %cst_25 = arith.constant 6.250000e-02 : f32
    %58 = vector.broadcast %cst_25 : f32 to vector<1x16xf32>
    %59 = arith.divf %58, %57 : vector<1x16xf32>
    %60 = vector.broadcast %59 : vector<1x16xf32> to vector<8x16xf32>
    %61 = arith.mulf %17, %60 : vector<8x16xf32>
    %cst_26 = arith.constant dense<0.000000e+00> : vector<8xf32>
    %62 = vector.multi_reduction <add>, %61, %cst_26 [1] : vector<8x16xf32> to vector<8xf32>
    %63 = vector.shape_cast %62 : vector<8xf32> to vector<8x1xf32>
    %cst_27 = arith.constant 1.000000e-16 : f32
    %64 = vector.broadcast %cst_27 : f32 to vector<8x1xf32>
    %65 = arith.addf %63, %64 : vector<8x1xf32>
    %cst_28 = arith.constant 1.250000e-01 : f32
    %66 = vector.broadcast %cst_28 : f32 to vector<8x1xf32>
    %67 = arith.divf %66, %65 : vector<8x1xf32>
    %c3_i32 = arith.constant 3 : i32
    %68 = vector.broadcast %67 : vector<8x1xf32> to vector<8x16xf32>
    %69 = arith.mulf %17, %68 : vector<8x16xf32>
    %cst_29 = arith.constant dense<0.000000e+00> : vector<16xf32>
    %70 = vector.multi_reduction <add>, %69, %cst_29 [0] : vector<8x16xf32> to vector<16xf32>
    %71 = vector.shape_cast %70 : vector<16xf32> to vector<1x16xf32>
    %cst_30 = arith.constant 1.000000e-16 : f32
    %72 = vector.broadcast %cst_30 : f32 to vector<1x16xf32>
    %73 = arith.addf %71, %72 : vector<1x16xf32>
    %cst_31 = arith.constant 6.250000e-02 : f32
    %74 = vector.broadcast %cst_31 : f32 to vector<1x16xf32>
    %75 = arith.divf %74, %73 : vector<1x16xf32>
    %76 = vector.broadcast %75 : vector<1x16xf32> to vector<8x16xf32>
    %77 = arith.mulf %17, %76 : vector<8x16xf32>
    %cst_32 = arith.constant dense<0.000000e+00> : vector<8xf32>
    %78 = vector.multi_reduction <add>, %77, %cst_32 [1] : vector<8x16xf32> to vector<8xf32>
    %79 = vector.shape_cast %78 : vector<8xf32> to vector<8x1xf32>
    %cst_33 = arith.constant 1.000000e-16 : f32
    %80 = vector.broadcast %cst_33 : f32 to vector<8x1xf32>
    %81 = arith.addf %79, %80 : vector<8x1xf32>
    %cst_34 = arith.constant 1.250000e-01 : f32
    %82 = vector.broadcast %cst_34 : f32 to vector<8x1xf32>
    %83 = arith.divf %82, %81 : vector<8x1xf32>
    %c4_i32 = arith.constant 4 : i32
    %84 = vector.broadcast %83 : vector<8x1xf32> to vector<8x16xf32>
    %85 = arith.mulf %17, %84 : vector<8x16xf32>
    %cst_35 = arith.constant dense<0.000000e+00> : vector<16xf32>
    %86 = vector.multi_reduction <add>, %85, %cst_35 [0] : vector<8x16xf32> to vector<16xf32>
    %87 = vector.shape_cast %86 : vector<16xf32> to vector<1x16xf32>
    %cst_36 = arith.constant 1.000000e-16 : f32
    %88 = vector.broadcast %cst_36 : f32 to vector<1x16xf32>
    %89 = arith.addf %87, %88 : vector<1x16xf32>
    %cst_37 = arith.constant 6.250000e-02 : f32
    %90 = vector.broadcast %cst_37 : f32 to vector<1x16xf32>
    %91 = arith.divf %90, %89 : vector<1x16xf32>
    %92 = vector.broadcast %91 : vector<1x16xf32> to vector<8x16xf32>
    %93 = arith.mulf %17, %92 : vector<8x16xf32>
    %cst_38 = arith.constant dense<0.000000e+00> : vector<8xf32>
    %94 = vector.multi_reduction <add>, %93, %cst_38 [1] : vector<8x16xf32> to vector<8xf32>
    %95 = vector.shape_cast %94 : vector<8xf32> to vector<8x1xf32>
    %cst_39 = arith.constant 1.000000e-16 : f32
    %96 = vector.broadcast %cst_39 : f32 to vector<8x1xf32>
    %97 = arith.addf %95, %96 : vector<8x1xf32>
    %cst_40 = arith.constant 1.250000e-01 : f32
    %98 = vector.broadcast %cst_40 : f32 to vector<8x1xf32>
    %99 = arith.divf %98, %97 : vector<8x1xf32>
    %c5_i32 = arith.constant 5 : i32
    %100 = vector.broadcast %99 : vector<8x1xf32> to vector<8x16xf32>
    %101 = arith.mulf %17, %100 : vector<8x16xf32>
    %cst_41 = arith.constant dense<0.000000e+00> : vector<16xf32>
    %102 = vector.multi_reduction <add>, %101, %cst_41 [0] : vector<8x16xf32> to vector<16xf32>
    %103 = vector.shape_cast %102 : vector<16xf32> to vector<1x16xf32>
    %cst_42 = arith.constant 1.000000e-16 : f32
    %104 = vector.broadcast %cst_42 : f32 to vector<1x16xf32>
    %105 = arith.addf %103, %104 : vector<1x16xf32>
    %cst_43 = arith.constant 6.250000e-02 : f32
    %106 = vector.broadcast %cst_43 : f32 to vector<1x16xf32>
    %107 = arith.divf %106, %105 : vector<1x16xf32>
    %108 = vector.broadcast %107 : vector<1x16xf32> to vector<8x16xf32>
    %109 = arith.mulf %17, %108 : vector<8x16xf32>
    %cst_44 = arith.constant dense<0.000000e+00> : vector<8xf32>
    %110 = vector.multi_reduction <add>, %109, %cst_44 [1] : vector<8x16xf32> to vector<8xf32>
    %111 = vector.shape_cast %110 : vector<8xf32> to vector<8x1xf32>
    %cst_45 = arith.constant 1.000000e-16 : f32
    %112 = vector.broadcast %cst_45 : f32 to vector<8x1xf32>
    %113 = arith.addf %111, %112 : vector<8x1xf32>
    %cst_46 = arith.constant 1.250000e-01 : f32
    %114 = vector.broadcast %cst_46 : f32 to vector<8x1xf32>
    %115 = arith.divf %114, %113 : vector<8x1xf32>
    %c6_i32 = arith.constant 6 : i32
    %116 = vector.broadcast %115 : vector<8x1xf32> to vector<8x16xf32>
    %117 = arith.mulf %17, %116 : vector<8x16xf32>
    %cst_47 = arith.constant dense<0.000000e+00> : vector<16xf32>
    %118 = vector.multi_reduction <add>, %117, %cst_47 [0] : vector<8x16xf32> to vector<16xf32>
    %119 = vector.shape_cast %118 : vector<16xf32> to vector<1x16xf32>
    %cst_48 = arith.constant 1.000000e-16 : f32
    %120 = vector.broadcast %cst_48 : f32 to vector<1x16xf32>
    %121 = arith.addf %119, %120 : vector<1x16xf32>
    %cst_49 = arith.constant 6.250000e-02 : f32
    %122 = vector.broadcast %cst_49 : f32 to vector<1x16xf32>
    %123 = arith.divf %122, %121 : vector<1x16xf32>
    %124 = vector.broadcast %123 : vector<1x16xf32> to vector<8x16xf32>
    %125 = arith.mulf %17, %124 : vector<8x16xf32>
    %cst_50 = arith.constant dense<0.000000e+00> : vector<8xf32>
    %126 = vector.multi_reduction <add>, %125, %cst_50 [1] : vector<8x16xf32> to vector<8xf32>
    %127 = vector.shape_cast %126 : vector<8xf32> to vector<8x1xf32>
    %cst_51 = arith.constant 1.000000e-16 : f32
    %128 = vector.broadcast %cst_51 : f32 to vector<8x1xf32>
    %129 = arith.addf %127, %128 : vector<8x1xf32>
    %cst_52 = arith.constant 1.250000e-01 : f32
    %130 = vector.broadcast %cst_52 : f32 to vector<8x1xf32>
    %131 = arith.divf %130, %129 : vector<8x1xf32>
    %c7_i32 = arith.constant 7 : i32
    %132 = vector.broadcast %131 : vector<8x1xf32> to vector<8x16xf32>
    %133 = arith.mulf %17, %132 : vector<8x16xf32>
    %cst_53 = arith.constant dense<0.000000e+00> : vector<16xf32>
    %134 = vector.multi_reduction <add>, %133, %cst_53 [0] : vector<8x16xf32> to vector<16xf32>
    %135 = vector.shape_cast %134 : vector<16xf32> to vector<1x16xf32>
    %cst_54 = arith.constant 1.000000e-16 : f32
    %136 = vector.broadcast %cst_54 : f32 to vector<1x16xf32>
    %137 = arith.addf %135, %136 : vector<1x16xf32>
    %cst_55 = arith.constant 6.250000e-02 : f32
    %138 = vector.broadcast %cst_55 : f32 to vector<1x16xf32>
    %139 = arith.divf %138, %137 : vector<1x16xf32>
    %140 = vector.broadcast %139 : vector<1x16xf32> to vector<8x16xf32>
    %141 = arith.mulf %17, %140 : vector<8x16xf32>
    %cst_56 = arith.constant dense<0.000000e+00> : vector<8xf32>
    %142 = vector.multi_reduction <add>, %141, %cst_56 [1] : vector<8x16xf32> to vector<8xf32>
    %143 = vector.shape_cast %142 : vector<8xf32> to vector<8x1xf32>
    %cst_57 = arith.constant 1.000000e-16 : f32
    %144 = vector.broadcast %cst_57 : f32 to vector<8x1xf32>
    %145 = arith.addf %143, %144 : vector<8x1xf32>
    %cst_58 = arith.constant 1.250000e-01 : f32
    %146 = vector.broadcast %cst_58 : f32 to vector<8x1xf32>
    %147 = arith.divf %146, %145 : vector<8x1xf32>
    %c8_i32 = arith.constant 8 : i32
    %148 = vector.broadcast %147 : vector<8x1xf32> to vector<8x16xf32>
    %149 = arith.mulf %17, %148 : vector<8x16xf32>
    %cst_59 = arith.constant dense<0.000000e+00> : vector<16xf32>
    %150 = vector.multi_reduction <add>, %149, %cst_59 [0] : vector<8x16xf32> to vector<16xf32>
    %151 = vector.shape_cast %150 : vector<16xf32> to vector<1x16xf32>
    %cst_60 = arith.constant 1.000000e-16 : f32
    %152 = vector.broadcast %cst_60 : f32 to vector<1x16xf32>
    %153 = arith.addf %151, %152 : vector<1x16xf32>
    %cst_61 = arith.constant 6.250000e-02 : f32
    %154 = vector.broadcast %cst_61 : f32 to vector<1x16xf32>
    %155 = arith.divf %154, %153 : vector<1x16xf32>
    %156 = vector.broadcast %155 : vector<1x16xf32> to vector<8x16xf32>
    %157 = arith.mulf %17, %156 : vector<8x16xf32>
    %cst_62 = arith.constant dense<0.000000e+00> : vector<8xf32>
    %158 = vector.multi_reduction <add>, %157, %cst_62 [1] : vector<8x16xf32> to vector<8xf32>
    %159 = vector.shape_cast %158 : vector<8xf32> to vector<8x1xf32>
    %cst_63 = arith.constant 1.000000e-16 : f32
    %160 = vector.broadcast %cst_63 : f32 to vector<8x1xf32>
    %161 = arith.addf %159, %160 : vector<8x1xf32>
    %cst_64 = arith.constant 1.250000e-01 : f32
    %162 = vector.broadcast %cst_64 : f32 to vector<8x1xf32>
    %163 = arith.divf %162, %161 : vector<8x1xf32>
    %c9_i32 = arith.constant 9 : i32
    %164 = vector.broadcast %163 : vector<8x1xf32> to vector<8x16xf32>
    %165 = arith.mulf %17, %164 : vector<8x16xf32>
    %cst_65 = arith.constant dense<0.000000e+00> : vector<16xf32>
    %166 = vector.multi_reduction <add>, %165, %cst_65 [0] : vector<8x16xf32> to vector<16xf32>
    %167 = vector.shape_cast %166 : vector<16xf32> to vector<1x16xf32>
    %cst_66 = arith.constant 1.000000e-16 : f32
    %168 = vector.broadcast %cst_66 : f32 to vector<1x16xf32>
    %169 = arith.addf %167, %168 : vector<1x16xf32>
    %cst_67 = arith.constant 6.250000e-02 : f32
    %170 = vector.broadcast %cst_67 : f32 to vector<1x16xf32>
    %171 = arith.divf %170, %169 : vector<1x16xf32>
    %172 = vector.broadcast %171 : vector<1x16xf32> to vector<8x16xf32>
    %173 = arith.mulf %17, %172 : vector<8x16xf32>
    %cst_68 = arith.constant dense<0.000000e+00> : vector<8xf32>
    %174 = vector.multi_reduction <add>, %173, %cst_68 [1] : vector<8x16xf32> to vector<8xf32>
    %175 = vector.shape_cast %174 : vector<8xf32> to vector<8x1xf32>
    %cst_69 = arith.constant 1.000000e-16 : f32
    %176 = vector.broadcast %cst_69 : f32 to vector<8x1xf32>
    %177 = arith.addf %175, %176 : vector<8x1xf32>
    %cst_70 = arith.constant 1.250000e-01 : f32
    %178 = vector.broadcast %cst_70 : f32 to vector<8x1xf32>
    %179 = arith.divf %178, %177 : vector<8x1xf32>
    %c10_i32 = arith.constant 10 : i32
    %180 = vector.broadcast %179 : vector<8x1xf32> to vector<8x16xf32>
    %181 = arith.mulf %17, %180 : vector<8x16xf32>
    %cst_71 = arith.constant dense<0.000000e+00> : vector<16xf32>
    %182 = vector.multi_reduction <add>, %181, %cst_71 [0] : vector<8x16xf32> to vector<16xf32>
    %183 = vector.shape_cast %182 : vector<16xf32> to vector<1x16xf32>
    %cst_72 = arith.constant 1.000000e-16 : f32
    %184 = vector.broadcast %cst_72 : f32 to vector<1x16xf32>
    %185 = arith.addf %183, %184 : vector<1x16xf32>
    %cst_73 = arith.constant 6.250000e-02 : f32
    %186 = vector.broadcast %cst_73 : f32 to vector<1x16xf32>
    %187 = arith.divf %186, %185 : vector<1x16xf32>
    %188 = vector.broadcast %187 : vector<1x16xf32> to vector<8x16xf32>
    %189 = arith.mulf %17, %188 : vector<8x16xf32>
    %cst_74 = arith.constant dense<0.000000e+00> : vector<8xf32>
    %190 = vector.multi_reduction <add>, %189, %cst_74 [1] : vector<8x16xf32> to vector<8xf32>
    %191 = vector.shape_cast %190 : vector<8xf32> to vector<8x1xf32>
    %cst_75 = arith.constant 1.000000e-16 : f32
    %192 = vector.broadcast %cst_75 : f32 to vector<8x1xf32>
    %193 = arith.addf %191, %192 : vector<8x1xf32>
    %cst_76 = arith.constant 1.250000e-01 : f32
    %194 = vector.broadcast %cst_76 : f32 to vector<8x1xf32>
    %195 = arith.divf %194, %193 : vector<8x1xf32>
    %c11_i32 = arith.constant 11 : i32
    %196 = vector.broadcast %195 : vector<8x1xf32> to vector<8x16xf32>
    %197 = arith.mulf %17, %196 : vector<8x16xf32>
    %cst_77 = arith.constant dense<0.000000e+00> : vector<16xf32>
    %198 = vector.multi_reduction <add>, %197, %cst_77 [0] : vector<8x16xf32> to vector<16xf32>
    %199 = vector.shape_cast %198 : vector<16xf32> to vector<1x16xf32>
    %cst_78 = arith.constant 1.000000e-16 : f32
    %200 = vector.broadcast %cst_78 : f32 to vector<1x16xf32>
    %201 = arith.addf %199, %200 : vector<1x16xf32>
    %cst_79 = arith.constant 6.250000e-02 : f32
    %202 = vector.broadcast %cst_79 : f32 to vector<1x16xf32>
    %203 = arith.divf %202, %201 : vector<1x16xf32>
    %204 = vector.broadcast %203 : vector<1x16xf32> to vector<8x16xf32>
    %205 = arith.mulf %17, %204 : vector<8x16xf32>
    %cst_80 = arith.constant dense<0.000000e+00> : vector<8xf32>
    %206 = vector.multi_reduction <add>, %205, %cst_80 [1] : vector<8x16xf32> to vector<8xf32>
    %207 = vector.shape_cast %206 : vector<8xf32> to vector<8x1xf32>
    %cst_81 = arith.constant 1.000000e-16 : f32
    %208 = vector.broadcast %cst_81 : f32 to vector<8x1xf32>
    %209 = arith.addf %207, %208 : vector<8x1xf32>
    %cst_82 = arith.constant 1.250000e-01 : f32
    %210 = vector.broadcast %cst_82 : f32 to vector<8x1xf32>
    %211 = arith.divf %210, %209 : vector<8x1xf32>
    %c12_i32 = arith.constant 12 : i32
    %212 = vector.broadcast %211 : vector<8x1xf32> to vector<8x16xf32>
    %213 = arith.mulf %17, %212 : vector<8x16xf32>
    %cst_83 = arith.constant dense<0.000000e+00> : vector<16xf32>
    %214 = vector.multi_reduction <add>, %213, %cst_83 [0] : vector<8x16xf32> to vector<16xf32>
    %215 = vector.shape_cast %214 : vector<16xf32> to vector<1x16xf32>
    %cst_84 = arith.constant 1.000000e-16 : f32
    %216 = vector.broadcast %cst_84 : f32 to vector<1x16xf32>
    %217 = arith.addf %215, %216 : vector<1x16xf32>
    %cst_85 = arith.constant 6.250000e-02 : f32
    %218 = vector.broadcast %cst_85 : f32 to vector<1x16xf32>
    %219 = arith.divf %218, %217 : vector<1x16xf32>
    %220 = vector.broadcast %219 : vector<1x16xf32> to vector<8x16xf32>
    %221 = arith.mulf %17, %220 : vector<8x16xf32>
    %cst_86 = arith.constant dense<0.000000e+00> : vector<8xf32>
    %222 = vector.multi_reduction <add>, %221, %cst_86 [1] : vector<8x16xf32> to vector<8xf32>
    %223 = vector.shape_cast %222 : vector<8xf32> to vector<8x1xf32>
    %cst_87 = arith.constant 1.000000e-16 : f32
    %224 = vector.broadcast %cst_87 : f32 to vector<8x1xf32>
    %225 = arith.addf %223, %224 : vector<8x1xf32>
    %cst_88 = arith.constant 1.250000e-01 : f32
    %226 = vector.broadcast %cst_88 : f32 to vector<8x1xf32>
    %227 = arith.divf %226, %225 : vector<8x1xf32>
    %c13_i32 = arith.constant 13 : i32
    %228 = vector.broadcast %227 : vector<8x1xf32> to vector<8x16xf32>
    %229 = arith.mulf %17, %228 : vector<8x16xf32>
    %cst_89 = arith.constant dense<0.000000e+00> : vector<16xf32>
    %230 = vector.multi_reduction <add>, %229, %cst_89 [0] : vector<8x16xf32> to vector<16xf32>
    %231 = vector.shape_cast %230 : vector<16xf32> to vector<1x16xf32>
    %cst_90 = arith.constant 1.000000e-16 : f32
    %232 = vector.broadcast %cst_90 : f32 to vector<1x16xf32>
    %233 = arith.addf %231, %232 : vector<1x16xf32>
    %cst_91 = arith.constant 6.250000e-02 : f32
    %234 = vector.broadcast %cst_91 : f32 to vector<1x16xf32>
    %235 = arith.divf %234, %233 : vector<1x16xf32>
    %236 = vector.broadcast %235 : vector<1x16xf32> to vector<8x16xf32>
    %237 = arith.mulf %17, %236 : vector<8x16xf32>
    %cst_92 = arith.constant dense<0.000000e+00> : vector<8xf32>
    %238 = vector.multi_reduction <add>, %237, %cst_92 [1] : vector<8x16xf32> to vector<8xf32>
    %239 = vector.shape_cast %238 : vector<8xf32> to vector<8x1xf32>
    %cst_93 = arith.constant 1.000000e-16 : f32
    %240 = vector.broadcast %cst_93 : f32 to vector<8x1xf32>
    %241 = arith.addf %239, %240 : vector<8x1xf32>
    %cst_94 = arith.constant 1.250000e-01 : f32
    %242 = vector.broadcast %cst_94 : f32 to vector<8x1xf32>
    %243 = arith.divf %242, %241 : vector<8x1xf32>
    %c14_i32 = arith.constant 14 : i32
    %244 = vector.broadcast %243 : vector<8x1xf32> to vector<8x16xf32>
    %245 = arith.mulf %17, %244 : vector<8x16xf32>
    %cst_95 = arith.constant dense<0.000000e+00> : vector<16xf32>
    %246 = vector.multi_reduction <add>, %245, %cst_95 [0] : vector<8x16xf32> to vector<16xf32>
    %247 = vector.shape_cast %246 : vector<16xf32> to vector<1x16xf32>
    %cst_96 = arith.constant 1.000000e-16 : f32
    %248 = vector.broadcast %cst_96 : f32 to vector<1x16xf32>
    %249 = arith.addf %247, %248 : vector<1x16xf32>
    %cst_97 = arith.constant 6.250000e-02 : f32
    %250 = vector.broadcast %cst_97 : f32 to vector<1x16xf32>
    %251 = arith.divf %250, %249 : vector<1x16xf32>
    %252 = vector.broadcast %251 : vector<1x16xf32> to vector<8x16xf32>
    %253 = arith.mulf %17, %252 : vector<8x16xf32>
    %cst_98 = arith.constant dense<0.000000e+00> : vector<8xf32>
    %254 = vector.multi_reduction <add>, %253, %cst_98 [1] : vector<8x16xf32> to vector<8xf32>
    %255 = vector.shape_cast %254 : vector<8xf32> to vector<8x1xf32>
    %cst_99 = arith.constant 1.000000e-16 : f32
    %256 = vector.broadcast %cst_99 : f32 to vector<8x1xf32>
    %257 = arith.addf %255, %256 : vector<8x1xf32>
    %cst_100 = arith.constant 1.250000e-01 : f32
    %258 = vector.broadcast %cst_100 : f32 to vector<8x1xf32>
    %259 = arith.divf %258, %257 : vector<8x1xf32>
    %c15_i32 = arith.constant 15 : i32
    %260 = vector.broadcast %259 : vector<8x1xf32> to vector<8x16xf32>
    %261 = arith.mulf %17, %260 : vector<8x16xf32>
    %cst_101 = arith.constant dense<0.000000e+00> : vector<16xf32>
    %262 = vector.multi_reduction <add>, %261, %cst_101 [0] : vector<8x16xf32> to vector<16xf32>
    %263 = vector.shape_cast %262 : vector<16xf32> to vector<1x16xf32>
    %cst_102 = arith.constant 1.000000e-16 : f32
    %264 = vector.broadcast %cst_102 : f32 to vector<1x16xf32>
    %265 = arith.addf %263, %264 : vector<1x16xf32>
    %cst_103 = arith.constant 6.250000e-02 : f32
    %266 = vector.broadcast %cst_103 : f32 to vector<1x16xf32>
    %267 = arith.divf %266, %265 : vector<1x16xf32>
    %268 = vector.broadcast %267 : vector<1x16xf32> to vector<8x16xf32>
    %269 = arith.mulf %17, %268 : vector<8x16xf32>
    %cst_104 = arith.constant dense<0.000000e+00> : vector<8xf32>
    %270 = vector.multi_reduction <add>, %269, %cst_104 [1] : vector<8x16xf32> to vector<8xf32>
    %271 = vector.shape_cast %270 : vector<8xf32> to vector<8x1xf32>
    %cst_105 = arith.constant 1.000000e-16 : f32
    %272 = vector.broadcast %cst_105 : f32 to vector<8x1xf32>
    %273 = arith.addf %271, %272 : vector<8x1xf32>
    %cst_106 = arith.constant 1.250000e-01 : f32
    %274 = vector.broadcast %cst_106 : f32 to vector<8x1xf32>
    %275 = arith.divf %274, %273 : vector<8x1xf32>
    %c16_i32 = arith.constant 16 : i32
    %276 = vector.broadcast %275 : vector<8x1xf32> to vector<8x16xf32>
    %277 = arith.mulf %17, %276 : vector<8x16xf32>
    %cst_107 = arith.constant dense<0.000000e+00> : vector<16xf32>
    %278 = vector.multi_reduction <add>, %277, %cst_107 [0] : vector<8x16xf32> to vector<16xf32>
    %279 = vector.shape_cast %278 : vector<16xf32> to vector<1x16xf32>
    %cst_108 = arith.constant 1.000000e-16 : f32
    %280 = vector.broadcast %cst_108 : f32 to vector<1x16xf32>
    %281 = arith.addf %279, %280 : vector<1x16xf32>
    %cst_109 = arith.constant 6.250000e-02 : f32
    %282 = vector.broadcast %cst_109 : f32 to vector<1x16xf32>
    %283 = arith.divf %282, %281 : vector<1x16xf32>
    %284 = vector.broadcast %283 : vector<1x16xf32> to vector<8x16xf32>
    %285 = arith.mulf %17, %284 : vector<8x16xf32>
    %cst_110 = arith.constant dense<0.000000e+00> : vector<8xf32>
    %286 = vector.multi_reduction <add>, %285, %cst_110 [1] : vector<8x16xf32> to vector<8xf32>
    %287 = vector.shape_cast %286 : vector<8xf32> to vector<8x1xf32>
    %cst_111 = arith.constant 1.000000e-16 : f32
    %288 = vector.broadcast %cst_111 : f32 to vector<8x1xf32>
    %289 = arith.addf %287, %288 : vector<8x1xf32>
    %cst_112 = arith.constant 1.250000e-01 : f32
    %290 = vector.broadcast %cst_112 : f32 to vector<8x1xf32>
    %291 = arith.divf %290, %289 : vector<8x1xf32>
    %c17_i32 = arith.constant 17 : i32
    %292 = vector.broadcast %291 : vector<8x1xf32> to vector<8x16xf32>
    %293 = arith.mulf %17, %292 : vector<8x16xf32>
    %cst_113 = arith.constant dense<0.000000e+00> : vector<16xf32>
    %294 = vector.multi_reduction <add>, %293, %cst_113 [0] : vector<8x16xf32> to vector<16xf32>
    %295 = vector.shape_cast %294 : vector<16xf32> to vector<1x16xf32>
    %cst_114 = arith.constant 1.000000e-16 : f32
    %296 = vector.broadcast %cst_114 : f32 to vector<1x16xf32>
    %297 = arith.addf %295, %296 : vector<1x16xf32>
    %cst_115 = arith.constant 6.250000e-02 : f32
    %298 = vector.broadcast %cst_115 : f32 to vector<1x16xf32>
    %299 = arith.divf %298, %297 : vector<1x16xf32>
    %300 = vector.broadcast %299 : vector<1x16xf32> to vector<8x16xf32>
    %301 = arith.mulf %17, %300 : vector<8x16xf32>
    %cst_116 = arith.constant dense<0.000000e+00> : vector<8xf32>
    %302 = vector.multi_reduction <add>, %301, %cst_116 [1] : vector<8x16xf32> to vector<8xf32>
    %303 = vector.shape_cast %302 : vector<8xf32> to vector<8x1xf32>
    %cst_117 = arith.constant 1.000000e-16 : f32
    %304 = vector.broadcast %cst_117 : f32 to vector<8x1xf32>
    %305 = arith.addf %303, %304 : vector<8x1xf32>
    %cst_118 = arith.constant 1.250000e-01 : f32
    %306 = vector.broadcast %cst_118 : f32 to vector<8x1xf32>
    %307 = arith.divf %306, %305 : vector<8x1xf32>
    %c18_i32 = arith.constant 18 : i32
    %308 = vector.broadcast %307 : vector<8x1xf32> to vector<8x16xf32>
    %309 = arith.mulf %17, %308 : vector<8x16xf32>
    %cst_119 = arith.constant dense<0.000000e+00> : vector<16xf32>
    %310 = vector.multi_reduction <add>, %309, %cst_119 [0] : vector<8x16xf32> to vector<16xf32>
    %311 = vector.shape_cast %310 : vector<16xf32> to vector<1x16xf32>
    %cst_120 = arith.constant 1.000000e-16 : f32
    %312 = vector.broadcast %cst_120 : f32 to vector<1x16xf32>
    %313 = arith.addf %311, %312 : vector<1x16xf32>
    %cst_121 = arith.constant 6.250000e-02 : f32
    %314 = vector.broadcast %cst_121 : f32 to vector<1x16xf32>
    %315 = arith.divf %314, %313 : vector<1x16xf32>
    %316 = vector.broadcast %315 : vector<1x16xf32> to vector<8x16xf32>
    %317 = arith.mulf %17, %316 : vector<8x16xf32>
    %cst_122 = arith.constant dense<0.000000e+00> : vector<8xf32>
    %318 = vector.multi_reduction <add>, %317, %cst_122 [1] : vector<8x16xf32> to vector<8xf32>
    %319 = vector.shape_cast %318 : vector<8xf32> to vector<8x1xf32>
    %cst_123 = arith.constant 1.000000e-16 : f32
    %320 = vector.broadcast %cst_123 : f32 to vector<8x1xf32>
    %321 = arith.addf %319, %320 : vector<8x1xf32>
    %cst_124 = arith.constant 1.250000e-01 : f32
    %322 = vector.broadcast %cst_124 : f32 to vector<8x1xf32>
    %323 = arith.divf %322, %321 : vector<8x1xf32>
    %c19_i32 = arith.constant 19 : i32
    %324 = vector.broadcast %323 : vector<8x1xf32> to vector<8x16xf32>
    %325 = arith.mulf %17, %324 : vector<8x16xf32>
    %cst_125 = arith.constant dense<0.000000e+00> : vector<16xf32>
    %326 = vector.multi_reduction <add>, %325, %cst_125 [0] : vector<8x16xf32> to vector<16xf32>
    %327 = vector.shape_cast %326 : vector<16xf32> to vector<1x16xf32>
    %cst_126 = arith.constant 1.000000e-16 : f32
    %328 = vector.broadcast %cst_126 : f32 to vector<1x16xf32>
    %329 = arith.addf %327, %328 : vector<1x16xf32>
    %cst_127 = arith.constant 6.250000e-02 : f32
    %330 = vector.broadcast %cst_127 : f32 to vector<1x16xf32>
    %331 = arith.divf %330, %329 : vector<1x16xf32>
    %332 = vector.broadcast %331 : vector<1x16xf32> to vector<8x16xf32>
    %333 = arith.mulf %17, %332 : vector<8x16xf32>
    %cst_128 = arith.constant dense<0.000000e+00> : vector<8xf32>
    %334 = vector.multi_reduction <add>, %333, %cst_128 [1] : vector<8x16xf32> to vector<8xf32>
    %335 = vector.shape_cast %334 : vector<8xf32> to vector<8x1xf32>
    %cst_129 = arith.constant 1.000000e-16 : f32
    %336 = vector.broadcast %cst_129 : f32 to vector<8x1xf32>
    %337 = arith.addf %335, %336 : vector<8x1xf32>
    %cst_130 = arith.constant 1.250000e-01 : f32
    %338 = vector.broadcast %cst_130 : f32 to vector<8x1xf32>
    %339 = arith.divf %338, %337 : vector<8x1xf32>
    %c20_i32 = arith.constant 20 : i32
    %340 = vector.broadcast %339 : vector<8x1xf32> to vector<8x16xf32>
    %341 = arith.mulf %17, %340 : vector<8x16xf32>
    %cst_131 = arith.constant dense<0.000000e+00> : vector<16xf32>
    %342 = vector.multi_reduction <add>, %341, %cst_131 [0] : vector<8x16xf32> to vector<16xf32>
    %343 = vector.shape_cast %342 : vector<16xf32> to vector<1x16xf32>
    %cst_132 = arith.constant 1.000000e-16 : f32
    %344 = vector.broadcast %cst_132 : f32 to vector<1x16xf32>
    %345 = arith.addf %343, %344 : vector<1x16xf32>
    %cst_133 = arith.constant 6.250000e-02 : f32
    %346 = vector.broadcast %cst_133 : f32 to vector<1x16xf32>
    %347 = arith.divf %346, %345 : vector<1x16xf32>
    %348 = vector.broadcast %347 : vector<1x16xf32> to vector<8x16xf32>
    %349 = arith.mulf %17, %348 : vector<8x16xf32>
    %cst_134 = arith.constant dense<0.000000e+00> : vector<8xf32>
    %350 = vector.multi_reduction <add>, %349, %cst_134 [1] : vector<8x16xf32> to vector<8xf32>
    %351 = vector.shape_cast %350 : vector<8xf32> to vector<8x1xf32>
    %cst_135 = arith.constant 1.000000e-16 : f32
    %352 = vector.broadcast %cst_135 : f32 to vector<8x1xf32>
    %353 = arith.addf %351, %352 : vector<8x1xf32>
    %cst_136 = arith.constant 1.250000e-01 : f32
    %354 = vector.broadcast %cst_136 : f32 to vector<8x1xf32>
    %355 = arith.divf %354, %353 : vector<8x1xf32>
    %c21_i32 = arith.constant 21 : i32
    %356 = vector.broadcast %355 : vector<8x1xf32> to vector<8x16xf32>
    %357 = arith.mulf %17, %356 : vector<8x16xf32>
    %cst_137 = arith.constant dense<0.000000e+00> : vector<16xf32>
    %358 = vector.multi_reduction <add>, %357, %cst_137 [0] : vector<8x16xf32> to vector<16xf32>
    %359 = vector.shape_cast %358 : vector<16xf32> to vector<1x16xf32>
    %cst_138 = arith.constant 1.000000e-16 : f32
    %360 = vector.broadcast %cst_138 : f32 to vector<1x16xf32>
    %361 = arith.addf %359, %360 : vector<1x16xf32>
    %cst_139 = arith.constant 6.250000e-02 : f32
    %362 = vector.broadcast %cst_139 : f32 to vector<1x16xf32>
    %363 = arith.divf %362, %361 : vector<1x16xf32>
    %364 = vector.broadcast %363 : vector<1x16xf32> to vector<8x16xf32>
    %365 = arith.mulf %17, %364 : vector<8x16xf32>
    %cst_140 = arith.constant dense<0.000000e+00> : vector<8xf32>
    %366 = vector.multi_reduction <add>, %365, %cst_140 [1] : vector<8x16xf32> to vector<8xf32>
    %367 = vector.shape_cast %366 : vector<8xf32> to vector<8x1xf32>
    %cst_141 = arith.constant 1.000000e-16 : f32
    %368 = vector.broadcast %cst_141 : f32 to vector<8x1xf32>
    %369 = arith.addf %367, %368 : vector<8x1xf32>
    %cst_142 = arith.constant 1.250000e-01 : f32
    %370 = vector.broadcast %cst_142 : f32 to vector<8x1xf32>
    %371 = arith.divf %370, %369 : vector<8x1xf32>
    %c22_i32 = arith.constant 22 : i32
    %372 = vector.broadcast %371 : vector<8x1xf32> to vector<8x16xf32>
    %373 = arith.mulf %17, %372 : vector<8x16xf32>
    %cst_143 = arith.constant dense<0.000000e+00> : vector<16xf32>
    %374 = vector.multi_reduction <add>, %373, %cst_143 [0] : vector<8x16xf32> to vector<16xf32>
    %375 = vector.shape_cast %374 : vector<16xf32> to vector<1x16xf32>
    %cst_144 = arith.constant 1.000000e-16 : f32
    %376 = vector.broadcast %cst_144 : f32 to vector<1x16xf32>
    %377 = arith.addf %375, %376 : vector<1x16xf32>
    %cst_145 = arith.constant 6.250000e-02 : f32
    %378 = vector.broadcast %cst_145 : f32 to vector<1x16xf32>
    %379 = arith.divf %378, %377 : vector<1x16xf32>
    %380 = vector.broadcast %379 : vector<1x16xf32> to vector<8x16xf32>
    %381 = arith.mulf %17, %380 : vector<8x16xf32>
    %cst_146 = arith.constant dense<0.000000e+00> : vector<8xf32>
    %382 = vector.multi_reduction <add>, %381, %cst_146 [1] : vector<8x16xf32> to vector<8xf32>
    %383 = vector.shape_cast %382 : vector<8xf32> to vector<8x1xf32>
    %cst_147 = arith.constant 1.000000e-16 : f32
    %384 = vector.broadcast %cst_147 : f32 to vector<8x1xf32>
    %385 = arith.addf %383, %384 : vector<8x1xf32>
    %cst_148 = arith.constant 1.250000e-01 : f32
    %386 = vector.broadcast %cst_148 : f32 to vector<8x1xf32>
    %387 = arith.divf %386, %385 : vector<8x1xf32>
    %c23_i32 = arith.constant 23 : i32
    %388 = vector.broadcast %387 : vector<8x1xf32> to vector<8x16xf32>
    %389 = arith.mulf %17, %388 : vector<8x16xf32>
    %cst_149 = arith.constant dense<0.000000e+00> : vector<16xf32>
    %390 = vector.multi_reduction <add>, %389, %cst_149 [0] : vector<8x16xf32> to vector<16xf32>
    %391 = vector.shape_cast %390 : vector<16xf32> to vector<1x16xf32>
    %cst_150 = arith.constant 1.000000e-16 : f32
    %392 = vector.broadcast %cst_150 : f32 to vector<1x16xf32>
    %393 = arith.addf %391, %392 : vector<1x16xf32>
    %cst_151 = arith.constant 6.250000e-02 : f32
    %394 = vector.broadcast %cst_151 : f32 to vector<1x16xf32>
    %395 = arith.divf %394, %393 : vector<1x16xf32>
    %396 = vector.broadcast %395 : vector<1x16xf32> to vector<8x16xf32>
    %397 = arith.mulf %17, %396 : vector<8x16xf32>
    %cst_152 = arith.constant dense<0.000000e+00> : vector<8xf32>
    %398 = vector.multi_reduction <add>, %397, %cst_152 [1] : vector<8x16xf32> to vector<8xf32>
    %399 = vector.shape_cast %398 : vector<8xf32> to vector<8x1xf32>
    %cst_153 = arith.constant 1.000000e-16 : f32
    %400 = vector.broadcast %cst_153 : f32 to vector<8x1xf32>
    %401 = arith.addf %399, %400 : vector<8x1xf32>
    %cst_154 = arith.constant 1.250000e-01 : f32
    %402 = vector.broadcast %cst_154 : f32 to vector<8x1xf32>
    %403 = arith.divf %402, %401 : vector<8x1xf32>
    %c24_i32 = arith.constant 24 : i32
    %404 = vector.broadcast %403 : vector<8x1xf32> to vector<8x16xf32>
    %405 = arith.mulf %17, %404 : vector<8x16xf32>
    %cst_155 = arith.constant dense<0.000000e+00> : vector<16xf32>
    %406 = vector.multi_reduction <add>, %405, %cst_155 [0] : vector<8x16xf32> to vector<16xf32>
    %407 = vector.shape_cast %406 : vector<16xf32> to vector<1x16xf32>
    %cst_156 = arith.constant 1.000000e-16 : f32
    %408 = vector.broadcast %cst_156 : f32 to vector<1x16xf32>
    %409 = arith.addf %407, %408 : vector<1x16xf32>
    %cst_157 = arith.constant 6.250000e-02 : f32
    %410 = vector.broadcast %cst_157 : f32 to vector<1x16xf32>
    %411 = arith.divf %410, %409 : vector<1x16xf32>
    %412 = vector.broadcast %411 : vector<1x16xf32> to vector<8x16xf32>
    %413 = arith.mulf %17, %412 : vector<8x16xf32>
    %cst_158 = arith.constant dense<0.000000e+00> : vector<8xf32>
    %414 = vector.multi_reduction <add>, %413, %cst_158 [1] : vector<8x16xf32> to vector<8xf32>
    %415 = vector.shape_cast %414 : vector<8xf32> to vector<8x1xf32>
    %cst_159 = arith.constant 1.000000e-16 : f32
    %416 = vector.broadcast %cst_159 : f32 to vector<8x1xf32>
    %417 = arith.addf %415, %416 : vector<8x1xf32>
    %cst_160 = arith.constant 1.250000e-01 : f32
    %418 = vector.broadcast %cst_160 : f32 to vector<8x1xf32>
    %419 = arith.divf %418, %417 : vector<8x1xf32>
    %c25_i32 = arith.constant 25 : i32
    %420 = vector.broadcast %419 : vector<8x1xf32> to vector<8x16xf32>
    %421 = arith.mulf %17, %420 : vector<8x16xf32>
    %cst_161 = arith.constant dense<0.000000e+00> : vector<16xf32>
    %422 = vector.multi_reduction <add>, %421, %cst_161 [0] : vector<8x16xf32> to vector<16xf32>
    %423 = vector.shape_cast %422 : vector<16xf32> to vector<1x16xf32>
    %cst_162 = arith.constant 1.000000e-16 : f32
    %424 = vector.broadcast %cst_162 : f32 to vector<1x16xf32>
    %425 = arith.addf %423, %424 : vector<1x16xf32>
    %cst_163 = arith.constant 6.250000e-02 : f32
    %426 = vector.broadcast %cst_163 : f32 to vector<1x16xf32>
    %427 = arith.divf %426, %425 : vector<1x16xf32>
    %428 = vector.broadcast %427 : vector<1x16xf32> to vector<8x16xf32>
    %429 = arith.mulf %17, %428 : vector<8x16xf32>
    %cst_164 = arith.constant dense<0.000000e+00> : vector<8xf32>
    %430 = vector.multi_reduction <add>, %429, %cst_164 [1] : vector<8x16xf32> to vector<8xf32>
    %431 = vector.shape_cast %430 : vector<8xf32> to vector<8x1xf32>
    %cst_165 = arith.constant 1.000000e-16 : f32
    %432 = vector.broadcast %cst_165 : f32 to vector<8x1xf32>
    %433 = arith.addf %431, %432 : vector<8x1xf32>
    %cst_166 = arith.constant 1.250000e-01 : f32
    %434 = vector.broadcast %cst_166 : f32 to vector<8x1xf32>
    %435 = arith.divf %434, %433 : vector<8x1xf32>
    %c26_i32 = arith.constant 26 : i32
    %436 = vector.broadcast %435 : vector<8x1xf32> to vector<8x16xf32>
    %437 = arith.mulf %17, %436 : vector<8x16xf32>
    %cst_167 = arith.constant dense<0.000000e+00> : vector<16xf32>
    %438 = vector.multi_reduction <add>, %437, %cst_167 [0] : vector<8x16xf32> to vector<16xf32>
    %439 = vector.shape_cast %438 : vector<16xf32> to vector<1x16xf32>
    %cst_168 = arith.constant 1.000000e-16 : f32
    %440 = vector.broadcast %cst_168 : f32 to vector<1x16xf32>
    %441 = arith.addf %439, %440 : vector<1x16xf32>
    %cst_169 = arith.constant 6.250000e-02 : f32
    %442 = vector.broadcast %cst_169 : f32 to vector<1x16xf32>
    %443 = arith.divf %442, %441 : vector<1x16xf32>
    %444 = vector.broadcast %443 : vector<1x16xf32> to vector<8x16xf32>
    %445 = arith.mulf %17, %444 : vector<8x16xf32>
    %cst_170 = arith.constant dense<0.000000e+00> : vector<8xf32>
    %446 = vector.multi_reduction <add>, %445, %cst_170 [1] : vector<8x16xf32> to vector<8xf32>
    %447 = vector.shape_cast %446 : vector<8xf32> to vector<8x1xf32>
    %cst_171 = arith.constant 1.000000e-16 : f32
    %448 = vector.broadcast %cst_171 : f32 to vector<8x1xf32>
    %449 = arith.addf %447, %448 : vector<8x1xf32>
    %cst_172 = arith.constant 1.250000e-01 : f32
    %450 = vector.broadcast %cst_172 : f32 to vector<8x1xf32>
    %451 = arith.divf %450, %449 : vector<8x1xf32>
    %c27_i32 = arith.constant 27 : i32
    %452 = vector.broadcast %451 : vector<8x1xf32> to vector<8x16xf32>
    %453 = arith.mulf %17, %452 : vector<8x16xf32>
    %cst_173 = arith.constant dense<0.000000e+00> : vector<16xf32>
    %454 = vector.multi_reduction <add>, %453, %cst_173 [0] : vector<8x16xf32> to vector<16xf32>
    %455 = vector.shape_cast %454 : vector<16xf32> to vector<1x16xf32>
    %cst_174 = arith.constant 1.000000e-16 : f32
    %456 = vector.broadcast %cst_174 : f32 to vector<1x16xf32>
    %457 = arith.addf %455, %456 : vector<1x16xf32>
    %cst_175 = arith.constant 6.250000e-02 : f32
    %458 = vector.broadcast %cst_175 : f32 to vector<1x16xf32>
    %459 = arith.divf %458, %457 : vector<1x16xf32>
    %460 = vector.broadcast %459 : vector<1x16xf32> to vector<8x16xf32>
    %461 = arith.mulf %17, %460 : vector<8x16xf32>
    %cst_176 = arith.constant dense<0.000000e+00> : vector<8xf32>
    %462 = vector.multi_reduction <add>, %461, %cst_176 [1] : vector<8x16xf32> to vector<8xf32>
    %463 = vector.shape_cast %462 : vector<8xf32> to vector<8x1xf32>
    %cst_177 = arith.constant 1.000000e-16 : f32
    %464 = vector.broadcast %cst_177 : f32 to vector<8x1xf32>
    %465 = arith.addf %463, %464 : vector<8x1xf32>
    %cst_178 = arith.constant 1.250000e-01 : f32
    %466 = vector.broadcast %cst_178 : f32 to vector<8x1xf32>
    %467 = arith.divf %466, %465 : vector<8x1xf32>
    %c28_i32 = arith.constant 28 : i32
    %468 = vector.broadcast %467 : vector<8x1xf32> to vector<8x16xf32>
    %469 = arith.mulf %17, %468 : vector<8x16xf32>
    %cst_179 = arith.constant dense<0.000000e+00> : vector<16xf32>
    %470 = vector.multi_reduction <add>, %469, %cst_179 [0] : vector<8x16xf32> to vector<16xf32>
    %471 = vector.shape_cast %470 : vector<16xf32> to vector<1x16xf32>
    %cst_180 = arith.constant 1.000000e-16 : f32
    %472 = vector.broadcast %cst_180 : f32 to vector<1x16xf32>
    %473 = arith.addf %471, %472 : vector<1x16xf32>
    %cst_181 = arith.constant 6.250000e-02 : f32
    %474 = vector.broadcast %cst_181 : f32 to vector<1x16xf32>
    %475 = arith.divf %474, %473 : vector<1x16xf32>
    %476 = vector.broadcast %475 : vector<1x16xf32> to vector<8x16xf32>
    %477 = arith.mulf %17, %476 : vector<8x16xf32>
    %cst_182 = arith.constant dense<0.000000e+00> : vector<8xf32>
    %478 = vector.multi_reduction <add>, %477, %cst_182 [1] : vector<8x16xf32> to vector<8xf32>
    %479 = vector.shape_cast %478 : vector<8xf32> to vector<8x1xf32>
    %cst_183 = arith.constant 1.000000e-16 : f32
    %480 = vector.broadcast %cst_183 : f32 to vector<8x1xf32>
    %481 = arith.addf %479, %480 : vector<8x1xf32>
    %cst_184 = arith.constant 1.250000e-01 : f32
    %482 = vector.broadcast %cst_184 : f32 to vector<8x1xf32>
    %483 = arith.divf %482, %481 : vector<8x1xf32>
    %c29_i32 = arith.constant 29 : i32
    %484 = vector.broadcast %483 : vector<8x1xf32> to vector<8x16xf32>
    %485 = arith.mulf %17, %484 : vector<8x16xf32>
    %cst_185 = arith.constant dense<0.000000e+00> : vector<16xf32>
    %486 = vector.multi_reduction <add>, %485, %cst_185 [0] : vector<8x16xf32> to vector<16xf32>
    %487 = vector.shape_cast %486 : vector<16xf32> to vector<1x16xf32>
    %cst_186 = arith.constant 1.000000e-16 : f32
    %488 = vector.broadcast %cst_186 : f32 to vector<1x16xf32>
    %489 = arith.addf %487, %488 : vector<1x16xf32>
    %cst_187 = arith.constant 6.250000e-02 : f32
    %490 = vector.broadcast %cst_187 : f32 to vector<1x16xf32>
    %491 = arith.divf %490, %489 : vector<1x16xf32>
    %492 = vector.broadcast %491 : vector<1x16xf32> to vector<8x16xf32>
    %493 = arith.mulf %17, %492 : vector<8x16xf32>
    %cst_188 = arith.constant dense<0.000000e+00> : vector<8xf32>
    %494 = vector.multi_reduction <add>, %493, %cst_188 [1] : vector<8x16xf32> to vector<8xf32>
    %495 = vector.shape_cast %494 : vector<8xf32> to vector<8x1xf32>
    %cst_189 = arith.constant 1.000000e-16 : f32
    %496 = vector.broadcast %cst_189 : f32 to vector<8x1xf32>
    %497 = arith.addf %495, %496 : vector<8x1xf32>
    %cst_190 = arith.constant 1.250000e-01 : f32
    %498 = vector.broadcast %cst_190 : f32 to vector<8x1xf32>
    %499 = arith.divf %498, %497 : vector<8x1xf32>
    %c30_i32 = arith.constant 30 : i32
    %500 = vector.broadcast %499 : vector<8x1xf32> to vector<8x16xf32>
    %501 = arith.mulf %17, %500 : vector<8x16xf32>
    %cst_191 = arith.constant dense<0.000000e+00> : vector<16xf32>
    %502 = vector.multi_reduction <add>, %501, %cst_191 [0] : vector<8x16xf32> to vector<16xf32>
    %503 = vector.shape_cast %502 : vector<16xf32> to vector<1x16xf32>
    %cst_192 = arith.constant 1.000000e-16 : f32
    %504 = vector.broadcast %cst_192 : f32 to vector<1x16xf32>
    %505 = arith.addf %503, %504 : vector<1x16xf32>
    %cst_193 = arith.constant 6.250000e-02 : f32
    %506 = vector.broadcast %cst_193 : f32 to vector<1x16xf32>
    %507 = arith.divf %506, %505 : vector<1x16xf32>
    %508 = vector.broadcast %507 : vector<1x16xf32> to vector<8x16xf32>
    %509 = arith.mulf %17, %508 : vector<8x16xf32>
    %cst_194 = arith.constant dense<0.000000e+00> : vector<8xf32>
    %510 = vector.multi_reduction <add>, %509, %cst_194 [1] : vector<8x16xf32> to vector<8xf32>
    %511 = vector.shape_cast %510 : vector<8xf32> to vector<8x1xf32>
    %cst_195 = arith.constant 1.000000e-16 : f32
    %512 = vector.broadcast %cst_195 : f32 to vector<8x1xf32>
    %513 = arith.addf %511, %512 : vector<8x1xf32>
    %cst_196 = arith.constant 1.250000e-01 : f32
    %514 = vector.broadcast %cst_196 : f32 to vector<8x1xf32>
    %515 = arith.divf %514, %513 : vector<8x1xf32>
    %c31_i32 = arith.constant 31 : i32
    %516 = vector.broadcast %515 : vector<8x1xf32> to vector<8x16xf32>
    %517 = arith.mulf %17, %516 : vector<8x16xf32>
    %cst_197 = arith.constant dense<0.000000e+00> : vector<16xf32>
    %518 = vector.multi_reduction <add>, %517, %cst_197 [0] : vector<8x16xf32> to vector<16xf32>
    %519 = vector.shape_cast %518 : vector<16xf32> to vector<1x16xf32>
    %cst_198 = arith.constant 1.000000e-16 : f32
    %520 = vector.broadcast %cst_198 : f32 to vector<1x16xf32>
    %521 = arith.addf %519, %520 : vector<1x16xf32>
    %cst_199 = arith.constant 6.250000e-02 : f32
    %522 = vector.broadcast %cst_199 : f32 to vector<1x16xf32>
    %523 = arith.divf %522, %521 : vector<1x16xf32>
    %524 = vector.broadcast %523 : vector<1x16xf32> to vector<8x16xf32>
    %525 = arith.mulf %17, %524 : vector<8x16xf32>
    %cst_200 = arith.constant dense<0.000000e+00> : vector<8xf32>
    %526 = vector.multi_reduction <add>, %525, %cst_200 [1] : vector<8x16xf32> to vector<8xf32>
    %527 = vector.shape_cast %526 : vector<8xf32> to vector<8x1xf32>
    %cst_201 = arith.constant 1.000000e-16 : f32
    %528 = vector.broadcast %cst_201 : f32 to vector<8x1xf32>
    %529 = arith.addf %527, %528 : vector<8x1xf32>
    %cst_202 = arith.constant 1.250000e-01 : f32
    %530 = vector.broadcast %cst_202 : f32 to vector<8x1xf32>
    %531 = arith.divf %530, %529 : vector<8x1xf32>
    %c32_i32 = arith.constant 32 : i32
    %532 = vector.broadcast %531 : vector<8x1xf32> to vector<8x16xf32>
    %533 = arith.mulf %17, %532 : vector<8x16xf32>
    %cst_203 = arith.constant dense<0.000000e+00> : vector<16xf32>
    %534 = vector.multi_reduction <add>, %533, %cst_203 [0] : vector<8x16xf32> to vector<16xf32>
    %535 = vector.shape_cast %534 : vector<16xf32> to vector<1x16xf32>
    %cst_204 = arith.constant 1.000000e-16 : f32
    %536 = vector.broadcast %cst_204 : f32 to vector<1x16xf32>
    %537 = arith.addf %535, %536 : vector<1x16xf32>
    %cst_205 = arith.constant 6.250000e-02 : f32
    %538 = vector.broadcast %cst_205 : f32 to vector<1x16xf32>
    %539 = arith.divf %538, %537 : vector<1x16xf32>
    %540 = vector.broadcast %539 : vector<1x16xf32> to vector<8x16xf32>
    %541 = arith.mulf %17, %540 : vector<8x16xf32>
    %cst_206 = arith.constant dense<0.000000e+00> : vector<8xf32>
    %542 = vector.multi_reduction <add>, %541, %cst_206 [1] : vector<8x16xf32> to vector<8xf32>
    %543 = vector.shape_cast %542 : vector<8xf32> to vector<8x1xf32>
    %cst_207 = arith.constant 1.000000e-16 : f32
    %544 = vector.broadcast %cst_207 : f32 to vector<8x1xf32>
    %545 = arith.addf %543, %544 : vector<8x1xf32>
    %cst_208 = arith.constant 1.250000e-01 : f32
    %546 = vector.broadcast %cst_208 : f32 to vector<8x1xf32>
    %547 = arith.divf %546, %545 : vector<8x1xf32>
    %c33_i32 = arith.constant 33 : i32
    %548 = vector.broadcast %547 : vector<8x1xf32> to vector<8x16xf32>
    %549 = arith.mulf %17, %548 : vector<8x16xf32>
    %cst_209 = arith.constant dense<0.000000e+00> : vector<16xf32>
    %550 = vector.multi_reduction <add>, %549, %cst_209 [0] : vector<8x16xf32> to vector<16xf32>
    %551 = vector.shape_cast %550 : vector<16xf32> to vector<1x16xf32>
    %cst_210 = arith.constant 1.000000e-16 : f32
    %552 = vector.broadcast %cst_210 : f32 to vector<1x16xf32>
    %553 = arith.addf %551, %552 : vector<1x16xf32>
    %cst_211 = arith.constant 6.250000e-02 : f32
    %554 = vector.broadcast %cst_211 : f32 to vector<1x16xf32>
    %555 = arith.divf %554, %553 : vector<1x16xf32>
    %556 = vector.broadcast %555 : vector<1x16xf32> to vector<8x16xf32>
    %557 = arith.mulf %17, %556 : vector<8x16xf32>
    %cst_212 = arith.constant dense<0.000000e+00> : vector<8xf32>
    %558 = vector.multi_reduction <add>, %557, %cst_212 [1] : vector<8x16xf32> to vector<8xf32>
    %559 = vector.shape_cast %558 : vector<8xf32> to vector<8x1xf32>
    %cst_213 = arith.constant 1.000000e-16 : f32
    %560 = vector.broadcast %cst_213 : f32 to vector<8x1xf32>
    %561 = arith.addf %559, %560 : vector<8x1xf32>
    %cst_214 = arith.constant 1.250000e-01 : f32
    %562 = vector.broadcast %cst_214 : f32 to vector<8x1xf32>
    %563 = arith.divf %562, %561 : vector<8x1xf32>
    %c34_i32 = arith.constant 34 : i32
    %564 = vector.broadcast %563 : vector<8x1xf32> to vector<8x16xf32>
    %565 = arith.mulf %17, %564 : vector<8x16xf32>
    %cst_215 = arith.constant dense<0.000000e+00> : vector<16xf32>
    %566 = vector.multi_reduction <add>, %565, %cst_215 [0] : vector<8x16xf32> to vector<16xf32>
    %567 = vector.shape_cast %566 : vector<16xf32> to vector<1x16xf32>
    %cst_216 = arith.constant 1.000000e-16 : f32
    %568 = vector.broadcast %cst_216 : f32 to vector<1x16xf32>
    %569 = arith.addf %567, %568 : vector<1x16xf32>
    %cst_217 = arith.constant 6.250000e-02 : f32
    %570 = vector.broadcast %cst_217 : f32 to vector<1x16xf32>
    %571 = arith.divf %570, %569 : vector<1x16xf32>
    %572 = vector.broadcast %571 : vector<1x16xf32> to vector<8x16xf32>
    %573 = arith.mulf %17, %572 : vector<8x16xf32>
    %cst_218 = arith.constant dense<0.000000e+00> : vector<8xf32>
    %574 = vector.multi_reduction <add>, %573, %cst_218 [1] : vector<8x16xf32> to vector<8xf32>
    %575 = vector.shape_cast %574 : vector<8xf32> to vector<8x1xf32>
    %cst_219 = arith.constant 1.000000e-16 : f32
    %576 = vector.broadcast %cst_219 : f32 to vector<8x1xf32>
    %577 = arith.addf %575, %576 : vector<8x1xf32>
    %cst_220 = arith.constant 1.250000e-01 : f32
    %578 = vector.broadcast %cst_220 : f32 to vector<8x1xf32>
    %579 = arith.divf %578, %577 : vector<8x1xf32>
    %c35_i32 = arith.constant 35 : i32
    %580 = vector.broadcast %579 : vector<8x1xf32> to vector<8x16xf32>
    %581 = arith.mulf %17, %580 : vector<8x16xf32>
    %cst_221 = arith.constant dense<0.000000e+00> : vector<16xf32>
    %582 = vector.multi_reduction <add>, %581, %cst_221 [0] : vector<8x16xf32> to vector<16xf32>
    %583 = vector.shape_cast %582 : vector<16xf32> to vector<1x16xf32>
    %cst_222 = arith.constant 1.000000e-16 : f32
    %584 = vector.broadcast %cst_222 : f32 to vector<1x16xf32>
    %585 = arith.addf %583, %584 : vector<1x16xf32>
    %cst_223 = arith.constant 6.250000e-02 : f32
    %586 = vector.broadcast %cst_223 : f32 to vector<1x16xf32>
    %587 = arith.divf %586, %585 : vector<1x16xf32>
    %588 = vector.broadcast %587 : vector<1x16xf32> to vector<8x16xf32>
    %589 = arith.mulf %17, %588 : vector<8x16xf32>
    %cst_224 = arith.constant dense<0.000000e+00> : vector<8xf32>
    %590 = vector.multi_reduction <add>, %589, %cst_224 [1] : vector<8x16xf32> to vector<8xf32>
    %591 = vector.shape_cast %590 : vector<8xf32> to vector<8x1xf32>
    %cst_225 = arith.constant 1.000000e-16 : f32
    %592 = vector.broadcast %cst_225 : f32 to vector<8x1xf32>
    %593 = arith.addf %591, %592 : vector<8x1xf32>
    %cst_226 = arith.constant 1.250000e-01 : f32
    %594 = vector.broadcast %cst_226 : f32 to vector<8x1xf32>
    %595 = arith.divf %594, %593 : vector<8x1xf32>
    %c36_i32 = arith.constant 36 : i32
    %596 = vector.broadcast %595 : vector<8x1xf32> to vector<8x16xf32>
    %597 = arith.mulf %17, %596 : vector<8x16xf32>
    %cst_227 = arith.constant dense<0.000000e+00> : vector<16xf32>
    %598 = vector.multi_reduction <add>, %597, %cst_227 [0] : vector<8x16xf32> to vector<16xf32>
    %599 = vector.shape_cast %598 : vector<16xf32> to vector<1x16xf32>
    %cst_228 = arith.constant 1.000000e-16 : f32
    %600 = vector.broadcast %cst_228 : f32 to vector<1x16xf32>
    %601 = arith.addf %599, %600 : vector<1x16xf32>
    %cst_229 = arith.constant 6.250000e-02 : f32
    %602 = vector.broadcast %cst_229 : f32 to vector<1x16xf32>
    %603 = arith.divf %602, %601 : vector<1x16xf32>
    %604 = vector.broadcast %603 : vector<1x16xf32> to vector<8x16xf32>
    %605 = arith.mulf %17, %604 : vector<8x16xf32>
    %cst_230 = arith.constant dense<0.000000e+00> : vector<8xf32>
    %606 = vector.multi_reduction <add>, %605, %cst_230 [1] : vector<8x16xf32> to vector<8xf32>
    %607 = vector.shape_cast %606 : vector<8xf32> to vector<8x1xf32>
    %cst_231 = arith.constant 1.000000e-16 : f32
    %608 = vector.broadcast %cst_231 : f32 to vector<8x1xf32>
    %609 = arith.addf %607, %608 : vector<8x1xf32>
    %cst_232 = arith.constant 1.250000e-01 : f32
    %610 = vector.broadcast %cst_232 : f32 to vector<8x1xf32>
    %611 = arith.divf %610, %609 : vector<8x1xf32>
    %c37_i32 = arith.constant 37 : i32
    %612 = vector.broadcast %611 : vector<8x1xf32> to vector<8x16xf32>
    %613 = arith.mulf %17, %612 : vector<8x16xf32>
    %cst_233 = arith.constant dense<0.000000e+00> : vector<16xf32>
    %614 = vector.multi_reduction <add>, %613, %cst_233 [0] : vector<8x16xf32> to vector<16xf32>
    %615 = vector.shape_cast %614 : vector<16xf32> to vector<1x16xf32>
    %cst_234 = arith.constant 1.000000e-16 : f32
    %616 = vector.broadcast %cst_234 : f32 to vector<1x16xf32>
    %617 = arith.addf %615, %616 : vector<1x16xf32>
    %cst_235 = arith.constant 6.250000e-02 : f32
    %618 = vector.broadcast %cst_235 : f32 to vector<1x16xf32>
    %619 = arith.divf %618, %617 : vector<1x16xf32>
    %620 = vector.broadcast %619 : vector<1x16xf32> to vector<8x16xf32>
    %621 = arith.mulf %17, %620 : vector<8x16xf32>
    %cst_236 = arith.constant dense<0.000000e+00> : vector<8xf32>
    %622 = vector.multi_reduction <add>, %621, %cst_236 [1] : vector<8x16xf32> to vector<8xf32>
    %623 = vector.shape_cast %622 : vector<8xf32> to vector<8x1xf32>
    %cst_237 = arith.constant 1.000000e-16 : f32
    %624 = vector.broadcast %cst_237 : f32 to vector<8x1xf32>
    %625 = arith.addf %623, %624 : vector<8x1xf32>
    %cst_238 = arith.constant 1.250000e-01 : f32
    %626 = vector.broadcast %cst_238 : f32 to vector<8x1xf32>
    %627 = arith.divf %626, %625 : vector<8x1xf32>
    %c38_i32 = arith.constant 38 : i32
    %628 = vector.broadcast %627 : vector<8x1xf32> to vector<8x16xf32>
    %629 = arith.mulf %17, %628 : vector<8x16xf32>
    %cst_239 = arith.constant dense<0.000000e+00> : vector<16xf32>
    %630 = vector.multi_reduction <add>, %629, %cst_239 [0] : vector<8x16xf32> to vector<16xf32>
    %631 = vector.shape_cast %630 : vector<16xf32> to vector<1x16xf32>
    %cst_240 = arith.constant 1.000000e-16 : f32
    %632 = vector.broadcast %cst_240 : f32 to vector<1x16xf32>
    %633 = arith.addf %631, %632 : vector<1x16xf32>
    %cst_241 = arith.constant 6.250000e-02 : f32
    %634 = vector.broadcast %cst_241 : f32 to vector<1x16xf32>
    %635 = arith.divf %634, %633 : vector<1x16xf32>
    %636 = vector.broadcast %635 : vector<1x16xf32> to vector<8x16xf32>
    %637 = arith.mulf %17, %636 : vector<8x16xf32>
    %cst_242 = arith.constant dense<0.000000e+00> : vector<8xf32>
    %638 = vector.multi_reduction <add>, %637, %cst_242 [1] : vector<8x16xf32> to vector<8xf32>
    %639 = vector.shape_cast %638 : vector<8xf32> to vector<8x1xf32>
    %cst_243 = arith.constant 1.000000e-16 : f32
    %640 = vector.broadcast %cst_243 : f32 to vector<8x1xf32>
    %641 = arith.addf %639, %640 : vector<8x1xf32>
    %cst_244 = arith.constant 1.250000e-01 : f32
    %642 = vector.broadcast %cst_244 : f32 to vector<8x1xf32>
    %643 = arith.divf %642, %641 : vector<8x1xf32>
    %c39_i32 = arith.constant 39 : i32
    %644 = vector.broadcast %643 : vector<8x1xf32> to vector<8x16xf32>
    %645 = arith.mulf %17, %644 : vector<8x16xf32>
    %cst_245 = arith.constant dense<0.000000e+00> : vector<16xf32>
    %646 = vector.multi_reduction <add>, %645, %cst_245 [0] : vector<8x16xf32> to vector<16xf32>
    %647 = vector.shape_cast %646 : vector<16xf32> to vector<1x16xf32>
    %cst_246 = arith.constant 1.000000e-16 : f32
    %648 = vector.broadcast %cst_246 : f32 to vector<1x16xf32>
    %649 = arith.addf %647, %648 : vector<1x16xf32>
    %cst_247 = arith.constant 6.250000e-02 : f32
    %650 = vector.broadcast %cst_247 : f32 to vector<1x16xf32>
    %651 = arith.divf %650, %649 : vector<1x16xf32>
    %652 = vector.broadcast %651 : vector<1x16xf32> to vector<8x16xf32>
    %653 = arith.mulf %17, %652 : vector<8x16xf32>
    %cst_248 = arith.constant dense<0.000000e+00> : vector<8xf32>
    %654 = vector.multi_reduction <add>, %653, %cst_248 [1] : vector<8x16xf32> to vector<8xf32>
    %655 = vector.shape_cast %654 : vector<8xf32> to vector<8x1xf32>
    %cst_249 = arith.constant 1.000000e-16 : f32
    %656 = vector.broadcast %cst_249 : f32 to vector<8x1xf32>
    %657 = arith.addf %655, %656 : vector<8x1xf32>
    %cst_250 = arith.constant 1.250000e-01 : f32
    %658 = vector.broadcast %cst_250 : f32 to vector<8x1xf32>
    %659 = arith.divf %658, %657 : vector<8x1xf32>
    %c40_i32 = arith.constant 40 : i32
    %660 = vector.broadcast %659 : vector<8x1xf32> to vector<8x16xf32>
    %661 = arith.mulf %17, %660 : vector<8x16xf32>
    %cst_251 = arith.constant dense<0.000000e+00> : vector<16xf32>
    %662 = vector.multi_reduction <add>, %661, %cst_251 [0] : vector<8x16xf32> to vector<16xf32>
    %663 = vector.shape_cast %662 : vector<16xf32> to vector<1x16xf32>
    %cst_252 = arith.constant 1.000000e-16 : f32
    %664 = vector.broadcast %cst_252 : f32 to vector<1x16xf32>
    %665 = arith.addf %663, %664 : vector<1x16xf32>
    %cst_253 = arith.constant 6.250000e-02 : f32
    %666 = vector.broadcast %cst_253 : f32 to vector<1x16xf32>
    %667 = arith.divf %666, %665 : vector<1x16xf32>
    %668 = vector.broadcast %667 : vector<1x16xf32> to vector<8x16xf32>
    %669 = arith.mulf %17, %668 : vector<8x16xf32>
    %cst_254 = arith.constant dense<0.000000e+00> : vector<8xf32>
    %670 = vector.multi_reduction <add>, %669, %cst_254 [1] : vector<8x16xf32> to vector<8xf32>
    %671 = vector.shape_cast %670 : vector<8xf32> to vector<8x1xf32>
    %cst_255 = arith.constant 1.000000e-16 : f32
    %672 = vector.broadcast %cst_255 : f32 to vector<8x1xf32>
    %673 = arith.addf %671, %672 : vector<8x1xf32>
    %cst_256 = arith.constant 1.250000e-01 : f32
    %674 = vector.broadcast %cst_256 : f32 to vector<8x1xf32>
    %675 = arith.divf %674, %673 : vector<8x1xf32>
    %c41_i32 = arith.constant 41 : i32
    %676 = vector.broadcast %675 : vector<8x1xf32> to vector<8x16xf32>
    %677 = arith.mulf %17, %676 : vector<8x16xf32>
    %cst_257 = arith.constant dense<0.000000e+00> : vector<16xf32>
    %678 = vector.multi_reduction <add>, %677, %cst_257 [0] : vector<8x16xf32> to vector<16xf32>
    %679 = vector.shape_cast %678 : vector<16xf32> to vector<1x16xf32>
    %cst_258 = arith.constant 1.000000e-16 : f32
    %680 = vector.broadcast %cst_258 : f32 to vector<1x16xf32>
    %681 = arith.addf %679, %680 : vector<1x16xf32>
    %cst_259 = arith.constant 6.250000e-02 : f32
    %682 = vector.broadcast %cst_259 : f32 to vector<1x16xf32>
    %683 = arith.divf %682, %681 : vector<1x16xf32>
    %684 = vector.broadcast %683 : vector<1x16xf32> to vector<8x16xf32>
    %685 = arith.mulf %17, %684 : vector<8x16xf32>
    %cst_260 = arith.constant dense<0.000000e+00> : vector<8xf32>
    %686 = vector.multi_reduction <add>, %685, %cst_260 [1] : vector<8x16xf32> to vector<8xf32>
    %687 = vector.shape_cast %686 : vector<8xf32> to vector<8x1xf32>
    %cst_261 = arith.constant 1.000000e-16 : f32
    %688 = vector.broadcast %cst_261 : f32 to vector<8x1xf32>
    %689 = arith.addf %687, %688 : vector<8x1xf32>
    %cst_262 = arith.constant 1.250000e-01 : f32
    %690 = vector.broadcast %cst_262 : f32 to vector<8x1xf32>
    %691 = arith.divf %690, %689 : vector<8x1xf32>
    %c42_i32 = arith.constant 42 : i32
    %692 = vector.broadcast %691 : vector<8x1xf32> to vector<8x16xf32>
    %693 = arith.mulf %17, %692 : vector<8x16xf32>
    %cst_263 = arith.constant dense<0.000000e+00> : vector<16xf32>
    %694 = vector.multi_reduction <add>, %693, %cst_263 [0] : vector<8x16xf32> to vector<16xf32>
    %695 = vector.shape_cast %694 : vector<16xf32> to vector<1x16xf32>
    %cst_264 = arith.constant 1.000000e-16 : f32
    %696 = vector.broadcast %cst_264 : f32 to vector<1x16xf32>
    %697 = arith.addf %695, %696 : vector<1x16xf32>
    %cst_265 = arith.constant 6.250000e-02 : f32
    %698 = vector.broadcast %cst_265 : f32 to vector<1x16xf32>
    %699 = arith.divf %698, %697 : vector<1x16xf32>
    %700 = vector.broadcast %699 : vector<1x16xf32> to vector<8x16xf32>
    %701 = arith.mulf %17, %700 : vector<8x16xf32>
    %cst_266 = arith.constant dense<0.000000e+00> : vector<8xf32>
    %702 = vector.multi_reduction <add>, %701, %cst_266 [1] : vector<8x16xf32> to vector<8xf32>
    %703 = vector.shape_cast %702 : vector<8xf32> to vector<8x1xf32>
    %cst_267 = arith.constant 1.000000e-16 : f32
    %704 = vector.broadcast %cst_267 : f32 to vector<8x1xf32>
    %705 = arith.addf %703, %704 : vector<8x1xf32>
    %cst_268 = arith.constant 1.250000e-01 : f32
    %706 = vector.broadcast %cst_268 : f32 to vector<8x1xf32>
    %707 = arith.divf %706, %705 : vector<8x1xf32>
    %c43_i32 = arith.constant 43 : i32
    %708 = vector.broadcast %707 : vector<8x1xf32> to vector<8x16xf32>
    %709 = arith.mulf %17, %708 : vector<8x16xf32>
    %cst_269 = arith.constant dense<0.000000e+00> : vector<16xf32>
    %710 = vector.multi_reduction <add>, %709, %cst_269 [0] : vector<8x16xf32> to vector<16xf32>
    %711 = vector.shape_cast %710 : vector<16xf32> to vector<1x16xf32>
    %cst_270 = arith.constant 1.000000e-16 : f32
    %712 = vector.broadcast %cst_270 : f32 to vector<1x16xf32>
    %713 = arith.addf %711, %712 : vector<1x16xf32>
    %cst_271 = arith.constant 6.250000e-02 : f32
    %714 = vector.broadcast %cst_271 : f32 to vector<1x16xf32>
    %715 = arith.divf %714, %713 : vector<1x16xf32>
    %716 = vector.broadcast %715 : vector<1x16xf32> to vector<8x16xf32>
    %717 = arith.mulf %17, %716 : vector<8x16xf32>
    %cst_272 = arith.constant dense<0.000000e+00> : vector<8xf32>
    %718 = vector.multi_reduction <add>, %717, %cst_272 [1] : vector<8x16xf32> to vector<8xf32>
    %719 = vector.shape_cast %718 : vector<8xf32> to vector<8x1xf32>
    %cst_273 = arith.constant 1.000000e-16 : f32
    %720 = vector.broadcast %cst_273 : f32 to vector<8x1xf32>
    %721 = arith.addf %719, %720 : vector<8x1xf32>
    %cst_274 = arith.constant 1.250000e-01 : f32
    %722 = vector.broadcast %cst_274 : f32 to vector<8x1xf32>
    %723 = arith.divf %722, %721 : vector<8x1xf32>
    %c44_i32 = arith.constant 44 : i32
    %724 = vector.broadcast %723 : vector<8x1xf32> to vector<8x16xf32>
    %725 = arith.mulf %17, %724 : vector<8x16xf32>
    %cst_275 = arith.constant dense<0.000000e+00> : vector<16xf32>
    %726 = vector.multi_reduction <add>, %725, %cst_275 [0] : vector<8x16xf32> to vector<16xf32>
    %727 = vector.shape_cast %726 : vector<16xf32> to vector<1x16xf32>
    %cst_276 = arith.constant 1.000000e-16 : f32
    %728 = vector.broadcast %cst_276 : f32 to vector<1x16xf32>
    %729 = arith.addf %727, %728 : vector<1x16xf32>
    %cst_277 = arith.constant 6.250000e-02 : f32
    %730 = vector.broadcast %cst_277 : f32 to vector<1x16xf32>
    %731 = arith.divf %730, %729 : vector<1x16xf32>
    %732 = vector.broadcast %731 : vector<1x16xf32> to vector<8x16xf32>
    %733 = arith.mulf %17, %732 : vector<8x16xf32>
    %cst_278 = arith.constant dense<0.000000e+00> : vector<8xf32>
    %734 = vector.multi_reduction <add>, %733, %cst_278 [1] : vector<8x16xf32> to vector<8xf32>
    %735 = vector.shape_cast %734 : vector<8xf32> to vector<8x1xf32>
    %cst_279 = arith.constant 1.000000e-16 : f32
    %736 = vector.broadcast %cst_279 : f32 to vector<8x1xf32>
    %737 = arith.addf %735, %736 : vector<8x1xf32>
    %cst_280 = arith.constant 1.250000e-01 : f32
    %738 = vector.broadcast %cst_280 : f32 to vector<8x1xf32>
    %739 = arith.divf %738, %737 : vector<8x1xf32>
    %c45_i32 = arith.constant 45 : i32
    %740 = vector.broadcast %739 : vector<8x1xf32> to vector<8x16xf32>
    %741 = arith.mulf %17, %740 : vector<8x16xf32>
    %cst_281 = arith.constant dense<0.000000e+00> : vector<16xf32>
    %742 = vector.multi_reduction <add>, %741, %cst_281 [0] : vector<8x16xf32> to vector<16xf32>
    %743 = vector.shape_cast %742 : vector<16xf32> to vector<1x16xf32>
    %cst_282 = arith.constant 1.000000e-16 : f32
    %744 = vector.broadcast %cst_282 : f32 to vector<1x16xf32>
    %745 = arith.addf %743, %744 : vector<1x16xf32>
    %cst_283 = arith.constant 6.250000e-02 : f32
    %746 = vector.broadcast %cst_283 : f32 to vector<1x16xf32>
    %747 = arith.divf %746, %745 : vector<1x16xf32>
    %748 = vector.broadcast %747 : vector<1x16xf32> to vector<8x16xf32>
    %749 = arith.mulf %17, %748 : vector<8x16xf32>
    %cst_284 = arith.constant dense<0.000000e+00> : vector<8xf32>
    %750 = vector.multi_reduction <add>, %749, %cst_284 [1] : vector<8x16xf32> to vector<8xf32>
    %751 = vector.shape_cast %750 : vector<8xf32> to vector<8x1xf32>
    %cst_285 = arith.constant 1.000000e-16 : f32
    %752 = vector.broadcast %cst_285 : f32 to vector<8x1xf32>
    %753 = arith.addf %751, %752 : vector<8x1xf32>
    %cst_286 = arith.constant 1.250000e-01 : f32
    %754 = vector.broadcast %cst_286 : f32 to vector<8x1xf32>
    %755 = arith.divf %754, %753 : vector<8x1xf32>
    %c46_i32 = arith.constant 46 : i32
    %756 = vector.broadcast %755 : vector<8x1xf32> to vector<8x16xf32>
    %757 = arith.mulf %17, %756 : vector<8x16xf32>
    %cst_287 = arith.constant dense<0.000000e+00> : vector<16xf32>
    %758 = vector.multi_reduction <add>, %757, %cst_287 [0] : vector<8x16xf32> to vector<16xf32>
    %759 = vector.shape_cast %758 : vector<16xf32> to vector<1x16xf32>
    %cst_288 = arith.constant 1.000000e-16 : f32
    %760 = vector.broadcast %cst_288 : f32 to vector<1x16xf32>
    %761 = arith.addf %759, %760 : vector<1x16xf32>
    %cst_289 = arith.constant 6.250000e-02 : f32
    %762 = vector.broadcast %cst_289 : f32 to vector<1x16xf32>
    %763 = arith.divf %762, %761 : vector<1x16xf32>
    %764 = vector.broadcast %763 : vector<1x16xf32> to vector<8x16xf32>
    %765 = arith.mulf %17, %764 : vector<8x16xf32>
    %cst_290 = arith.constant dense<0.000000e+00> : vector<8xf32>
    %766 = vector.multi_reduction <add>, %765, %cst_290 [1] : vector<8x16xf32> to vector<8xf32>
    %767 = vector.shape_cast %766 : vector<8xf32> to vector<8x1xf32>
    %cst_291 = arith.constant 1.000000e-16 : f32
    %768 = vector.broadcast %cst_291 : f32 to vector<8x1xf32>
    %769 = arith.addf %767, %768 : vector<8x1xf32>
    %cst_292 = arith.constant 1.250000e-01 : f32
    %770 = vector.broadcast %cst_292 : f32 to vector<8x1xf32>
    %771 = arith.divf %770, %769 : vector<8x1xf32>
    %c47_i32 = arith.constant 47 : i32
    %772 = vector.broadcast %771 : vector<8x1xf32> to vector<8x16xf32>
    %773 = arith.mulf %17, %772 : vector<8x16xf32>
    %cst_293 = arith.constant dense<0.000000e+00> : vector<16xf32>
    %774 = vector.multi_reduction <add>, %773, %cst_293 [0] : vector<8x16xf32> to vector<16xf32>
    %775 = vector.shape_cast %774 : vector<16xf32> to vector<1x16xf32>
    %cst_294 = arith.constant 1.000000e-16 : f32
    %776 = vector.broadcast %cst_294 : f32 to vector<1x16xf32>
    %777 = arith.addf %775, %776 : vector<1x16xf32>
    %cst_295 = arith.constant 6.250000e-02 : f32
    %778 = vector.broadcast %cst_295 : f32 to vector<1x16xf32>
    %779 = arith.divf %778, %777 : vector<1x16xf32>
    %780 = vector.broadcast %779 : vector<1x16xf32> to vector<8x16xf32>
    %781 = arith.mulf %17, %780 : vector<8x16xf32>
    %cst_296 = arith.constant dense<0.000000e+00> : vector<8xf32>
    %782 = vector.multi_reduction <add>, %781, %cst_296 [1] : vector<8x16xf32> to vector<8xf32>
    %783 = vector.shape_cast %782 : vector<8xf32> to vector<8x1xf32>
    %cst_297 = arith.constant 1.000000e-16 : f32
    %784 = vector.broadcast %cst_297 : f32 to vector<8x1xf32>
    %785 = arith.addf %783, %784 : vector<8x1xf32>
    %cst_298 = arith.constant 1.250000e-01 : f32
    %786 = vector.broadcast %cst_298 : f32 to vector<8x1xf32>
    %787 = arith.divf %786, %785 : vector<8x1xf32>
    %c48_i32 = arith.constant 48 : i32
    %788 = vector.broadcast %787 : vector<8x1xf32> to vector<8x16xf32>
    %789 = arith.mulf %17, %788 : vector<8x16xf32>
    %cst_299 = arith.constant dense<0.000000e+00> : vector<16xf32>
    %790 = vector.multi_reduction <add>, %789, %cst_299 [0] : vector<8x16xf32> to vector<16xf32>
    %791 = vector.shape_cast %790 : vector<16xf32> to vector<1x16xf32>
    %cst_300 = arith.constant 1.000000e-16 : f32
    %792 = vector.broadcast %cst_300 : f32 to vector<1x16xf32>
    %793 = arith.addf %791, %792 : vector<1x16xf32>
    %cst_301 = arith.constant 6.250000e-02 : f32
    %794 = vector.broadcast %cst_301 : f32 to vector<1x16xf32>
    %795 = arith.divf %794, %793 : vector<1x16xf32>
    %796 = vector.broadcast %795 : vector<1x16xf32> to vector<8x16xf32>
    %797 = arith.mulf %17, %796 : vector<8x16xf32>
    %cst_302 = arith.constant dense<0.000000e+00> : vector<8xf32>
    %798 = vector.multi_reduction <add>, %797, %cst_302 [1] : vector<8x16xf32> to vector<8xf32>
    %799 = vector.shape_cast %798 : vector<8xf32> to vector<8x1xf32>
    %cst_303 = arith.constant 1.000000e-16 : f32
    %800 = vector.broadcast %cst_303 : f32 to vector<8x1xf32>
    %801 = arith.addf %799, %800 : vector<8x1xf32>
    %cst_304 = arith.constant 1.250000e-01 : f32
    %802 = vector.broadcast %cst_304 : f32 to vector<8x1xf32>
    %803 = arith.divf %802, %801 : vector<8x1xf32>
    %c49_i32 = arith.constant 49 : i32
    %804 = vector.broadcast %803 : vector<8x1xf32> to vector<8x16xf32>
    %805 = arith.mulf %17, %804 : vector<8x16xf32>
    %cst_305 = arith.constant dense<0.000000e+00> : vector<16xf32>
    %806 = vector.multi_reduction <add>, %805, %cst_305 [0] : vector<8x16xf32> to vector<16xf32>
    %807 = vector.shape_cast %806 : vector<16xf32> to vector<1x16xf32>
    %cst_306 = arith.constant 1.000000e-16 : f32
    %808 = vector.broadcast %cst_306 : f32 to vector<1x16xf32>
    %809 = arith.addf %807, %808 : vector<1x16xf32>
    %cst_307 = arith.constant 6.250000e-02 : f32
    %810 = vector.broadcast %cst_307 : f32 to vector<1x16xf32>
    %811 = arith.divf %810, %809 : vector<1x16xf32>
    %812 = vector.broadcast %811 : vector<1x16xf32> to vector<8x16xf32>
    %813 = arith.mulf %17, %812 : vector<8x16xf32>
    %cst_308 = arith.constant dense<0.000000e+00> : vector<8xf32>
    %814 = vector.multi_reduction <add>, %813, %cst_308 [1] : vector<8x16xf32> to vector<8xf32>
    %815 = vector.shape_cast %814 : vector<8xf32> to vector<8x1xf32>
    %cst_309 = arith.constant 1.000000e-16 : f32
    %816 = vector.broadcast %cst_309 : f32 to vector<8x1xf32>
    %817 = arith.addf %815, %816 : vector<8x1xf32>
    %cst_310 = arith.constant 1.250000e-01 : f32
    %818 = vector.broadcast %cst_310 : f32 to vector<8x1xf32>
    %819 = arith.divf %818, %817 : vector<8x1xf32>
    %820 = vector.broadcast %819 : vector<8x1xf32> to vector<8x16xf32>
    %821 = arith.mulf %820, %17 : vector<8x16xf32>
    %822 = vector.broadcast %811 : vector<1x16xf32> to vector<8x16xf32>
    %823 = arith.mulf %821, %822 : vector<8x16xf32>
    %c0_311 = arith.constant 0 : index
    %c0_312 = arith.constant 0 : index
    %824 = vector.load %arg3[%c0_311, %c0_312] : memref<8x16xf32, #tpu.memory_space<vmem>>, vector<8x16xf32>
    tpu.vector_store %arg3[%c0_311, %c0_312], %823 {strides = array<i32>} : memref<8x16xf32, #tpu.memory_space<vmem>>, vector<8x16xf32>,
    %825 = arith.mulf %823, %14 : vector<8x16xf32>
    %cst_313 = arith.constant dense<0.000000e+00> : vector<8xf32>
    %826 = vector.multi_reduction <add>, %825, %cst_313 [1] : vector<8x16xf32> to vector<8xf32>
    %827 = vector.shape_cast %826 : vector<8xf32> to vector<8x1xf32>
    %cst_314 = arith.constant dense<0.000000e+00> : vector<1xf32>
    %828 = vector.multi_reduction <add>, %827, %cst_314 [0] : vector<8x1xf32> to vector<1xf32>
    %829 = vector.shape_cast %828 : vector<1xf32> to vector<1x1xf32>
    %c0_315 = arith.constant 0 : index
    %c0_316 = arith.constant 0 : index
    %830 = vector.load %arg4[%c0_315, %c0_316] : memref<1x1xf32, #tpu.memory_space<vmem>>, vector<1x1xf32>
    tpu.vector_store %arg4[%c0_315, %c0_316], %829 {strides = array<i32>} : memref<1x1xf32, #tpu.memory_space<vmem>>, vector<1x1xf32>,
    return
  }
}

</mosaic_0001>

<bundles_post_ra>
// kernel: tpu_custom_call.1
= control target key start
LH: loop header
LB: loop body
LE: loop exit
PB: predicated region body
PF: predicated region fallthrough
CT: control target
= control target key end

     0   :  { %10 = vsyncpa [#allocation3], 0  ;;  %v1343_v1 = vmov 0.0   ;;  %vm1344_vm0 = vmmov 0   ;;  %s1619_s0 = inlined_call_operand.vmem [shape: f32[8,64], index: 0, kind: input, shape index: {}]   ;;  %s1620_s1 = inlined_call_operand.vmem [shape: f32[64,16], index: 1, kind: input, shape index: {}]   ;;  %s1621_s2 = inlined_call_operand.vmem [shape: f32[1,16], index: 2, kind: input, shape index: {}]   ;;  %s1622_s3 = inlined_call_operand.hbm [shape: f32[8,16], index: 3, kind: output, shape index: {0}]   ;;  %s1623_s4 = inlined_call_operand.hbm [shape: f32[1,1], index: 4, kind: output, shape index: {1}]  }
   0x1   :  { %v31_v0 = vld [vmem:[%s1620_s1 + $0x38] sm:$0xff]  ;;  %1074 = vmatprep.subr.mxu0 %v1343_v1  ;;  %v30_v2 = vld [vmem:[%s1620_s1 + $0x30] sm:$0xff]  ;;  %1090 = vmatprep.mubr.msk.f32.mxu0 %vm1344_vm0, %v1343_v1  ;;  %v18_v3 = vld [vmem:[%s1619_s0] sm:$0xff] }
   0x2   :  { %1075 = vmatpush3.msra.mxu0 %v31_v0  ;;  %v29_v4 = vld [vmem:[%s1620_s1 + $0x28] sm:$0xff]  ;;  %v19_v5 = vmul.f32 %v18_v3, %v18_v3 }
   0x3   :  { %1076 = vmatprep.subr.mxu0 %v1343_v1 }
   0x4   :  { %11 = vsyncpa [#allocation5], 0  ;;  %1077 = vmatpush3.msra.mxu0 %v30_v2  ;;  %vm20_vm1 = vcmask 523264   ;;  %v28_v6 = vld [vmem:[%s1620_s1 + $0x20] sm:$0xff]  ;;  %v27_v8 = vld [vmem:[%s1620_s1 + $0x18] sm:$0xff]  ;;  %vm120_vm2 = vcmask 130048  }
   0x5   :  { %1078 = vmatprep.subr.mxu0 %v1343_v1  ;;  %v21_v7 = vsel %vm20_vm1, %v19_v5, 0.0  ;;  %v26_v9 = vld [vmem:[%s1620_s1 + $0x10] sm:$0xff]  ;;  %v25_v10 = vld [vmem:[%s1620_s1 + $0x8] sm:$0xff]  ;;  %v24_v11 = vld [vmem:[%s1620_s1] sm:$0xff]  ;;  %s1345_s1 = smov [#allocation2]  }
   0x6   :  { %1079 = vmatpush3.msra.mxu0 %v29_v4  ;;  %22 = vadd.xlane.f32.xlu0 %v21_v7  ;;  %v1064_v12 = vld [vmem:[%s1621_s2] ss:$0 sm:$0xff]  ;;  %s1041_s2 = sshll.u32 %s1345_s1, 4  ;;  %s1042_s2 = int_to_ptr.vmem [resolvable:$true] %s1041_s2 }
   0x7   :  { %1080 = vmatprep.subr.mxu0 %v1343_v1  ;;  %s1299_s8 = scalar_lea.vmem %s1042_s2, 128  ;;  %p1304_p1 = scmp.lt.s32.totalorder %s1042_s2, %s1042_s2 }
   0x8   :  { %1081 = vmatpush3.msra.mxu0 %v28_v6  ;;  %p1300_p0 = scmp.ne.s32.totalorder %s1042_s2, %s1299_s8  ;;  %p1305_p2 = scmp.lt.s32.totalorder %s1299_s8, %s1299_s8 }
   0x9   :  { %1082 = vmatprep.subr.mxu0 %v1343_v1 }
   0xa   :  { %1083 = vmatpush3.msra.mxu0 %v27_v8  ;;  %p1306_p3 = por %p1305_p2, %p1304_p1 }
   0xb   :  { %1084 = vmatprep.subr.mxu0 %v1343_v1 }
   0xc   :  { %1085 = vmatpush3.msra.mxu0 %v26_v9  ;;  %p1307_p4 = pnand %p1306_p3, %p1300_p0 }
   0xd   :  { %1086 = vmatprep.subr.mxu0 %v1343_v1 }
   0xe   :  { %1087 = vmatpush3.msra.mxu0 %v25_v10 }
   0xf   :  { %1088 = vmatprep.subr.mxu0 %v1343_v1 }
  0x10   :  { %1089 = vmatpush3.msra.mxu0 %v24_v11 }
  0x11   :  { %1091 = vmatmul.mubr.msk.f32.vlgmr.msra.gmra.mxu0 %vm20_vm1, %v18_v3 }
  0x8f   :  { %v23_v13 = vpop.xlane.xlu0 %22 }
  0x90   :  { %v112_v14 = vadd.f32 %v1064_v12, %v23_v13 }
  0xd1   :  { %v101_v15 = vpop.f32.mrf.mxu0 }
  0xd2   :  { %v113_v16 = vmul.f32 2.0, %v101_v15 }
  0xd3   :  { %v1092_v17 = vpop.f32.mrf.mxu0 }
  0xd4   :  { %v114_v18 = vsub.f32 %v112_v14, %v113_v16 }
  0xd6   :  { %v1404_v19 = vmax.f32 %v114_v18, 0.0 }
  0xd8   :  { %v116_v20 = vmul.f32 -20.0, %v1404_v19 }
  0xda   :  { %v117_v21 = vmul.f32 1.442695, %v116_v20 }
  0xdc   :  { %1097 = vpow2.f32 %v117_v21 }
  0xe9   :  { %v1407_v22 = vpop.eup %1097 }
  0xea   :  { %v119_v23 = vmul.f32 0.125, %v1407_v22 }
  0xec   :  { %v121_v24 = vsel %vm120_vm2, %v119_v23, 0.0 }
  0xed   :  { %v122_v25 = vrot.slane %v121_v24, 4 }
  0xef   :  { %v123_v26 = vadd.f32 %v122_v25, %v121_v24 }
  0xf1   :  { %v124_v27 = vrot.slane %v123_v26, 2 }
  0xf3   :  { %v125_v28 = vadd.f32 %v124_v27, %v123_v26 }
  0xf5   :  { %v126_v29 = vrot.slane %v125_v28, 1 }
  0xf7   :  { %v127_v30 = vadd.f32 %v126_v29, %v125_v28 }
  0xf9   :  { %v128_v31 = vadd.f32 1e-16, %v127_v30 }
  0xfb   :  { %1099 = vrcp.f32 %v128_v31 }
 0x108   :  { %v1100_v32 = vpop.eup %1099 }
 0x109   :  { %v130_v33 = vmul.f32 0.0625, %v1100_v32 }
 0x10b   :  { %v131_v34 = vmul.f32 %v1407_v22, %v130_v33 }
 0x10d   :  { %v132_v35 = vsel %vm120_vm2, %v131_v34, 0.0 }
 0x10e   :  { %133 = vadd.xlane.f32.xlu0 %v132_v35 }
 0x197   :  { %v134_v36 = vpop.xlane.xlu0 %133 }
 0x198   :  { %v135_v37 = vadd.f32 1e-16, %v134_v36 }
 0x19a   :  { %1101 = vrcp.f32 %v135_v37 }
 0x1a7   :  { %v1102_v38 = vpop.eup %1101 }
 0x1a8   :  { %v137_v39 = vmul.f32 0.125, %v1102_v38 }
 0x1aa   :  { %v138_v40 = vmul.f32 %v1407_v22, %v137_v39 }
 0x1ac   :  { %v139_v41 = vsel %vm120_vm2, %v138_v40, 0.0 }
 0x1ad   :  { %v140_v42 = vrot.slane %v139_v41, 4 }
 0x1af   :  { %v141_v43 = vadd.f32 %v140_v42, %v139_v41 }
 0x1b1   :  { %v142_v44 = vrot.slane %v141_v43, 2 }
 0x1b3   :  { %v143_v45 = vadd.f32 %v142_v44, %v141_v43 }
 0x1b5   :  { %v144_v46 = vrot.slane %v143_v45, 1 }
 0x1b7   :  { %v145_v47 = vadd.f32 %v144_v46, %v143_v45 }
 0x1b9   :  { %v146_v48 = vadd.f32 1e-16, %v145_v47 }
 0x1bb   :  { %1103 = vrcp.f32 %v146_v48 }
 0x1c8   :  { %v1104_v49 = vpop.eup %1103 }
 0x1c9   :  { %v148_v50 = vmul.f32 0.0625, %v1104_v49 }
 0x1cb   :  { %v149_v51 = vmul.f32 %v1407_v22, %v148_v50 }
 0x1cd   :  { %v150_v52 = vsel %vm120_vm2, %v149_v51, 0.0 }
 0x1ce   :  { %151 = vadd.xlane.f32.xlu1 %v150_v52 }
 0x257   :  { %v152_v53 = vpop.xlane.xlu1 %151 }
 0x258   :  { %v153_v54 = vadd.f32 1e-16, %v152_v53 }
 0x25a   :  { %1105 = vrcp.f32 %v153_v54 }
 0x267   :  { %v1106_v55 = vpop.eup %1105 }
 0x268   :  { %v155_v56 = vmul.f32 0.125, %v1106_v55 }
 0x26a   :  { %v156_v57 = vmul.f32 %v1407_v22, %v155_v56 }
 0x26c   :  { %v157_v58 = vsel %vm120_vm2, %v156_v57, 0.0 }
 0x26d   :  { %v158_v59 = vrot.slane %v157_v58, 4 }
 0x26f   :  { %v159_v60 = vadd.f32 %v158_v59, %v157_v58 }
 0x271   :  { %v160_v61 = vrot.slane %v159_v60, 2 }
 0x273   :  { %v161_v62 = vadd.f32 %v160_v61, %v159_v60 }
 0x275   :  { %v162_v63 = vrot.slane %v161_v62, 1 }
 0x277   :  { %v163_v0 = vadd.f32 %v162_v63, %v161_v62 }
 0x279   :  { %v164_v1 = vadd.f32 1e-16, %v163_v0 }
 0x27b   :  { %1107 = vrcp.f32 %v164_v1 }
 0x288   :  { %v1108_v2 = vpop.eup %1107 }
 0x289   :  { %v166_v3 = vmul.f32 0.0625, %v1108_v2 }
 0x28b   :  { %v167_v4 = vmul.f32 %v1407_v22, %v166_v3 }
 0x28d   :  { %v168_v5 = vsel %vm120_vm2, %v167_v4, 0.0 }
 0x28e   :  { %169 = vadd.xlane.f32.xlu1 %v168_v5 }
 0x317   :  { %v170_v6 = vpop.xlane.xlu1 %169 }
 0x318   :  { %v171_v7 = vadd.f32 1e-16, %v170_v6 }
 0x31a   :  { %1109 = vrcp.f32 %v171_v7 }
 0x327   :  { %v1110_v8 = vpop.eup %1109 }
 0x328   :  { %v173_v9 = vmul.f32 0.125, %v1110_v8 }
 0x32a   :  { %v174_v10 = vmul.f32 %v1407_v22, %v173_v9 }
 0x32c   :  { %v175_v11 = vsel %vm120_vm2, %v174_v10, 0.0 }
 0x32d   :  { %v176_v12 = vrot.slane %v175_v11, 4 }
 0x32f   :  { %v177_v13 = vadd.f32 %v176_v12, %v175_v11 }
 0x331   :  { %v178_v14 = vrot.slane %v177_v13, 2 }
 0x333   :  { %v179_v15 = vadd.f32 %v178_v14, %v177_v13 }
 0x335   :  { %v180_v16 = vrot.slane %v179_v15, 1 }
 0x337   :  { %v181_v17 = vadd.f32 %v180_v16, %v179_v15 }
 0x339   :  { %v182_v18 = vadd.f32 1e-16, %v181_v17 }
 0x33b   :  { %1111 = vrcp.f32 %v182_v18 }
 0x348   :  { %v1112_v20 = vpop.eup %1111 }
 0x349   :  { %v184_v21 = vmul.f32 0.0625, %v1112_v20 }
 0x34b   :  { %v185_v23 = vmul.f32 %v1407_v22, %v184_v21 }
 0x34d   :  { %v186_v24 = vsel %vm120_vm2, %v185_v23, 0.0 }
 0x34e   :  { %187 = vadd.xlane.f32.xlu0 %v186_v24 }
 0x3d7   :  { %v188_v25 = vpop.xlane.xlu0 %187 }
 0x3d8   :  { %v189_v26 = vadd.f32 1e-16, %v188_v25 }
 0x3da   :  { %1113 = vrcp.f32 %v189_v26 }
 0x3e7   :  { %v1114_v27 = vpop.eup %1113 }
 0x3e8   :  { %v191_v28 = vmul.f32 0.125, %v1114_v27 }
 0x3ea   :  { %v192_v29 = vmul.f32 %v1407_v22, %v191_v28 }
 0x3ec   :  { %v193_v30 = vsel %vm120_vm2, %v192_v29, 0.0 }
 0x3ed   :  { %v194_v31 = vrot.slane %v193_v30, 4 }
 0x3ef   :  { %v195_v32 = vadd.f32 %v194_v31, %v193_v30 }
 0x3f1   :  { %v196_v33 = vrot.slane %v195_v32, 2 }
 0x3f3   :  { %v197_v34 = vadd.f32 %v196_v33, %v195_v32 }
 0x3f5   :  { %v198_v35 = vrot.slane %v197_v34, 1 }
 0x3f7   :  { %v199_v36 = vadd.f32 %v198_v35, %v197_v34 }
 0x3f9   :  { %v200_v37 = vadd.f32 1e-16, %v199_v36 }
 0x3fb   :  { %1115 = vrcp.f32 %v200_v37 }
 0x408   :  { %v1116_v38 = vpop.eup %1115 }
 0x409   :  { %v202_v39 = vmul.f32 0.0625, %v1116_v38 }
 0x40b   :  { %v203_v40 = vmul.f32 %v1407_v22, %v202_v39 }
 0x40d   :  { %v204_v41 = vsel %vm120_vm2, %v203_v40, 0.0 }
 0x40e   :  { %205 = vadd.xlane.f32.xlu1 %v204_v41 }
 0x497   :  { %v206_v42 = vpop.xlane.xlu1 %205 }
 0x498   :  { %v207_v43 = vadd.f32 1e-16, %v206_v42 }
 0x49a   :  { %1117 = vrcp.f32 %v207_v43 }
 0x4a7   :  { %v1118_v44 = vpop.eup %1117 }
 0x4a8   :  { %v209_v45 = vmul.f32 0.125, %v1118_v44 }
 0x4aa   :  { %v210_v46 = vmul.f32 %v1407_v22, %v209_v45 }
 0x4ac   :  { %v211_v47 = vsel %vm120_vm2, %v210_v46, 0.0 }
 0x4ad   :  { %v212_v48 = vrot.slane %v211_v47, 4 }
 0x4af   :  { %v213_v49 = vadd.f32 %v212_v48, %v211_v47 }
 0x4b1   :  { %v214_v50 = vrot.slane %v213_v49, 2 }
 0x4b3   :  { %v215_v51 = vadd.f32 %v214_v50, %v213_v49 }
 0x4b5   :  { %v216_v52 = vrot.slane %v215_v51, 1 }
 0x4b7   :  { %v217_v53 = vadd.f32 %v216_v52, %v215_v51 }
 0x4b9   :  { %v218_v54 = vadd.f32 1e-16, %v217_v53 }
 0x4bb   :  { %1119 = vrcp.f32 %v218_v54 }
 0x4c8   :  { %v1120_v55 = vpop.eup %1119 }
 0x4c9   :  { %v220_v56 = vmul.f32 0.0625, %v1120_v55 }
 0x4cb   :  { %v221_v57 = vmul.f32 %v1407_v22, %v220_v56 }
 0x4cd   :  { %v222_v58 = vsel %vm120_vm2, %v221_v57, 0.0 }
 0x4ce   :  { %223 = vadd.xlane.f32.xlu0 %v222_v58 }
 0x557   :  { %v224_v59 = vpop.xlane.xlu0 %223 }
 0x558   :  { %v225_v60 = vadd.f32 1e-16, %v224_v59 }
 0x55a   :  { %1121 = vrcp.f32 %v225_v60 }
 0x567   :  { %v1122_v61 = vpop.eup %1121 }
 0x568   :  { %v227_v62 = vmul.f32 0.125, %v1122_v61 }
 0x56a   :  { %v228_v63 = vmul.f32 %v1407_v22, %v227_v62 }
 0x56c   :  { %v229_v0 = vsel %vm120_vm2, %v228_v63, 0.0 }
 0x56d   :  { %v230_v1 = vrot.slane %v229_v0, 4 }
 0x56f   :  { %v231_v2 = vadd.f32 %v230_v1, %v229_v0 }
 0x571   :  { %v232_v3 = vrot.slane %v231_v2, 2 }
 0x573   :  { %v233_v4 = vadd.f32 %v232_v3, %v231_v2 }
 0x575   :  { %v234_v5 = vrot.slane %v233_v4, 1 }
 0x577   :  { %v235_v6 = vadd.f32 %v234_v5, %v233_v4 }
 0x579   :  { %v236_v7 = vadd.f32 1e-16, %v235_v6 }
 0x57b   :  { %1123 = vrcp.f32 %v236_v7 }
 0x588   :  { %v1124_v8 = vpop.eup %1123 }
 0x589   :  { %v238_v9 = vmul.f32 0.0625, %v1124_v8 }
 0x58b   :  { %v239_v10 = vmul.f32 %v1407_v22, %v238_v9 }
 0x58d   :  { %v240_v11 = vsel %vm120_vm2, %v239_v10, 0.0 }
 0x58e   :  { %241 = vadd.xlane.f32.xlu1 %v240_v11 }
 0x617   :  { %v242_v12 = vpop.xlane.xlu1 %241 }
 0x618   :  { %v243_v13 = vadd.f32 1e-16, %v242_v12 }
 0x61a   :  { %1125 = vrcp.f32 %v243_v13 }
 0x627   :  { %v1126_v14 = vpop.eup %1125 }
 0x628   :  { %v245_v15 = vmul.f32 0.125, %v1126_v14 }
 0x62a   :  { %v246_v16 = vmul.f32 %v1407_v22, %v245_v15 }
 0x62c   :  { %v247_v17 = vsel %vm120_vm2, %v246_v16, 0.0 }
 0x62d   :  { %v248_v18 = vrot.slane %v247_v17, 4 }
 0x62f   :  { %v249_v20 = vadd.f32 %v248_v18, %v247_v17 }
 0x631   :  { %v250_v21 = vrot.slane %v249_v20, 2 }
 0x633   :  { %v251_v23 = vadd.f32 %v250_v21, %v249_v20 }
 0x635   :  { %v252_v24 = vrot.slane %v251_v23, 1 }
 0x637   :  { %v253_v25 = vadd.f32 %v252_v24, %v251_v23 }
 0x639   :  { %v254_v26 = vadd.f32 1e-16, %v253_v25 }
 0x63b   :  { %1127 = vrcp.f32 %v254_v26 }
 0x648   :  { %v1128_v27 = vpop.eup %1127 }
 0x649   :  { %v256_v28 = vmul.f32 0.0625, %v1128_v27 }
 0x64b   :  { %v257_v29 = vmul.f32 %v1407_v22, %v256_v28 }
 0x64d   :  { %v258_v30 = vsel %vm120_vm2, %v257_v29, 0.0 }
 0x64e   :  { %259 = vadd.xlane.f32.xlu0 %v258_v30 }
 0x6d7   :  { %v260_v31 = vpop.xlane.xlu0 %259 }
 0x6d8   :  { %v261_v32 = vadd.f32 1e-16, %v260_v31 }
 0x6da   :  { %1129 = vrcp.f32 %v261_v32 }
 0x6e7   :  { %v1130_v33 = vpop.eup %1129 }
 0x6e8   :  { %v263_v34 = vmul.f32 0.125, %v1130_v33 }
 0x6ea   :  { %v264_v35 = vmul.f32 %v1407_v22, %v263_v34 }
 0x6ec   :  { %v265_v36 = vsel %vm120_vm2, %v264_v35, 0.0 }
 0x6ed   :  { %v266_v37 = vrot.slane %v265_v36, 4 }
 0x6ef   :  { %v267_v38 = vadd.f32 %v266_v37, %v265_v36 }
 0x6f1   :  { %v268_v39 = vrot.slane %v267_v38, 2 }
 0x6f3   :  { %v269_v40 = vadd.f32 %v268_v39, %v267_v38 }
 0x6f5   :  { %v270_v41 = vrot.slane %v269_v40, 1 }
 0x6f7   :  { %v271_v42 = vadd.f32 %v270_v41, %v269_v40 }
 0x6f9   :  { %v272_v43 = vadd.f32 1e-16, %v271_v42 }
 0x6fb   :  { %1131 = vrcp.f32 %v272_v43 }
 0x708   :  { %v1132_v44 = vpop.eup %1131 }
 0x709   :  { %v274_v45 = vmul.f32 0.0625, %v1132_v44 }
 0x70b   :  { %v275_v46 = vmul.f32 %v1407_v22, %v274_v45 }
 0x70d   :  { %v276_v47 = vsel %vm120_vm2, %v275_v46, 0.0 }
 0x70e   :  { %277 = vadd.xlane.f32.xlu1 %v276_v47 }
 0x797   :  { %v278_v48 = vpop.xlane.xlu1 %277 }
 0x798   :  { %v279_v49 = vadd.f32 1e-16, %v278_v48 }
 0x79a   :  { %1133 = vrcp.f32 %v279_v49 }
 0x7a7   :  { %v1134_v50 = vpop.eup %1133 }
 0x7a8   :  { %v281_v51 = vmul.f32 0.125, %v1134_v50 }
 0x7aa   :  { %v282_v52 = vmul.f32 %v1407_v22, %v281_v51 }
 0x7ac   :  { %v283_v53 = vsel %vm120_vm2, %v282_v52, 0.0 }
 0x7ad   :  { %v284_v54 = vrot.slane %v283_v53, 4 }
 0x7af   :  { %v285_v55 = vadd.f32 %v284_v54, %v283_v53 }
 0x7b1   :  { %v286_v56 = vrot.slane %v285_v55, 2 }
 0x7b3   :  { %v287_v57 = vadd.f32 %v286_v56, %v285_v55 }
 0x7b5   :  { %v288_v58 = vrot.slane %v287_v57, 1 }
 0x7b7   :  { %v289_v59 = vadd.f32 %v288_v58, %v287_v57 }
 0x7b9   :  { %v290_v60 = vadd.f32 1e-16, %v289_v59 }
 0x7bb   :  { %1135 = vrcp.f32 %v290_v60 }
 0x7c8   :  { %v1136_v61 = vpop.eup %1135 }
 0x7c9   :  { %v292_v62 = vmul.f32 0.0625, %v1136_v61 }
 0x7cb   :  { %v293_v63 = vmul.f32 %v1407_v22, %v292_v62 }
 0x7cd   :  { %v294_v0 = vsel %vm120_vm2, %v293_v63, 0.0 }
 0x7ce   :  { %295 = vadd.xlane.f32.xlu0 %v294_v0 }
 0x857   :  { %v296_v1 = vpop.xlane.xlu0 %295 }
 0x858   :  { %v297_v2 = vadd.f32 1e-16, %v296_v1 }
 0x85a   :  { %1137 = vrcp.f32 %v297_v2 }
 0x867   :  { %v1138_v3 = vpop.eup %1137 }
 0x868   :  { %v299_v4 = vmul.f32 0.125, %v1138_v3 }
 0x86a   :  { %v300_v5 = vmul.f32 %v1407_v22, %v299_v4 }
 0x86c   :  { %v301_v6 = vsel %vm120_vm2, %v300_v5, 0.0 }
 0x86d   :  { %v302_v7 = vrot.slane %v301_v6, 4 }
 0x86f   :  { %v303_v8 = vadd.f32 %v302_v7, %v301_v6 }
 0x871   :  { %v304_v9 = vrot.slane %v303_v8, 2 }
 0x873   :  { %v305_v10 = vadd.f32 %v304_v9, %v303_v8 }
 0x875   :  { %v306_v11 = vrot.slane %v305_v10, 1 }
 0x877   :  { %v307_v12 = vadd.f32 %v306_v11, %v305_v10 }
 0x879   :  { %v308_v13 = vadd.f32 1e-16, %v307_v12 }
 0x87b   :  { %1139 = vrcp.f32 %v308_v13 }
 0x888   :  { %v1140_v14 = vpop.eup %1139 }
 0x889   :  { %v310_v15 = vmul.f32 0.0625, %v1140_v14 }
 0x88b   :  { %v311_v16 = vmul.f32 %v1407_v22, %v310_v15 }
 0x88d   :  { %v312_v17 = vsel %vm120_vm2, %v311_v16, 0.0 }
 0x88e   :  { %313 = vadd.xlane.f32.xlu1 %v312_v17 }
 0x917   :  { %v314_v18 = vpop.xlane.xlu1 %313 }
 0x918   :  { %v315_v20 = vadd.f32 1e-16, %v314_v18 }
 0x91a   :  { %1141 = vrcp.f32 %v315_v20 }
 0x927   :  { %v1142_v21 = vpop.eup %1141 }
 0x928   :  { %v317_v23 = vmul.f32 0.125, %v1142_v21 }
 0x92a   :  { %v318_v24 = vmul.f32 %v1407_v22, %v317_v23 }
 0x92c   :  { %v319_v25 = vsel %vm120_vm2, %v318_v24, 0.0 }
 0x92d   :  { %v320_v26 = vrot.slane %v319_v25, 4 }
 0x92f   :  { %v321_v27 = vadd.f32 %v320_v26, %v319_v25 }
 0x931   :  { %v322_v28 = vrot.slane %v321_v27, 2 }
 0x933   :  { %v323_v29 = vadd.f32 %v322_v28, %v321_v27 }
 0x935   :  { %v324_v30 = vrot.slane %v323_v29, 1 }
 0x937   :  { %v325_v31 = vadd.f32 %v324_v30, %v323_v29 }
 0x939   :  { %v326_v32 = vadd.f32 1e-16, %v325_v31 }
 0x93b   :  { %1143 = vrcp.f32 %v326_v32 }
 0x948   :  { %v1144_v33 = vpop.eup %1143 }
 0x949   :  { %v328_v34 = vmul.f32 0.0625, %v1144_v33 }
 0x94b   :  { %v329_v35 = vmul.f32 %v1407_v22, %v328_v34 }
 0x94d   :  { %v330_v36 = vsel %vm120_vm2, %v329_v35, 0.0 }
 0x94e   :  { %331 = vadd.xlane.f32.xlu0 %v330_v36 }
 0x9d7   :  { %v332_v37 = vpop.xlane.xlu0 %331 }
 0x9d8   :  { %v333_v38 = vadd.f32 1e-16, %v332_v37 }
 0x9da   :  { %1145 = vrcp.f32 %v333_v38 }
 0x9e7   :  { %v1146_v39 = vpop.eup %1145 }
 0x9e8   :  { %v335_v40 = vmul.f32 0.125, %v1146_v39 }
 0x9ea   :  { %v336_v41 = vmul.f32 %v1407_v22, %v335_v40 }
 0x9ec   :  { %v337_v42 = vsel %vm120_vm2, %v336_v41, 0.0 }
 0x9ed   :  { %v338_v43 = vrot.slane %v337_v42, 4 }
 0x9ef   :  { %v339_v44 = vadd.f32 %v338_v43, %v337_v42 }
 0x9f1   :  { %v340_v45 = vrot.slane %v339_v44, 2 }
 0x9f3   :  { %v341_v46 = vadd.f32 %v340_v45, %v339_v44 }
 0x9f5   :  { %v342_v47 = vrot.slane %v341_v46, 1 }
 0x9f7   :  { %v343_v48 = vadd.f32 %v342_v47, %v341_v46 }
 0x9f9   :  { %v344_v49 = vadd.f32 1e-16, %v343_v48 }
 0x9fb   :  { %1147 = vrcp.f32 %v344_v49 }
 0xa08   :  { %v1148_v50 = vpop.eup %1147 }
 0xa09   :  { %v346_v51 = vmul.f32 0.0625, %v1148_v50 }
 0xa0b   :  { %v347_v52 = vmul.f32 %v1407_v22, %v346_v51 }
 0xa0d   :  { %v348_v53 = vsel %vm120_vm2, %v347_v52, 0.0 }
 0xa0e   :  { %349 = vadd.xlane.f32.xlu1 %v348_v53 }
 0xa97   :  { %v350_v54 = vpop.xlane.xlu1 %349 }
 0xa98   :  { %v351_v55 = vadd.f32 1e-16, %v350_v54 }
 0xa9a   :  { %1149 = vrcp.f32 %v351_v55 }
 0xaa7   :  { %v1150_v56 = vpop.eup %1149 }
 0xaa8   :  { %v353_v57 = vmul.f32 0.125, %v1150_v56 }
 0xaaa   :  { %v354_v58 = vmul.f32 %v1407_v22, %v353_v57 }
 0xaac   :  { %v355_v59 = vsel %vm120_vm2, %v354_v58, 0.0 }
 0xaad   :  { %v356_v60 = vrot.slane %v355_v59, 4 }
 0xaaf   :  { %v357_v61 = vadd.f32 %v356_v60, %v355_v59 }
 0xab1   :  { %v358_v62 = vrot.slane %v357_v61, 2 }
 0xab3   :  { %v359_v63 = vadd.f32 %v358_v62, %v357_v61 }
 0xab5   :  { %v360_v0 = vrot.slane %v359_v63, 1 }
 0xab7   :  { %v361_v1 = vadd.f32 %v360_v0, %v359_v63 }
 0xab9   :  { %v362_v2 = vadd.f32 1e-16, %v361_v1 }
 0xabb   :  { %1151 = vrcp.f32 %v362_v2 }
 0xac8   :  { %v1152_v3 = vpop.eup %1151 }
 0xac9   :  { %v364_v4 = vmul.f32 0.0625, %v1152_v3 }
 0xacb   :  { %v365_v5 = vmul.f32 %v1407_v22, %v364_v4 }
 0xacd   :  { %v366_v6 = vsel %vm120_vm2, %v365_v5, 0.0 }
 0xace   :  { %367 = vadd.xlane.f32.xlu0 %v366_v6 }
 0xb57   :  { %v368_v7 = vpop.xlane.xlu0 %367 }
 0xb58   :  { %v369_v8 = vadd.f32 1e-16, %v368_v7 }
 0xb5a   :  { %1153 = vrcp.f32 %v369_v8 }
 0xb67   :  { %v1154_v9 = vpop.eup %1153 }
 0xb68   :  { %v371_v10 = vmul.f32 0.125, %v1154_v9 }
 0xb6a   :  { %v372_v11 = vmul.f32 %v1407_v22, %v371_v10 }
 0xb6c   :  { %v373_v12 = vsel %vm120_vm2, %v372_v11, 0.0 }
 0xb6d   :  { %v374_v13 = vrot.slane %v373_v12, 4 }
 0xb6f   :  { %v375_v14 = vadd.f32 %v374_v13, %v373_v12 }
 0xb71   :  { %v376_v15 = vrot.slane %v375_v14, 2 }
 0xb73   :  { %v377_v16 = vadd.f32 %v376_v15, %v375_v14 }
 0xb75   :  { %v378_v17 = vrot.slane %v377_v16, 1 }
 0xb77   :  { %v379_v18 = vadd.f32 %v378_v17, %v377_v16 }
 0xb79   :  { %v380_v20 = vadd.f32 1e-16, %v379_v18 }
 0xb7b   :  { %1155 = vrcp.f32 %v380_v20 }
 0xb88   :  { %v1156_v21 = vpop.eup %1155 }
 0xb89   :  { %v382_v23 = vmul.f32 0.0625, %v1156_v21 }
 0xb8b   :  { %v383_v24 = vmul.f32 %v1407_v22, %v382_v23 }
 0xb8d   :  { %v384_v25 = vsel %vm120_vm2, %v383_v24, 0.0 }
 0xb8e   :  { %385 = vadd.xlane.f32.xlu1 %v384_v25 }
 0xc17   :  { %v386_v26 = vpop.xlane.xlu1 %385 }
 0xc18   :  { %v387_v27 = vadd.f32 1e-16, %v386_v26 }
 0xc1a   :  { %1157 = vrcp.f32 %v387_v27 }
 0xc27   :  { %v1158_v28 = vpop.eup %1157 }
 0xc28   :  { %v389_v29 = vmul.f32 0.125, %v1158_v28 }
 0xc2a   :  { %v390_v30 = vmul.f32 %v1407_v22, %v389_v29 }
 0xc2c   :  { %v391_v31 = vsel %vm120_vm2, %v390_v30, 0.0 }
 0xc2d   :  { %v392_v32 = vrot.slane %v391_v31, 4 }
 0xc2f   :  { %v393_v33 = vadd.f32 %v392_v32, %v391_v31 }
 0xc31   :  { %v394_v34 = vrot.slane %v393_v33, 2 }
 0xc33   :  { %v395_v35 = vadd.f32 %v394_v34, %v393_v33 }
 0xc35   :  { %v396_v36 = vrot.slane %v395_v35, 1 }
 0xc37   :  { %v397_v37 = vadd.f32 %v396_v36, %v395_v35 }
 0xc39   :  { %v398_v38 = vadd.f32 1e-16, %v397_v37 }
 0xc3b   :  { %1159 = vrcp.f32 %v398_v38 }
 0xc48   :  { %v1160_v39 = vpop.eup %1159 }
 0xc49   :  { %v400_v40 = vmul.f32 0.0625, %v1160_v39 }
 0xc4b   :  { %v401_v41 = vmul.f32 %v1407_v22, %v400_v40 }
 0xc4d   :  { %v402_v42 = vsel %vm120_vm2, %v401_v41, 0.0 }
 0xc4e   :  { %403 = vadd.xlane.f32.xlu0 %v402_v42 }
 0xcd7   :  { %v404_v43 = vpop.xlane.xlu0 %403 }
 0xcd8   :  { %v405_v44 = vadd.f32 1e-16, %v404_v43 }
 0xcda   :  { %1161 = vrcp.f32 %v405_v44 }
 0xce7   :  { %v1162_v45 = vpop.eup %1161 }
 0xce8   :  { %v407_v46 = vmul.f32 0.125, %v1162_v45 }
 0xcea   :  { %v408_v47 = vmul.f32 %v1407_v22, %v407_v46 }
 0xcec   :  { %v409_v48 = vsel %vm120_vm2, %v408_v47, 0.0 }
 0xced   :  { %v410_v49 = vrot.slane %v409_v48, 4 }
 0xcef   :  { %v411_v50 = vadd.f32 %v410_v49, %v409_v48 }
 0xcf1   :  { %v412_v51 = vrot.slane %v411_v50, 2 }
 0xcf3   :  { %v413_v52 = vadd.f32 %v412_v51, %v411_v50 }
 0xcf5   :  { %v414_v53 = vrot.slane %v413_v52, 1 }
 0xcf7   :  { %v415_v54 = vadd.f32 %v414_v53, %v413_v52 }
 0xcf9   :  { %v416_v55 = vadd.f32 1e-16, %v415_v54 }
 0xcfb   :  { %1163 = vrcp.f32 %v416_v55 }
 0xd08   :  { %v1164_v56 = vpop.eup %1163 }
 0xd09   :  { %v418_v57 = vmul.f32 0.0625, %v1164_v56 }
 0xd0b   :  { %v419_v58 = vmul.f32 %v1407_v22, %v418_v57 }
 0xd0d   :  { %v420_v59 = vsel %vm120_vm2, %v419_v58, 0.0 }
 0xd0e   :  { %421 = vadd.xlane.f32.xlu1 %v420_v59 }
 0xd97   :  { %v422_v60 = vpop.xlane.xlu1 %421 }
 0xd98   :  { %v423_v61 = vadd.f32 1e-16, %v422_v60 }
 0xd9a   :  { %1165 = vrcp.f32 %v423_v61 }
 0xda7   :  { %v1166_v62 = vpop.eup %1165 }
 0xda8   :  { %v425_v63 = vmul.f32 0.125, %v1166_v62 }
 0xdaa   :  { %v426_v0 = vmul.f32 %v1407_v22, %v425_v63 }
 0xdac   :  { %v427_v1 = vsel %vm120_vm2, %v426_v0, 0.0 }
 0xdad   :  { %v428_v2 = vrot.slane %v427_v1, 4 }
 0xdaf   :  { %v429_v3 = vadd.f32 %v428_v2, %v427_v1 }
 0xdb1   :  { %v430_v4 = vrot.slane %v429_v3, 2 }
 0xdb3   :  { %v431_v5 = vadd.f32 %v430_v4, %v429_v3 }
 0xdb5   :  { %v432_v6 = vrot.slane %v431_v5, 1 }
 0xdb7   :  { %v433_v7 = vadd.f32 %v432_v6, %v431_v5 }
 0xdb9   :  { %v434_v8 = vadd.f32 1e-16, %v433_v7 }
 0xdbb   :  { %1167 = vrcp.f32 %v434_v8 }
 0xdc8   :  { %v1168_v9 = vpop.eup %1167 }
 0xdc9   :  { %v436_v10 = vmul.f32 0.0625, %v1168_v9 }
 0xdcb   :  { %v437_v11 = vmul.f32 %v1407_v22, %v436_v10 }
 0xdcd   :  { %v438_v12 = vsel %vm120_vm2, %v437_v11, 0.0 }
 0xdce   :  { %439 = vadd.xlane.f32.xlu0 %v438_v12 }
 0xe57   :  { %v440_v13 = vpop.xlane.xlu0 %439 }
 0xe58   :  { %v441_v14 = vadd.f32 1e-16, %v440_v13 }
 0xe5a   :  { %1169 = vrcp.f32 %v441_v14 }
 0xe67   :  { %v1170_v15 = vpop.eup %1169 }
 0xe68   :  { %v443_v16 = vmul.f32 0.125, %v1170_v15 }
 0xe6a   :  { %v444_v17 = vmul.f32 %v1407_v22, %v443_v16 }
 0xe6c   :  { %v445_v18 = vsel %vm120_vm2, %v444_v17, 0.0 }
 0xe6d   :  { %v446_v20 = vrot.slane %v445_v18, 4 }
 0xe6f   :  { %v447_v21 = vadd.f32 %v446_v20, %v445_v18 }
 0xe71   :  { %v448_v23 = vrot.slane %v447_v21, 2 }
 0xe73   :  { %v449_v24 = vadd.f32 %v448_v23, %v447_v21 }
 0xe75   :  { %v450_v25 = vrot.slane %v449_v24, 1 }
 0xe77   :  { %v451_v26 = vadd.f32 %v450_v25, %v449_v24 }
 0xe79   :  { %v452_v27 = vadd.f32 1e-16, %v451_v26 }
 0xe7b   :  { %1171 = vrcp.f32 %v452_v27 }
 0xe88   :  { %v1172_v28 = vpop.eup %1171 }
 0xe89   :  { %v454_v29 = vmul.f32 0.0625, %v1172_v28 }
 0xe8b   :  { %v455_v30 = vmul.f32 %v1407_v22, %v454_v29 }
 0xe8d   :  { %v456_v31 = vsel %vm120_vm2, %v455_v30, 0.0 }
 0xe8e   :  { %457 = vadd.xlane.f32.xlu1 %v456_v31 }
 0xf17   :  { %v458_v32 = vpop.xlane.xlu1 %457 }
 0xf18   :  { %v459_v33 = vadd.f32 1e-16, %v458_v32 }
 0xf1a   :  { %1173 = vrcp.f32 %v459_v33 }
 0xf27   :  { %v1174_v34 = vpop.eup %1173 }
 0xf28   :  { %v461_v35 = vmul.f32 0.125, %v1174_v34 }
 0xf2a   :  { %v462_v36 = vmul.f32 %v1407_v22, %v461_v35 }
 0xf2c   :  { %v463_v37 = vsel %vm120_vm2, %v462_v36, 0.0 }
 0xf2d   :  { %v464_v38 = vrot.slane %v463_v37, 4 }
 0xf2f   :  { %v465_v39 = vadd.f32 %v464_v38, %v463_v37 }
 0xf31   :  { %v466_v40 = vrot.slane %v465_v39, 2 }
 0xf33   :  { %v467_v41 = vadd.f32 %v466_v40, %v465_v39 }
 0xf35   :  { %v468_v42 = vrot.slane %v467_v41, 1 }
 0xf37   :  { %v469_v43 = vadd.f32 %v468_v42, %v467_v41 }
 0xf39   :  { %v470_v44 = vadd.f32 1e-16, %v469_v43 }
 0xf3b   :  { %1175 = vrcp.f32 %v470_v44 }
 0xf48   :  { %v1176_v45 = vpop.eup %1175 }
 0xf49   :  { %v472_v46 = vmul.f32 0.0625, %v1176_v45 }
 0xf4b   :  { %v473_v47 = vmul.f32 %v1407_v22, %v472_v46 }
 0xf4d   :  { %v474_v48 = vsel %vm120_vm2, %v473_v47, 0.0 }
 0xf4e   :  { %475 = vadd.xlane.f32.xlu0 %v474_v48 }
 0xfd7   :  { %v476_v49 = vpop.xlane.xlu0 %475 }
 0xfd8   :  { %v477_v50 = vadd.f32 1e-16, %v476_v49 }
 0xfda   :  { %1177 = vrcp.f32 %v477_v50 }
 0xfe7   :  { %v1178_v51 = vpop.eup %1177 }
 0xfe8   :  { %v479_v52 = vmul.f32 0.125, %v1178_v51 }
 0xfea   :  { %v480_v53 = vmul.f32 %v1407_v22, %v479_v52 }
 0xfec   :  { %v481_v54 = vsel %vm120_vm2, %v480_v53, 0.0 }
 0xfed   :  { %v482_v55 = vrot.slane %v481_v54, 4 }
 0xfef   :  { %v483_v56 = vadd.f32 %v482_v55, %v481_v54 }
 0xff1   :  { %v484_v57 = vrot.slane %v483_v56, 2 }
 0xff3   :  { %v485_v58 = vadd.f32 %v484_v57, %v483_v56 }
 0xff5   :  { %v486_v59 = vrot.slane %v485_v58, 1 }
 0xff7   :  { %v487_v60 = vadd.f32 %v486_v59, %v485_v58 }
 0xff9   :  { %v488_v61 = vadd.f32 1e-16, %v487_v60 }
 0xffb   :  { %1179 = vrcp.f32 %v488_v61 }
0x1008   :  { %v1180_v62 = vpop.eup %1179 }
0x1009   :  { %v490_v63 = vmul.f32 0.0625, %v1180_v62 }
0x100b   :  { %v491_v0 = vmul.f32 %v1407_v22, %v490_v63 }
0x100d   :  { %v492_v1 = vsel %vm120_vm2, %v491_v0, 0.0 }
0x100e   :  { %493 = vadd.xlane.f32.xlu1 %v492_v1 }
0x1097   :  { %v494_v2 = vpop.xlane.xlu1 %493 }
0x1098   :  { %v495_v3 = vadd.f32 1e-16, %v494_v2 }
0x109a   :  { %1181 = vrcp.f32 %v495_v3 }
0x10a7   :  { %v1182_v4 = vpop.eup %1181 }
0x10a8   :  { %v497_v5 = vmul.f32 0.125, %v1182_v4 }
0x10aa   :  { %v498_v6 = vmul.f32 %v1407_v22, %v497_v5 }
0x10ac   :  { %v499_v7 = vsel %vm120_vm2, %v498_v6, 0.0 }
0x10ad   :  { %v500_v8 = vrot.slane %v499_v7, 4 }
0x10af   :  { %v501_v9 = vadd.f32 %v500_v8, %v499_v7 }
0x10b1   :  { %v502_v10 = vrot.slane %v501_v9, 2 }
0x10b3   :  { %v503_v11 = vadd.f32 %v502_v10, %v501_v9 }
0x10b5   :  { %v504_v12 = vrot.slane %v503_v11, 1 }
0x10b7   :  { %v505_v13 = vadd.f32 %v504_v12, %v503_v11 }
0x10b9   :  { %v506_v14 = vadd.f32 1e-16, %v505_v13 }
0x10bb   :  { %1183 = vrcp.f32 %v506_v14 }
0x10c8   :  { %v1184_v15 = vpop.eup %1183 }
0x10c9   :  { %v508_v16 = vmul.f32 0.0625, %v1184_v15 }
0x10cb   :  { %v509_v17 = vmul.f32 %v1407_v22, %v508_v16 }
0x10cd   :  { %v510_v18 = vsel %vm120_vm2, %v509_v17, 0.0 }
0x10ce   :  { %511 = vadd.xlane.f32.xlu0 %v510_v18 }
0x1157   :  { %v512_v20 = vpop.xlane.xlu0 %511 }
0x1158   :  { %v513_v21 = vadd.f32 1e-16, %v512_v20 }
0x115a   :  { %1185 = vrcp.f32 %v513_v21 }
0x1167   :  { %v1186_v23 = vpop.eup %1185 }
0x1168   :  { %v515_v24 = vmul.f32 0.125, %v1186_v23 }
0x116a   :  { %v516_v25 = vmul.f32 %v1407_v22, %v515_v24 }
0x116c   :  { %v517_v26 = vsel %vm120_vm2, %v516_v25, 0.0 }
0x116d   :  { %v518_v27 = vrot.slane %v517_v26, 4 }
0x116f   :  { %v519_v28 = vadd.f32 %v518_v27, %v517_v26 }
0x1171   :  { %v520_v29 = vrot.slane %v519_v28, 2 }
0x1173   :  { %v521_v30 = vadd.f32 %v520_v29, %v519_v28 }
0x1175   :  { %v522_v31 = vrot.slane %v521_v30, 1 }
0x1177   :  { %v523_v32 = vadd.f32 %v522_v31, %v521_v30 }
0x1179   :  { %v524_v33 = vadd.f32 1e-16, %v523_v32 }
0x117b   :  { %1187 = vrcp.f32 %v524_v33 }
0x1188   :  { %v1188_v34 = vpop.eup %1187 }
0x1189   :  { %v526_v35 = vmul.f32 0.0625, %v1188_v34 }
0x118b   :  { %v527_v36 = vmul.f32 %v1407_v22, %v526_v35 }
0x118d   :  { %v528_v37 = vsel %vm120_vm2, %v527_v36, 0.0 }
0x118e   :  { %529 = vadd.xlane.f32.xlu1 %v528_v37 }
0x1217   :  { %v530_v38 = vpop.xlane.xlu1 %529 }
0x1218   :  { %v531_v39 = vadd.f32 1e-16, %v530_v38 }
0x121a   :  { %1189 = vrcp.f32 %v531_v39 }
0x1227   :  { %v1190_v40 = vpop.eup %1189 }
0x1228   :  { %v533_v41 = vmul.f32 0.125, %v1190_v40 }
0x122a   :  { %v534_v42 = vmul.f32 %v1407_v22, %v533_v41 }
0x122c   :  { %v535_v43 = vsel %vm120_vm2, %v534_v42, 0.0 }
0x122d   :  { %v536_v44 = vrot.slane %v535_v43, 4 }
0x122f   :  { %v537_v45 = vadd.f32 %v536_v44, %v535_v43 }
0x1231   :  { %v538_v46 = vrot.slane %v537_v45, 2 }
0x1233   :  { %v539_v47 = vadd.f32 %v538_v46, %v537_v45 }
0x1235   :  { %v540_v48 = vrot.slane %v539_v47, 1 }
0x1237   :  { %v541_v49 = vadd.f32 %v540_v48, %v539_v47 }
0x1239   :  { %v542_v50 = vadd.f32 1e-16, %v541_v49 }
0x123b   :  { %1191 = vrcp.f32 %v542_v50 }
0x1248   :  { %v1192_v51 = vpop.eup %1191 }
0x1249   :  { %v544_v52 = vmul.f32 0.0625, %v1192_v51 }
0x124b   :  { %v545_v53 = vmul.f32 %v1407_v22, %v544_v52 }
0x124d   :  { %v546_v54 = vsel %vm120_vm2, %v545_v53, 0.0 }
0x124e   :  { %547 = vadd.xlane.f32.xlu0 %v546_v54 }
0x12d7   :  { %v548_v55 = vpop.xlane.xlu0 %547 }
0x12d8   :  { %v549_v56 = vadd.f32 1e-16, %v548_v55 }
0x12da   :  { %1193 = vrcp.f32 %v549_v56 }
0x12e7   :  { %v1194_v57 = vpop.eup %1193 }
0x12e8   :  { %v551_v58 = vmul.f32 0.125, %v1194_v57 }
0x12ea   :  { %v552_v59 = vmul.f32 %v1407_v22, %v551_v58 }
0x12ec   :  { %v553_v60 = vsel %vm120_vm2, %v552_v59, 0.0 }
0x12ed   :  { %v554_v61 = vrot.slane %v553_v60, 4 }
0x12ef   :  { %v555_v62 = vadd.f32 %v554_v61, %v553_v60 }
0x12f1   :  { %v556_v63 = vrot.slane %v555_v62, 2 }
0x12f3   :  { %v557_v0 = vadd.f32 %v556_v63, %v555_v62 }
0x12f5   :  { %v558_v1 = vrot.slane %v557_v0, 1 }
0x12f7   :  { %v559_v2 = vadd.f32 %v558_v1, %v557_v0 }
0x12f9   :  { %v560_v3 = vadd.f32 1e-16, %v559_v2 }
0x12fb   :  { %1195 = vrcp.f32 %v560_v3 }
0x1308   :  { %v1196_v4 = vpop.eup %1195 }
0x1309   :  { %v562_v5 = vmul.f32 0.0625, %v1196_v4 }
0x130b   :  { %v563_v6 = vmul.f32 %v1407_v22, %v562_v5 }
0x130d   :  { %v564_v7 = vsel %vm120_vm2, %v563_v6, 0.0 }
0x130e   :  { %565 = vadd.xlane.f32.xlu1 %v564_v7 }
0x1397   :  { %v566_v8 = vpop.xlane.xlu1 %565 }
0x1398   :  { %v567_v9 = vadd.f32 1e-16, %v566_v8 }
0x139a   :  { %1197 = vrcp.f32 %v567_v9 }
0x13a7   :  { %v1198_v10 = vpop.eup %1197 }
0x13a8   :  { %v569_v11 = vmul.f32 0.125, %v1198_v10 }
0x13aa   :  { %v570_v12 = vmul.f32 %v1407_v22, %v569_v11 }
0x13ac   :  { %v571_v13 = vsel %vm120_vm2, %v570_v12, 0.0 }
0x13ad   :  { %v572_v14 = vrot.slane %v571_v13, 4 }
0x13af   :  { %v573_v15 = vadd.f32 %v572_v14, %v571_v13 }
0x13b1   :  { %v574_v16 = vrot.slane %v573_v15, 2 }
0x13b3   :  { %v575_v17 = vadd.f32 %v574_v16, %v573_v15 }
0x13b5   :  { %v576_v18 = vrot.slane %v575_v17, 1 }
0x13b7   :  { %v577_v20 = vadd.f32 %v576_v18, %v575_v17 }
0x13b9   :  { %v578_v21 = vadd.f32 1e-16, %v577_v20 }
0x13bb   :  { %1199 = vrcp.f32 %v578_v21 }
0x13c8   :  { %v1200_v23 = vpop.eup %1199 }
0x13c9   :  { %v580_v24 = vmul.f32 0.0625, %v1200_v23 }
0x13cb   :  { %v581_v25 = vmul.f32 %v1407_v22, %v580_v24 }
0x13cd   :  { %v582_v26 = vsel %vm120_vm2, %v581_v25, 0.0 }
0x13ce   :  { %583 = vadd.xlane.f32.xlu0 %v582_v26 }
0x1457   :  { %v584_v27 = vpop.xlane.xlu0 %583 }
0x1458   :  { %v585_v28 = vadd.f32 1e-16, %v584_v27 }
0x145a   :  { %1201 = vrcp.f32 %v585_v28 }
0x1467   :  { %v1202_v29 = vpop.eup %1201 }
0x1468   :  { %v587_v30 = vmul.f32 0.125, %v1202_v29 }
0x146a   :  { %v588_v31 = vmul.f32 %v1407_v22, %v587_v30 }
0x146c   :  { %v589_v32 = vsel %vm120_vm2, %v588_v31, 0.0 }
0x146d   :  { %v590_v33 = vrot.slane %v589_v32, 4 }
0x146f   :  { %v591_v34 = vadd.f32 %v590_v33, %v589_v32 }
0x1471   :  { %v592_v35 = vrot.slane %v591_v34, 2 }
0x1473   :  { %v593_v36 = vadd.f32 %v592_v35, %v591_v34 }
0x1475   :  { %v594_v37 = vrot.slane %v593_v36, 1 }
0x1477   :  { %v595_v38 = vadd.f32 %v594_v37, %v593_v36 }
0x1479   :  { %v596_v39 = vadd.f32 1e-16, %v595_v38 }
0x147b   :  { %1203 = vrcp.f32 %v596_v39 }
0x1488   :  { %v1204_v40 = vpop.eup %1203 }
0x1489   :  { %v598_v41 = vmul.f32 0.0625, %v1204_v40 }
0x148b   :  { %v599_v42 = vmul.f32 %v1407_v22, %v598_v41 }
0x148d   :  { %v600_v43 = vsel %vm120_vm2, %v599_v42, 0.0 }
0x148e   :  { %601 = vadd.xlane.f32.xlu1 %v600_v43 }
0x1517   :  { %v602_v44 = vpop.xlane.xlu1 %601 }
0x1518   :  { %v603_v45 = vadd.f32 1e-16, %v602_v44 }
0x151a   :  { %1205 = vrcp.f32 %v603_v45 }
0x1527   :  { %v1206_v46 = vpop.eup %1205 }
0x1528   :  { %v605_v47 = vmul.f32 0.125, %v1206_v46 }
0x152a   :  { %v606_v48 = vmul.f32 %v1407_v22, %v605_v47 }
0x152c   :  { %v607_v49 = vsel %vm120_vm2, %v606_v48, 0.0 }
0x152d   :  { %v608_v50 = vrot.slane %v607_v49, 4 }
0x152f   :  { %v609_v51 = vadd.f32 %v608_v50, %v607_v49 }
0x1531   :  { %v610_v52 = vrot.slane %v609_v51, 2 }
0x1533   :  { %v611_v53 = vadd.f32 %v610_v52, %v609_v51 }
0x1535   :  { %v612_v54 = vrot.slane %v611_v53, 1 }
0x1537   :  { %v613_v55 = vadd.f32 %v612_v54, %v611_v53 }
0x1539   :  { %v614_v56 = vadd.f32 1e-16, %v613_v55 }
0x153b   :  { %1207 = vrcp.f32 %v614_v56 }
0x1548   :  { %v1208_v57 = vpop.eup %1207 }
0x1549   :  { %v616_v58 = vmul.f32 0.0625, %v1208_v57 }
0x154b   :  { %v617_v59 = vmul.f32 %v1407_v22, %v616_v58 }
0x154d   :  { %v618_v60 = vsel %vm120_vm2, %v617_v59, 0.0 }
0x154e   :  { %619 = vadd.xlane.f32.xlu0 %v618_v60 }
0x15d7   :  { %v620_v61 = vpop.xlane.xlu0 %619 }
0x15d8   :  { %v621_v62 = vadd.f32 1e-16, %v620_v61 }
0x15da   :  { %1209 = vrcp.f32 %v621_v62 }
0x15e7   :  { %v1210_v63 = vpop.eup %1209 }
0x15e8   :  { %v623_v0 = vmul.f32 0.125, %v1210_v63 }
0x15ea   :  { %v624_v1 = vmul.f32 %v1407_v22, %v623_v0 }
0x15ec   :  { %v625_v2 = vsel %vm120_vm2, %v624_v1, 0.0 }
0x15ed   :  { %v626_v3 = vrot.slane %v625_v2, 4 }
0x15ef   :  { %v627_v4 = vadd.f32 %v626_v3, %v625_v2 }
0x15f1   :  { %v628_v5 = vrot.slane %v627_v4, 2 }
0x15f3   :  { %v629_v6 = vadd.f32 %v628_v5, %v627_v4 }
0x15f5   :  { %v630_v7 = vrot.slane %v629_v6, 1 }
0x15f7   :  { %v631_v8 = vadd.f32 %v630_v7, %v629_v6 }
0x15f9   :  { %v632_v9 = vadd.f32 1e-16, %v631_v8 }
0x15fb   :  { %1211 = vrcp.f32 %v632_v9 }
0x1608   :  { %v1212_v10 = vpop.eup %1211 }
0x1609   :  { %v634_v11 = vmul.f32 0.0625, %v1212_v10 }
0x160b   :  { %v635_v12 = vmul.f32 %v1407_v22, %v634_v11 }
0x160d   :  { %v636_v13 = vsel %vm120_vm2, %v635_v12, 0.0 }
0x160e   :  { %637 = vadd.xlane.f32.xlu1 %v636_v13 }
0x1697   :  { %v638_v14 = vpop.xlane.xlu1 %637 }
0x1698   :  { %v639_v15 = vadd.f32 1e-16, %v638_v14 }
0x169a   :  { %1213 = vrcp.f32 %v639_v15 }
0x16a7   :  { %v1214_v16 = vpop.eup %1213 }
0x16a8   :  { %v641_v17 = vmul.f32 0.125, %v1214_v16 }
0x16aa   :  { %v642_v18 = vmul.f32 %v1407_v22, %v641_v17 }
0x16ac   :  { %v643_v20 = vsel %vm120_vm2, %v642_v18, 0.0 }
0x16ad   :  { %v644_v21 = vrot.slane %v643_v20, 4 }
0x16af   :  { %v645_v23 = vadd.f32 %v644_v21, %v643_v20 }
0x16b1   :  { %v646_v24 = vrot.slane %v645_v23, 2 }
0x16b3   :  { %v647_v25 = vadd.f32 %v646_v24, %v645_v23 }
0x16b5   :  { %v648_v26 = vrot.slane %v647_v25, 1 }
0x16b7   :  { %v649_v27 = vadd.f32 %v648_v26, %v647_v25 }
0x16b9   :  { %v650_v28 = vadd.f32 1e-16, %v649_v27 }
0x16bb   :  { %1215 = vrcp.f32 %v650_v28 }
0x16c8   :  { %v1216_v29 = vpop.eup %1215 }
0x16c9   :  { %v652_v30 = vmul.f32 0.0625, %v1216_v29 }
0x16cb   :  { %v653_v31 = vmul.f32 %v1407_v22, %v652_v30 }
0x16cd   :  { %v654_v32 = vsel %vm120_vm2, %v653_v31, 0.0 }
0x16ce   :  { %655 = vadd.xlane.f32.xlu0 %v654_v32 }
0x1757   :  { %v656_v33 = vpop.xlane.xlu0 %655 }
0x1758   :  { %v657_v34 = vadd.f32 1e-16, %v656_v33 }
0x175a   :  { %1217 = vrcp.f32 %v657_v34 }
0x1767   :  { %v1218_v35 = vpop.eup %1217 }
0x1768   :  { %v659_v36 = vmul.f32 0.125, %v1218_v35 }
0x176a   :  { %v660_v37 = vmul.f32 %v1407_v22, %v659_v36 }
0x176c   :  { %v661_v38 = vsel %vm120_vm2, %v660_v37, 0.0 }
0x176d   :  { %v662_v39 = vrot.slane %v661_v38, 4 }
0x176f   :  { %v663_v40 = vadd.f32 %v662_v39, %v661_v38 }
0x1771   :  { %v664_v41 = vrot.slane %v663_v40, 2 }
0x1773   :  { %v665_v42 = vadd.f32 %v664_v41, %v663_v40 }
0x1775   :  { %v666_v43 = vrot.slane %v665_v42, 1 }
0x1777   :  { %v667_v44 = vadd.f32 %v666_v43, %v665_v42 }
0x1779   :  { %v668_v45 = vadd.f32 1e-16, %v667_v44 }
0x177b   :  { %1219 = vrcp.f32 %v668_v45 }
0x1788   :  { %v1220_v46 = vpop.eup %1219 }
0x1789   :  { %v670_v47 = vmul.f32 0.0625, %v1220_v46 }
0x178b   :  { %v671_v48 = vmul.f32 %v1407_v22, %v670_v47 }
0x178d   :  { %v672_v49 = vsel %vm120_vm2, %v671_v48, 0.0 }
0x178e   :  { %673 = vadd.xlane.f32.xlu1 %v672_v49 }
0x1817   :  { %v674_v50 = vpop.xlane.xlu1 %673 }
0x1818   :  { %v675_v51 = vadd.f32 1e-16, %v674_v50 }
0x181a   :  { %1221 = vrcp.f32 %v675_v51 }
0x1827   :  { %v1222_v52 = vpop.eup %1221 }
0x1828   :  { %v677_v53 = vmul.f32 0.125, %v1222_v52 }
0x182a   :  { %v678_v54 = vmul.f32 %v1407_v22, %v677_v53 }
0x182c   :  { %v679_v55 = vsel %vm120_vm2, %v678_v54, 0.0 }
0x182d   :  { %v680_v56 = vrot.slane %v679_v55, 4 }
0x182f   :  { %v681_v57 = vadd.f32 %v680_v56, %v679_v55 }
0x1831   :  { %v682_v58 = vrot.slane %v681_v57, 2 }
0x1833   :  { %v683_v59 = vadd.f32 %v682_v58, %v681_v57 }
0x1835   :  { %v684_v60 = vrot.slane %v683_v59, 1 }
0x1837   :  { %v685_v61 = vadd.f32 %v684_v60, %v683_v59 }
0x1839   :  { %v686_v62 = vadd.f32 1e-16, %v685_v61 }
0x183b   :  { %1223 = vrcp.f32 %v686_v62 }
0x1848   :  { %v1224_v63 = vpop.eup %1223 }
0x1849   :  { %v688_v0 = vmul.f32 0.0625, %v1224_v63 }
0x184b   :  { %v689_v1 = vmul.f32 %v1407_v22, %v688_v0 }
0x184d   :  { %v690_v2 = vsel %vm120_vm2, %v689_v1, 0.0 }
0x184e   :  { %691 = vadd.xlane.f32.xlu0 %v690_v2 }
0x18d7   :  { %v692_v3 = vpop.xlane.xlu0 %691 }
0x18d8   :  { %v693_v4 = vadd.f32 1e-16, %v692_v3 }
0x18da   :  { %1225 = vrcp.f32 %v693_v4 }
0x18e7   :  { %v1226_v5 = vpop.eup %1225 }
0x18e8   :  { %v695_v6 = vmul.f32 0.125, %v1226_v5 }
0x18ea   :  { %v696_v7 = vmul.f32 %v1407_v22, %v695_v6 }
0x18ec   :  { %v697_v8 = vsel %vm120_vm2, %v696_v7, 0.0 }
0x18ed   :  { %v698_v9 = vrot.slane %v697_v8, 4 }
0x18ef   :  { %v699_v10 = vadd.f32 %v698_v9, %v697_v8 }
0x18f1   :  { %v700_v11 = vrot.slane %v699_v10, 2 }
0x18f3   :  { %v701_v12 = vadd.f32 %v700_v11, %v699_v10 }
0x18f5   :  { %v702_v13 = vrot.slane %v701_v12, 1 }
0x18f7   :  { %v703_v14 = vadd.f32 %v702_v13, %v701_v12 }
0x18f9   :  { %v704_v15 = vadd.f32 1e-16, %v703_v14 }
0x18fb   :  { %1227 = vrcp.f32 %v704_v15 }
0x1908   :  { %v1228_v16 = vpop.eup %1227 }
0x1909   :  { %v706_v17 = vmul.f32 0.0625, %v1228_v16 }
0x190b   :  { %v707_v18 = vmul.f32 %v1407_v22, %v706_v17 }
0x190d   :  { %v708_v20 = vsel %vm120_vm2, %v707_v18, 0.0 }
0x190e   :  { %709 = vadd.xlane.f32.xlu1 %v708_v20 }
0x1997   :  { %v710_v21 = vpop.xlane.xlu1 %709 }
0x1998   :  { %v711_v23 = vadd.f32 1e-16, %v710_v21 }
0x199a   :  { %1229 = vrcp.f32 %v711_v23 }
0x19a7   :  { %v1230_v24 = vpop.eup %1229 }
0x19a8   :  { %v713_v25 = vmul.f32 0.125, %v1230_v24 }
0x19aa   :  { %v714_v26 = vmul.f32 %v1407_v22, %v713_v25 }
0x19ac   :  { %v715_v27 = vsel %vm120_vm2, %v714_v26, 0.0 }
0x19ad   :  { %v716_v28 = vrot.slane %v715_v27, 4 }
0x19af   :  { %v717_v29 = vadd.f32 %v716_v28, %v715_v27 }
0x19b1   :  { %v718_v30 = vrot.slane %v717_v29, 2 }
0x19b3   :  { %v719_v31 = vadd.f32 %v718_v30, %v717_v29 }
0x19b5   :  { %v720_v32 = vrot.slane %v719_v31, 1 }
0x19b7   :  { %v721_v33 = vadd.f32 %v720_v32, %v719_v31 }
0x19b9   :  { %v722_v34 = vadd.f32 1e-16, %v721_v33 }
0x19bb   :  { %1231 = vrcp.f32 %v722_v34 }
0x19c8   :  { %v1232_v35 = vpop.eup %1231 }
0x19c9   :  { %v724_v36 = vmul.f32 0.0625, %v1232_v35 }
0x19cb   :  { %v725_v37 = vmul.f32 %v1407_v22, %v724_v36 }
0x19cd   :  { %v726_v38 = vsel %vm120_vm2, %v725_v37, 0.0 }
0x19ce   :  { %727 = vadd.xlane.f32.xlu0 %v726_v38 }
0x1a57   :  { %v728_v39 = vpop.xlane.xlu0 %727 }
0x1a58   :  { %v729_v40 = vadd.f32 1e-16, %v728_v39 }
0x1a5a   :  { %1233 = vrcp.f32 %v729_v40 }
0x1a67   :  { %v1234_v41 = vpop.eup %1233 }
0x1a68   :  { %v731_v42 = vmul.f32 0.125, %v1234_v41 }
0x1a6a   :  { %v732_v43 = vmul.f32 %v1407_v22, %v731_v42 }
0x1a6c   :  { %v733_v44 = vsel %vm120_vm2, %v732_v43, 0.0 }
0x1a6d   :  { %v734_v45 = vrot.slane %v733_v44, 4 }
0x1a6f   :  { %v735_v46 = vadd.f32 %v734_v45, %v733_v44 }
0x1a71   :  { %v736_v47 = vrot.slane %v735_v46, 2 }
0x1a73   :  { %v737_v48 = vadd.f32 %v736_v47, %v735_v46 }
0x1a75   :  { %v738_v49 = vrot.slane %v737_v48, 1 }
0x1a77   :  { %v739_v50 = vadd.f32 %v738_v49, %v737_v48 }
0x1a79   :  { %v740_v51 = vadd.f32 1e-16, %v739_v50 }
0x1a7b   :  { %1235 = vrcp.f32 %v740_v51 }
0x1a88   :  { %v1236_v52 = vpop.eup %1235 }
0x1a89   :  { %v742_v53 = vmul.f32 0.0625, %v1236_v52 }
0x1a8b   :  { %v743_v54 = vmul.f32 %v1407_v22, %v742_v53 }
0x1a8d   :  { %v744_v55 = vsel %vm120_vm2, %v743_v54, 0.0 }
0x1a8e   :  { %745 = vadd.xlane.f32.xlu1 %v744_v55 }
0x1b17   :  { %v746_v56 = vpop.xlane.xlu1 %745 }
0x1b18   :  { %v747_v57 = vadd.f32 1e-16, %v746_v56 }
0x1b1a   :  { %1237 = vrcp.f32 %v747_v57 }
0x1b27   :  { %v1238_v58 = vpop.eup %1237 }
0x1b28   :  { %v749_v59 = vmul.f32 0.125, %v1238_v58 }
0x1b2a   :  { %v750_v60 = vmul.f32 %v1407_v22, %v749_v59 }
0x1b2c   :  { %v751_v61 = vsel %vm120_vm2, %v750_v60, 0.0 }
0x1b2d   :  { %v752_v62 = vrot.slane %v751_v61, 4 }
0x1b2f   :  { %v753_v63 = vadd.f32 %v752_v62, %v751_v61 }
0x1b31   :  { %v754_v0 = vrot.slane %v753_v63, 2 }
0x1b33   :  { %v755_v1 = vadd.f32 %v754_v0, %v753_v63 }
0x1b35   :  { %v756_v2 = vrot.slane %v755_v1, 1 }
0x1b37   :  { %v757_v3 = vadd.f32 %v756_v2, %v755_v1 }
0x1b39   :  { %v758_v4 = vadd.f32 1e-16, %v757_v3 }
0x1b3b   :  { %1239 = vrcp.f32 %v758_v4 }
0x1b48   :  { %v1240_v5 = vpop.eup %1239 }
0x1b49   :  { %v760_v6 = vmul.f32 0.0625, %v1240_v5 }
0x1b4b   :  { %v761_v7 = vmul.f32 %v1407_v22, %v760_v6 }
0x1b4d   :  { %v762_v8 = vsel %vm120_vm2, %v761_v7, 0.0 }
0x1b4e   :  { %763 = vadd.xlane.f32.xlu0 %v762_v8 }
0x1bd7   :  { %v764_v9 = vpop.xlane.xlu0 %763 }
0x1bd8   :  { %v765_v10 = vadd.f32 1e-16, %v764_v9 }
0x1bda   :  { %1241 = vrcp.f32 %v765_v10 }
0x1be7   :  { %v1242_v11 = vpop.eup %1241 }
0x1be8   :  { %v767_v12 = vmul.f32 0.125, %v1242_v11 }
0x1bea   :  { %v768_v13 = vmul.f32 %v1407_v22, %v767_v12 }
0x1bec   :  { %v769_v14 = vsel %vm120_vm2, %v768_v13, 0.0 }
0x1bed   :  { %v770_v15 = vrot.slane %v769_v14, 4 }
0x1bef   :  { %v771_v16 = vadd.f32 %v770_v15, %v769_v14 }
0x1bf1   :  { %v772_v17 = vrot.slane %v771_v16, 2 }
0x1bf3   :  { %v773_v18 = vadd.f32 %v772_v17, %v771_v16 }
0x1bf5   :  { %v774_v20 = vrot.slane %v773_v18, 1 }
0x1bf7   :  { %v775_v21 = vadd.f32 %v774_v20, %v773_v18 }
0x1bf9   :  { %v776_v23 = vadd.f32 1e-16, %v775_v21 }
0x1bfb   :  { %1243 = vrcp.f32 %v776_v23 }
0x1c08   :  { %v1244_v24 = vpop.eup %1243 }
0x1c09   :  { %v778_v25 = vmul.f32 0.0625, %v1244_v24 }
0x1c0b   :  { %v779_v26 = vmul.f32 %v1407_v22, %v778_v25 }
0x1c0d   :  { %v780_v27 = vsel %vm120_vm2, %v779_v26, 0.0 }
0x1c0e   :  { %781 = vadd.xlane.f32.xlu1 %v780_v27 }
0x1c97   :  { %v782_v28 = vpop.xlane.xlu1 %781 }
0x1c98   :  { %v783_v29 = vadd.f32 1e-16, %v782_v28 }
0x1c9a   :  { %1245 = vrcp.f32 %v783_v29 }
0x1ca7   :  { %v1246_v30 = vpop.eup %1245 }
0x1ca8   :  { %v785_v31 = vmul.f32 0.125, %v1246_v30 }
0x1caa   :  { %v786_v32 = vmul.f32 %v1407_v22, %v785_v31 }
0x1cac   :  { %v787_v33 = vsel %vm120_vm2, %v786_v32, 0.0 }
0x1cad   :  { %v788_v34 = vrot.slane %v787_v33, 4 }
0x1caf   :  { %v789_v35 = vadd.f32 %v788_v34, %v787_v33 }
0x1cb1   :  { %v790_v36 = vrot.slane %v789_v35, 2 }
0x1cb3   :  { %v791_v37 = vadd.f32 %v790_v36, %v789_v35 }
0x1cb5   :  { %v792_v38 = vrot.slane %v791_v37, 1 }
0x1cb7   :  { %v793_v39 = vadd.f32 %v792_v38, %v791_v37 }
0x1cb9   :  { %v794_v40 = vadd.f32 1e-16, %v793_v39 }
0x1cbb   :  { %1247 = vrcp.f32 %v794_v40 }
0x1cc8   :  { %v1248_v41 = vpop.eup %1247 }
0x1cc9   :  { %v796_v42 = vmul.f32 0.0625, %v1248_v41 }
0x1ccb   :  { %v797_v43 = vmul.f32 %v1407_v22, %v796_v42 }
0x1ccd   :  { %v798_v44 = vsel %vm120_vm2, %v797_v43, 0.0 }
0x1cce   :  { %799 = vadd.xlane.f32.xlu0 %v798_v44 }
0x1d57   :  { %v800_v45 = vpop.xlane.xlu0 %799 }
0x1d58   :  { %v801_v46 = vadd.f32 1e-16, %v800_v45 }
0x1d5a   :  { %1249 = vrcp.f32 %v801_v46 }
0x1d67   :  { %v1250_v47 = vpop.eup %1249 }
0x1d68   :  { %v803_v48 = vmul.f32 0.125, %v1250_v47 }
0x1d6a   :  { %v804_v49 = vmul.f32 %v1407_v22, %v803_v48 }
0x1d6c   :  { %v805_v50 = vsel %vm120_vm2, %v804_v49, 0.0 }
0x1d6d   :  { %v806_v51 = vrot.slane %v805_v50, 4 }
0x1d6f   :  { %v807_v52 = vadd.f32 %v806_v51, %v805_v50 }
0x1d71   :  { %v808_v53 = vrot.slane %v807_v52, 2 }
0x1d73   :  { %v809_v54 = vadd.f32 %v808_v53, %v807_v52 }
0x1d75   :  { %v810_v55 = vrot.slane %v809_v54, 1 }
0x1d77   :  { %v811_v56 = vadd.f32 %v810_v55, %v809_v54 }
0x1d79   :  { %v812_v57 = vadd.f32 1e-16, %v811_v56 }
0x1d7b   :  { %1251 = vrcp.f32 %v812_v57 }
0x1d88   :  { %v1252_v58 = vpop.eup %1251 }
0x1d89   :  { %v814_v59 = vmul.f32 0.0625, %v1252_v58 }
0x1d8b   :  { %v815_v60 = vmul.f32 %v1407_v22, %v814_v59 }
0x1d8d   :  { %v816_v61 = vsel %vm120_vm2, %v815_v60, 0.0 }
0x1d8e   :  { %817 = vadd.xlane.f32.xlu1 %v816_v61 }
0x1e17   :  { %v818_v62 = vpop.xlane.xlu1 %817 }
0x1e18   :  { %v819_v63 = vadd.f32 1e-16, %v818_v62 }
0x1e1a   :  { %1253 = vrcp.f32 %v819_v63 }
0x1e27   :  { %v1254_v0 = vpop.eup %1253 }
0x1e28   :  { %v821_v1 = vmul.f32 0.125, %v1254_v0 }
0x1e2a   :  { %v822_v2 = vmul.f32 %v1407_v22, %v821_v1 }
0x1e2c   :  { %v823_v3 = vsel %vm120_vm2, %v822_v2, 0.0 }
0x1e2d   :  { %v824_v4 = vrot.slane %v823_v3, 4 }
0x1e2f   :  { %v825_v5 = vadd.f32 %v824_v4, %v823_v3 }
0x1e31   :  { %v826_v6 = vrot.slane %v825_v5, 2 }
0x1e33   :  { %v827_v7 = vadd.f32 %v826_v6, %v825_v5 }
0x1e35   :  { %v828_v8 = vrot.slane %v827_v7, 1 }
0x1e37   :  { %v829_v9 = vadd.f32 %v828_v8, %v827_v7 }
0x1e39   :  { %v830_v10 = vadd.f32 1e-16, %v829_v9 }
0x1e3b   :  { %1255 = vrcp.f32 %v830_v10 }
0x1e48   :  { %v1256_v11 = vpop.eup %1255 }
0x1e49   :  { %v832_v12 = vmul.f32 0.0625, %v1256_v11 }
0x1e4b   :  { %v833_v13 = vmul.f32 %v1407_v22, %v832_v12 }
0x1e4d   :  { %v834_v14 = vsel %vm120_vm2, %v833_v13, 0.0 }
0x1e4e   :  { %835 = vadd.xlane.f32.xlu0 %v834_v14 }
0x1ed7   :  { %v836_v15 = vpop.xlane.xlu0 %835 }
0x1ed8   :  { %v837_v16 = vadd.f32 1e-16, %v836_v15 }
0x1eda   :  { %1257 = vrcp.f32 %v837_v16 }
0x1ee7   :  { %v1258_v17 = vpop.eup %1257 }
0x1ee8   :  { %v839_v18 = vmul.f32 0.125, %v1258_v17 }
0x1eea   :  { %v840_v20 = vmul.f32 %v1407_v22, %v839_v18 }
0x1eec   :  { %v841_v21 = vsel %vm120_vm2, %v840_v20, 0.0 }
0x1eed   :  { %v842_v23 = vrot.slane %v841_v21, 4 }
0x1eef   :  { %v843_v24 = vadd.f32 %v842_v23, %v841_v21 }
0x1ef1   :  { %v844_v25 = vrot.slane %v843_v24, 2 }
0x1ef3   :  { %v845_v26 = vadd.f32 %v844_v25, %v843_v24 }
0x1ef5   :  { %v846_v27 = vrot.slane %v845_v26, 1 }
0x1ef7   :  { %v847_v28 = vadd.f32 %v846_v27, %v845_v26 }
0x1ef9   :  { %v848_v29 = vadd.f32 1e-16, %v847_v28 }
0x1efb   :  { %1259 = vrcp.f32 %v848_v29 }
0x1f08   :  { %v1260_v30 = vpop.eup %1259 }
0x1f09   :  { %v850_v31 = vmul.f32 0.0625, %v1260_v30 }
0x1f0b   :  { %v851_v32 = vmul.f32 %v1407_v22, %v850_v31 }
0x1f0d   :  { %v852_v33 = vsel %vm120_vm2, %v851_v32, 0.0 }
0x1f0e   :  { %853 = vadd.xlane.f32.xlu1 %v852_v33 }
0x1f97   :  { %v854_v34 = vpop.xlane.xlu1 %853 }
0x1f98   :  { %v855_v35 = vadd.f32 1e-16, %v854_v34 }
0x1f9a   :  { %1261 = vrcp.f32 %v855_v35 }
0x1fa7   :  { %v1262_v36 = vpop.eup %1261 }
0x1fa8   :  { %v857_v37 = vmul.f32 0.125, %v1262_v36 }
0x1faa   :  { %v858_v38 = vmul.f32 %v1407_v22, %v857_v37 }
0x1fac   :  { %v859_v39 = vsel %vm120_vm2, %v858_v38, 0.0 }
0x1fad   :  { %v860_v40 = vrot.slane %v859_v39, 4 }
0x1faf   :  { %v861_v41 = vadd.f32 %v860_v40, %v859_v39 }
0x1fb1   :  { %v862_v42 = vrot.slane %v861_v41, 2 }
0x1fb3   :  { %v863_v43 = vadd.f32 %v862_v42, %v861_v41 }
0x1fb5   :  { %v864_v44 = vrot.slane %v863_v43, 1 }
0x1fb7   :  { %v865_v45 = vadd.f32 %v864_v44, %v863_v43 }
0x1fb9   :  { %v866_v46 = vadd.f32 1e-16, %v865_v45 }
0x1fbb   :  { %1263 = vrcp.f32 %v866_v46 }
0x1fc8   :  { %v1264_v47 = vpop.eup %1263 }
0x1fc9   :  { %v868_v48 = vmul.f32 0.0625, %v1264_v47 }
0x1fcb   :  { %v869_v49 = vmul.f32 %v1407_v22, %v868_v48 }
0x1fcd   :  { %v870_v50 = vsel %vm120_vm2, %v869_v49, 0.0 }
0x1fce   :  { %871 = vadd.xlane.f32.xlu0 %v870_v50 }
0x2057   :  { %v872_v51 = vpop.xlane.xlu0 %871 }
0x2058   :  { %v873_v52 = vadd.f32 1e-16, %v872_v51 }
0x205a   :  { %1265 = vrcp.f32 %v873_v52 }
0x2067   :  { %v1266_v53 = vpop.eup %1265 }
0x2068   :  { %v875_v54 = vmul.f32 0.125, %v1266_v53 }
0x206a   :  { %v876_v55 = vmul.f32 %v1407_v22, %v875_v54 }
0x206c   :  { %v877_v56 = vsel %vm120_vm2, %v876_v55, 0.0 }
0x206d   :  { %v878_v57 = vrot.slane %v877_v56, 4 }
0x206f   :  { %v879_v58 = vadd.f32 %v878_v57, %v877_v56 }
0x2071   :  { %v880_v59 = vrot.slane %v879_v58, 2 }
0x2073   :  { %v881_v60 = vadd.f32 %v880_v59, %v879_v58 }
0x2075   :  { %v882_v61 = vrot.slane %v881_v60, 1 }
0x2077   :  { %v883_v62 = vadd.f32 %v882_v61, %v881_v60 }
0x2079   :  { %v884_v63 = vadd.f32 1e-16, %v883_v62 }
0x207b   :  { %1267 = vrcp.f32 %v884_v63 }
0x2088   :  { %v1268_v0 = vpop.eup %1267 }
0x2089   :  { %v886_v1 = vmul.f32 0.0625, %v1268_v0 }
0x208b   :  { %v887_v2 = vmul.f32 %v1407_v22, %v886_v1 }
0x208d   :  { %v888_v3 = vsel %vm120_vm2, %v887_v2, 0.0 }
0x208e   :  { %889 = vadd.xlane.f32.xlu1 %v888_v3 }
0x2117   :  { %v890_v4 = vpop.xlane.xlu1 %889 }
0x2118   :  { %v891_v5 = vadd.f32 1e-16, %v890_v4 }
0x211a   :  { %1269 = vrcp.f32 %v891_v5 }
0x2127   :  { %v1270_v6 = vpop.eup %1269 }
0x2128   :  { %v893_v7 = vmul.f32 0.125, %v1270_v6 }
0x212a   :  { %v894_v8 = vmul.f32 %v1407_v22, %v893_v7 }
0x212c   :  { %v895_v9 = vsel %vm120_vm2, %v894_v8, 0.0 }
0x212d   :  { %v896_v10 = vrot.slane %v895_v9, 4 }
0x212f   :  { %v897_v11 = vadd.f32 %v896_v10, %v895_v9 }
0x2131   :  { %v898_v12 = vrot.slane %v897_v11, 2 }
0x2133   :  { %v899_v13 = vadd.f32 %v898_v12, %v897_v11 }
0x2135   :  { %v900_v14 = vrot.slane %v899_v13, 1 }
0x2137   :  { %v901_v15 = vadd.f32 %v900_v14, %v899_v13 }
0x2139   :  { %v902_v16 = vadd.f32 1e-16, %v901_v15 }
0x213b   :  { %1271 = vrcp.f32 %v902_v16 }
0x2148   :  { %v1272_v17 = vpop.eup %1271 }
0x2149   :  { %v904_v18 = vmul.f32 0.0625, %v1272_v17 }
0x214b   :  { %v905_v20 = vmul.f32 %v1407_v22, %v904_v18 }
0x214d   :  { %v906_v21 = vsel %vm120_vm2, %v905_v20, 0.0 }
0x214e   :  { %907 = vadd.xlane.f32.xlu0 %v906_v21 }
0x21d7   :  { %v908_v23 = vpop.xlane.xlu0 %907 }
0x21d8   :  { %v909_v24 = vadd.f32 1e-16, %v908_v23 }
0x21da   :  { %1273 = vrcp.f32 %v909_v24 }
0x21e7   :  { %v1274_v25 = vpop.eup %1273 }
0x21e8   :  { %v911_v26 = vmul.f32 0.125, %v1274_v25 }
0x21ea   :  { %v912_v27 = vmul.f32 %v1407_v22, %v911_v26 }
0x21ec   :  { %v913_v28 = vsel %vm120_vm2, %v912_v27, 0.0 }
0x21ed   :  { %v914_v29 = vrot.slane %v913_v28, 4 }
0x21ef   :  { %v915_v30 = vadd.f32 %v914_v29, %v913_v28 }
0x21f1   :  { %v916_v31 = vrot.slane %v915_v30, 2 }
0x21f3   :  { %v917_v32 = vadd.f32 %v916_v31, %v915_v30 }
0x21f5   :  { %v918_v33 = vrot.slane %v917_v32, 1 }
0x21f7   :  { %v919_v34 = vadd.f32 %v918_v33, %v917_v32 }
0x21f9   :  { %v920_v35 = vadd.f32 1e-16, %v919_v34 }
0x21fb   :  { %1275 = vrcp.f32 %v920_v35 }
0x2208   :  { %v1276_v36 = vpop.eup %1275 }
0x2209   :  { %v922_v37 = vmul.f32 0.0625, %v1276_v36 }
0x220b   :  { %v923_v38 = vmul.f32 %v1407_v22, %v922_v37 }
0x220d   :  { %v924_v39 = vsel %vm120_vm2, %v923_v38, 0.0 }
0x220e   :  { %925 = vadd.xlane.f32.xlu1 %v924_v39 }
0x2297   :  { %v926_v40 = vpop.xlane.xlu1 %925 }
0x2298   :  { %v927_v41 = vadd.f32 1e-16, %v926_v40 }
0x229a   :  { %1277 = vrcp.f32 %v927_v41 }
0x22a7   :  { %v1278_v42 = vpop.eup %1277 }
0x22a8   :  { %v929_v43 = vmul.f32 0.125, %v1278_v42 }
0x22aa   :  { %v930_v44 = vmul.f32 %v1407_v22, %v929_v43 }
0x22ac   :  { %v931_v45 = vsel %vm120_vm2, %v930_v44, 0.0 }
0x22ad   :  { %v932_v46 = vrot.slane %v931_v45, 4 }
0x22af   :  { %v933_v47 = vadd.f32 %v932_v46, %v931_v45 }
0x22b1   :  { %v934_v48 = vrot.slane %v933_v47, 2 }
0x22b3   :  { %v935_v49 = vadd.f32 %v934_v48, %v933_v47 }
0x22b5   :  { %v936_v50 = vrot.slane %v935_v49, 1 }
0x22b7   :  { %v937_v51 = vadd.f32 %v936_v50, %v935_v49 }
0x22b9   :  { %v938_v52 = vadd.f32 1e-16, %v937_v51 }
0x22bb   :  { %1279 = vrcp.f32 %v938_v52 }
0x22c8   :  { %v1280_v53 = vpop.eup %1279 }
0x22c9   :  { %v940_v54 = vmul.f32 0.0625, %v1280_v53 }
0x22cb   :  { %v941_v55 = vmul.f32 %v1407_v22, %v940_v54 }
0x22cd   :  { %v942_v56 = vsel %vm120_vm2, %v941_v55, 0.0 }
0x22ce   :  { %943 = vadd.xlane.f32.xlu0 %v942_v56 }
0x2357   :  { %v944_v57 = vpop.xlane.xlu0 %943 }
0x2358   :  { %v945_v58 = vadd.f32 1e-16, %v944_v57 }
0x235a   :  { %1281 = vrcp.f32 %v945_v58 }
0x2367   :  { %v1282_v59 = vpop.eup %1281 }
0x2368   :  { %v947_v60 = vmul.f32 0.125, %v1282_v59 }
0x236a   :  { %v948_v61 = vmul.f32 %v1407_v22, %v947_v60 }
0x236c   :  { %v949_v62 = vsel %vm120_vm2, %v948_v61, 0.0 }
0x236d   :  { %v950_v63 = vrot.slane %v949_v62, 4 }
0x236f   :  { %v951_v0 = vadd.f32 %v950_v63, %v949_v62 }
0x2371   :  { %v952_v1 = vrot.slane %v951_v0, 2 }
0x2373   :  { %v953_v2 = vadd.f32 %v952_v1, %v951_v0 }
0x2375   :  { %v954_v3 = vrot.slane %v953_v2, 1 }
0x2377   :  { %v955_v4 = vadd.f32 %v954_v3, %v953_v2 }
0x2379   :  { %v956_v5 = vadd.f32 1e-16, %v955_v4 }
0x237b   :  { %1283 = vrcp.f32 %v956_v5 }
0x2388   :  { %v1284_v6 = vpop.eup %1283 }
0x2389   :  { %v958_v7 = vmul.f32 0.0625, %v1284_v6 }
0x238b   :  { %v959_v8 = vmul.f32 %v1407_v22, %v958_v7 }
0x238d   :  { %v960_v9 = vsel %vm120_vm2, %v959_v8, 0.0 }
0x238e   :  { %961 = vadd.xlane.f32.xlu1 %v960_v9 }
0x2417   :  { %v962_v10 = vpop.xlane.xlu1 %961 }
0x2418   :  { %v963_v11 = vadd.f32 1e-16, %v962_v10 }
0x241a   :  { %1285 = vrcp.f32 %v963_v11 }
0x2427   :  { %v1286_v12 = vpop.eup %1285 }
0x2428   :  { %v965_v13 = vmul.f32 0.125, %v1286_v12 }
0x242a   :  { %v966_v14 = vmul.f32 %v1407_v22, %v965_v13 }
0x242c   :  { %v967_v15 = vsel %vm120_vm2, %v966_v14, 0.0 }
0x242d   :  { %v968_v16 = vrot.slane %v967_v15, 4 }
0x242f   :  { %v969_v17 = vadd.f32 %v968_v16, %v967_v15 }
0x2431   :  { %v970_v18 = vrot.slane %v969_v17, 2 }
0x2433   :  { %v971_v20 = vadd.f32 %v970_v18, %v969_v17 }
0x2435   :  { %v972_v21 = vrot.slane %v971_v20, 1 }
0x2437   :  { %v973_v23 = vadd.f32 %v972_v21, %v971_v20 }
0x2439   :  { %v974_v24 = vadd.f32 1e-16, %v973_v23 }
0x243b   :  { %1287 = vrcp.f32 %v974_v24 }
0x2448   :  { %v1288_v25 = vpop.eup %1287 }
0x2449   :  { %v976_v26 = vmul.f32 0.0625, %v1288_v25 }
0x244b   :  { %v977_v27 = vmul.f32 %v1407_v22, %v976_v26 }
0x244d   :  { %v978_v28 = vsel %vm120_vm2, %v977_v27, 0.0 }
0x244e   :  { %979 = vadd.xlane.f32.xlu0 %v978_v28 }
0x24d7   :  { %v980_v29 = vpop.xlane.xlu0 %979 }
0x24d8   :  { %v981_v30 = vadd.f32 1e-16, %v980_v29 }
0x24da   :  { %1289 = vrcp.f32 %v981_v30 }
0x24e7   :  { %v1290_v31 = vpop.eup %1289 }
0x24e8   :  { %v983_v32 = vmul.f32 0.125, %v1290_v31 }
0x24ea   :  { %v984_v33 = vmul.f32 %v1407_v22, %v983_v32 }
0x24ec   :  { %v985_v34 = vsel %vm120_vm2, %v984_v33, 0.0 }
0x24ed   :  { %v986_v35 = vrot.slane %v985_v34, 4 }
0x24ef   :  { %v987_v36 = vadd.f32 %v986_v35, %v985_v34 }
0x24f1   :  { %v988_v37 = vrot.slane %v987_v36, 2 }
0x24f3   :  { %v989_v38 = vadd.f32 %v988_v37, %v987_v36 }
0x24f5   :  { %v990_v39 = vrot.slane %v989_v38, 1 }
0x24f7   :  { %v991_v40 = vadd.f32 %v990_v39, %v989_v38 }
0x24f9   :  { %v992_v41 = vadd.f32 1e-16, %v991_v40 }
0x24fb   :  { %1291 = vrcp.f32 %v992_v41 }
0x2508   :  { %v1292_v42 = vpop.eup %1291 }
0x2509   :  { %v994_v43 = vmul.f32 0.0625, %v1292_v42 }
0x250b   :  { %v995_v44 = vmul.f32 %v1407_v22, %v994_v43 }
0x250d   :  { %v996_v45 = vsel %vm120_vm2, %v995_v44, 0.0 }
0x250e   :  { %997 = vadd.xlane.f32.xlu1 %v996_v45 }
0x2597   :  { %v998_v46 = vpop.xlane.xlu1 %997 }
0x2598   :  { %v999_v47 = vadd.f32 1e-16, %v998_v46 }
0x259a   :  { %1293 = vrcp.f32 %v999_v47 }
0x25a7   :  { %v1294_v48 = vpop.eup %1293 }
0x25a8   :  { %v1001_v49 = vmul.f32 0.125, %v1294_v48 }
0x25aa   :  { %v1002_v50 = vmul.f32 %v1407_v22, %v1001_v49 }
0x25ac   :  { %v1003_v51 = vsel %vm120_vm2, %v1002_v50, 0.0 }
0x25ad   :  { %v1004_v52 = vrot.slane %v1003_v51, 4 }
0x25af   :  { %v1005_v53 = vadd.f32 %v1004_v52, %v1003_v51 }
0x25b1   :  { %v1006_v54 = vrot.slane %v1005_v53, 2 }
0x25b3   :  { %v1007_v55 = vadd.f32 %v1006_v54, %v1005_v53 }
0x25b5   :  { %v1008_v56 = vrot.slane %v1007_v55, 1 }
0x25b7   :  { %v1009_v57 = vadd.f32 %v1008_v56, %v1007_v55 }
0x25b9   :  { %v1010_v58 = vadd.f32 1e-16, %v1009_v57 }
0x25bb   :  { %1295 = vrcp.f32 %v1010_v58 }
0x25c8   :  { %v1296_v59 = vpop.eup %1295 }
0x25c9   :  { %v1012_v60 = vmul.f32 0.0625, %v1296_v59 }
0x25cb   :  { %v1013_v61 = vmul.f32 %v1407_v22, %v1012_v60 }
0x25cd   :  { %v1014_v62 = vsel %vm120_vm2, %v1013_v61, 0.0 }
0x25ce   :  { %1015 = vadd.xlane.f32.xlu0 %v1014_v62 }
0x2657   :  { %v1016_v63 = vpop.xlane.xlu0 %1015 }
0x2658   :  { %v1017_v0 = vadd.f32 1e-16, %v1016_v63 }
0x265a   :  { %1297 = vrcp.f32 %v1017_v0 }
0x2667   :  { %v1298_v1 = vpop.eup %1297 }
0x2668   :  { %v1019_v2 = vmul.f32 0.125, %v1298_v1 }
0x266a   :  { %v1020_v3 = vmul.f32 %v1407_v22, %v1019_v2 }
0x266c   :  { %v1021_v4 = vmul.f32 %v1020_v3, %v1012_v60 }
0x266e   :  { %v1023_v5 = vmul.f32 %v1021_v4, %v1404_v19  ;;  %1022 = vst.msk [vmem:[#allocation2] sm:$0xff] %vm120_vm2, %v1021_v4 }
0x2670   :  { %v1024_v6 = vsel %vm120_vm2, %v1023_v5, 0.0 }
0x2671   :  { %1025 = vadd.xlane.f32.xlu1 %v1024_v6 }
0x2672   :  { %1310 = shalt.err (!%p1307_p4)
}
0x2673   :  { %1044 = dma.vmem_to_hbm [thread:$0]  %s1042_s2, 128, %s1622_s3, [#allocation3]   ;;  %vm1033_vm3 = vcmask 0  }
0x2674   :  { %s1346_s11 = smov [#allocation4]  }
0x2675   :  { %s1051_s12 = sshll.u32 %s1346_s11, 4  ;;  %s1052_s12 = int_to_ptr.vmem [resolvable:$true] %s1051_s12 }
0x2676   :  { %s1319_s13 = scalar_lea.vmem %s1052_s12, 16  ;;  %s1323_s14 = scalar_lea.vmem %s1052_s12, 32 }
0x2677   :  { %p1320_p5 = scmp.ne.s32.totalorder %s1052_s12, %s1319_s13  ;;  %p1324_p6 = scmp.lt.s32.totalorder %s1052_s12, %s1052_s12 }
0x2678   :  { %p1325_p7 = scmp.lt.s32.totalorder %s1323_s14, %s1319_s13 }
0x267a   :  { %p1326_p8 = por %p1325_p7, %p1324_p6 }
0x267c   :  { %p1327_p9 = pnand %p1326_p8, %p1320_p5 }
0x26fa   :  { %v1026_v19 = vpop.xlane.xlu1 %1025 }
0x26fb   :  { %v1027_v22 = vrot.slane %v1026_v19, 4 }
0x26fd   :  { %v1028_v7 = vadd.f32 %v1027_v22, %v1026_v19 }
0x26ff   :  { %v1029_v8 = vrot.slane %v1028_v7, 2 }
0x2701   :  { %v1030_v9 = vadd.f32 %v1029_v8, %v1028_v7 }
0x2703   :  { %v1031_v10 = vrot.slane %v1030_v9, 1 }
0x2705   :  { %v1032_v11 = vadd.f32 %v1031_v10, %v1030_v9 }
0x2707   :  { %1034 = vst.msk [vmem:[#allocation4] sm:$0x1] %vm1033_vm3, %v1032_v11 }
0x2708   :  { %1330 = shalt.err (!%p1327_p9)
}
0x2709   :  { %1054 = dma.vmem_to_hbm [thread:$0]  %s1052_s12, 16, %s1623_s4, [#allocation5]  }
0x270a   :  { %1339 = dma.done.wait [#allocation3], 128  }
0x270b   :  { %1340 = vsyncadd [#allocation3], 4294967168 }
0x270c   :  { %1341 = dma.done.wait [#allocation5], 16  }
0x270d   :  { %1342 = vsyncadd [#allocation5], 4294967280 }
0x270e   :  { %1061 = vsyncpa [#allocation3], 1 }
0x270f   :  { %1062 = vsyncpa [#allocation5], 1 }

</bundles_post_ra>
